<compile_context>
chip_gen: v7x
topology: tpu7x:2x2x1
jax: 0.10.0
libtpu: 0.0.40
codegen_flags: <defaults>
</compile_context>

<pallas_src>
import functools

import numpy as np
import jax
import jax.numpy as jnp
from jax.experimental import pallas as pl
from jax.experimental.pallas import tpu as pltpu


# ----------------------------------------------------------------------------
# Kernel 1: embedding lookup (one-hot MXU gather) + time-major assembly with
#           the image features injected as timestep 0. Single grid step.
# ----------------------------------------------------------------------------
def _embed_concat_kernel(ids_ref, feat_ref, emb_ref, x_ref):
    n = ids_ref.shape[0]                 # N = T * B, time-major
    v, e = emb_ref.shape
    t1, bsz, _ = x_ref.shape             # (T+1, B, E)

    ids = ids_ref[...]                                         # (N, 1) int32
    iota = jax.lax.broadcasted_iota(jnp.int32, (n, v), 1)
    onehot = (iota == ids).astype(jnp.bfloat16)                # (N, V)
    emb = jnp.dot(onehot, emb_ref[...],
                  preferred_element_type=jnp.float32)          # (N, E) f32, exact gather

    x_ref[0] = feat_ref[...].astype(x_ref.dtype)               # features -> timestep 0
    x_ref[pl.ds(1, t1 - 1)] = emb.reshape(t1 - 1, bsz, e).astype(x_ref.dtype)


def build_inputs(ids_tm, features, emb_table, seq_t):
    n = ids_tm.shape[0]
    v, e = emb_table.shape
    bsz = features.shape[0]
    return pl.pallas_call(
        _embed_concat_kernel,
        out_shape=jax.ShapeDtypeStruct((seq_t + 1, bsz, e), jnp.float32),
        grid=(1,),
        in_specs=[
            pl.BlockSpec((n, 1), lambda i: (0, 0)),
            pl.BlockSpec((bsz, e), lambda i: (0, 0)),
            pl.BlockSpec((v, e), lambda i: (0, 0)),
        ],
        out_specs=pl.BlockSpec((seq_t + 1, bsz, e), lambda i: (0, 0, 0)),
        compiler_params=pltpu.CompilerParams(dimension_semantics=("arbitrary",)),
    )(ids_tm, features, emb_table)


# ----------------------------------------------------------------------------
# Shared recurrence body: x@W_ih hoisted to one big matmul (M=(T+1)*B), bias
# folded in; per-step only h_prev@W_hh + elementwise gates (i, f, g, o order).
# ----------------------------------------------------------------------------
def _run_recurrence(x_ref, wih_ref, whh_ref, b_ref, gx_sc, store_h):
    t1, bsz, e = x_ref.shape
    h4 = whh_ref.shape[1]
    h = h4 // 4

    # Hoisted input projection: one MXU pass over all (T+1)*B rows, bias folded in.
    x_flat = x_ref[...].reshape(t1 * bsz, e).astype(jnp.bfloat16)
    gx = jnp.dot(x_flat, wih_ref[...], preferred_element_type=jnp.float32) + b_ref[...]
    gx_sc[...] = gx.reshape(t1, bsz, h4)

    h_prev = jnp.zeros((bsz, h), jnp.float32)
    c_prev = jnp.zeros((bsz, h), jnp.float32)
    for t in range(t1):                                   # static unroll (T+1 small)
        gates = gx_sc[t] + jnp.dot(h_prev.astype(jnp.bfloat16), whh_ref[...],
                                   preferred_element_type=jnp.float32)
        i = jax.nn.sigmoid(gates[:, 0:h])
        f = jax.nn.sigmoid(gates[:, h:2 * h])
        g = jnp.tanh(gates[:, 2 * h:3 * h])
        o = jax.nn.sigmoid(gates[:, 3 * h:4 * h])
        c_prev = f * c_prev + i * g
        h_prev = o * jnp.tanh(c_prev)
        store_h(t, h_prev)


# ----------------------------------------------------------------------------
# Kernel 2: one LSTM layer, single grid step, whole sequence resident in VMEM.
# ----------------------------------------------------------------------------
def _lstm_layer_kernel(x_ref, wih_ref, whh_ref, b_ref, h_out_ref, gx_sc):
    def store_h(t, h_new):
        h_out_ref[t] = h_new.astype(h_out_ref.dtype)
    _run_recurrence(x_ref, wih_ref, whh_ref, b_ref, gx_sc, store_h)


def lstm_layer(x_seq, w_ih, w_hh, b):
    t1, bsz, e = x_seq.shape
    h = w_hh.shape[0]
    return pl.pallas_call(
        _lstm_layer_kernel,
        out_shape=jax.ShapeDtypeStruct((t1, bsz, h), jnp.float32),
        grid=(1,),
        in_specs=[
            pl.BlockSpec((t1, bsz, e), lambda i: (0, 0, 0)),
            pl.BlockSpec((e, 4 * h), lambda i: (0, 0)),      # resident weights
            pl.BlockSpec((h, 4 * h), lambda i: (0, 0)),
            pl.BlockSpec((1, 4 * h), lambda i: (0, 0)),
        ],
        out_specs=pl.BlockSpec((t1, bsz, h), lambda i: (0, 0, 0)),
        scratch_shapes=[pltpu.VMEM((t1, bsz, 4 * h), jnp.float32)],
        compiler_params=pltpu.CompilerParams(dimension_semantics=("arbitrary",)),
    )(x_seq, w_ih, w_hh, b)


# ----------------------------------------------------------------------------
# Kernel 3: last LSTM layer; vocab Linear applied once after the time loop on
#           the full ((T+1)*B, H) hidden slab kept in VMEM scratch.
# ----------------------------------------------------------------------------
def _lstm_layer_linear_kernel(x_ref, wih_ref, whh_ref, b_ref, wlin_ref, blin_ref,
                              o_ref, gx_sc, h_sc):
    t1, bsz, _ = x_ref.shape
    h = whh_ref.shape[0]
    v = wlin_ref.shape[1]

    def store_h(t, h_new):
        h_sc[t] = h_new
    _run_recurrence(x_ref, wih_ref, whh_ref, b_ref, gx_sc, store_h)

    # Single batched vocab projection (M = (T+1)*B), not serialized per timestep.
    h_flat = h_sc[...].reshape(t1 * bsz, h).astype(jnp.bfloat16)
    logits = jnp.dot(h_flat, wlin_ref[...],
                     preferred_element_type=jnp.float32) + blin_ref[...]
    o_ref[...] = logits.reshape(t1, bsz, v)


def lstm_layer_with_linear(x_seq, w_ih, w_hh, b, w_lin, b_lin):
    t1, bsz, e = x_seq.shape
    h = w_hh.shape[0]
    v = w_lin.shape[1]
    return pl.pallas_call(
        _lstm_layer_linear_kernel,
        out_shape=jax.ShapeDtypeStruct((t1, bsz, v), jnp.float32),
        grid=(1,),
        in_specs=[
            pl.BlockSpec((t1, bsz, e), lambda i: (0, 0, 0)),
            pl.BlockSpec((e, 4 * h), lambda i: (0, 0)),
            pl.BlockSpec((h, 4 * h), lambda i: (0, 0)),
            pl.BlockSpec((1, 4 * h), lambda i: (0, 0)),
            pl.BlockSpec((h, v), lambda i: (0, 0)),
            pl.BlockSpec((1, v), lambda i: (0, 0)),
        ],
        out_specs=pl.BlockSpec((t1, bsz, v), lambda i: (0, 0, 0)),
        scratch_shapes=[pltpu.VMEM((t1, bsz, 4 * h), jnp.float32),
                        pltpu.VMEM((t1, bsz, h), jnp.float32)],
        compiler_params=pltpu.CompilerParams(dimension_semantics=("arbitrary",)),
    )(x_seq, w_ih, w_hh, b, w_lin, b_lin)


# ----------------------------------------------------------------------------
# Full forward:  features (B,E), captions (B,T)  ->  logits (T+1, B, V) time-major.
# ----------------------------------------------------------------------------
@functools.partial(jax.jit, static_argnames=("num_layers",))
def decoder_rnn_forward(features, captions, params, *, num_layers):
    bsz, seq_t = captions.shape
    # time-major ids so the embedded rows land directly in (T, B, E) order.
    ids_tm = jnp.transpose(captions, (1, 0)).reshape(seq_t * bsz, 1).astype(jnp.int32)
    x = build_inputs(ids_tm, features.astype(jnp.float32), params["embed"], seq_t)

    for layer in range(num_layers - 1):
        x = lstm_layer(x, params[f"w_ih_{layer}"], params[f"w_hh_{layer}"],
                       params[f"b_{layer}"])
    last = num_layers - 1
    logits = lstm_layer_with_linear(
        x, params[f"w_ih_{last}"], params[f"w_hh_{last}"], params[f"b_{last}"],
        params["lin_w"], params["lin_b"])
    return logits  # (T+1, B, V), float32


def init_params(key, vocab_size, embed_size, hidden_size, num_layers):
    keys = jax.random.split(key, 3 + 3 * num_layers)
    params = {
        "embed": (0.1 * jax.random.normal(keys[0], (vocab_size, embed_size),
                                          jnp.float32)).astype(jnp.bfloat16),
        "lin_w": (0.05 * jax.random.normal(keys[1], (hidden_size, vocab_size),
                                           jnp.float32)).astype(jnp.bfloat16),
        "lin_b": 0.01 * jax.random.normal(keys[2], (1, vocab_size), jnp.float32),
    }
    for layer in range(num_layers):
        in_dim = embed_size if layer == 0 else hidden_size
        k1, k2, k3 = keys[3 + 3 * layer: 6 + 3 * layer]
        # W_ih stored transposed (in_dim, 4H); W_hh (H, 4H); b = b_ih + b_hh (gate order i,f,g,o).
        params[f"w_ih_{layer}"] = (0.05 * jax.random.normal(
            k1, (in_dim, 4 * hidden_size), jnp.float32)).astype(jnp.bfloat16)
        params[f"w_hh_{layer}"] = (0.05 * jax.random.normal(
            k2, (hidden_size, 4 * hidden_size), jnp.float32)).astype(jnp.bfloat16)
        params[f"b_{layer}"] = 0.01 * jax.random.normal(
            k3, (1, 4 * hidden_size), jnp.float32)
    return params


def reference_forward(features, captions, params, num_layers):
    """Pure-JAX reference with the same bf16/f32 casting as the kernels."""
    emb = jnp.take(params["embed"].astype(jnp.float32), captions, axis=0)     # (B,T,E)
    x = jnp.concatenate([features.astype(jnp.float32)[:, None, :], emb], 1)   # (B,T+1,E)
    x = jnp.transpose(x, (1, 0, 2))                                           # (T+1,B,E)
    for layer in range(num_layers):
        w_ih, w_hh, b = (params[f"w_ih_{layer}"], params[f"w_hh_{layer}"],
                         params[f"b_{layer}"])
        h_dim = w_hh.shape[0]
        t1, bsz, e_in = x.shape
        gx = jnp.dot(x.reshape(t1 * bsz, e_in).astype(jnp.bfloat16), w_ih,
                     preferred_element_type=jnp.float32) + b
        gx = gx.reshape(t1, bsz, 4 * h_dim)

        def step(carry, g_t):
            h_prev, c_prev = carry
            gates = g_t + jnp.dot(h_prev.astype(jnp.bfloat16), w_hh,
                                  preferred_element_type=jnp.float32)
            i = jax.nn.sigmoid(gates[:, 0:h_dim])
            f = jax.nn.sigmoid(gates[:, h_dim:2 * h_dim])
            g = jnp.tanh(gates[:, 2 * h_dim:3 * h_dim])
            o = jax.nn.sigmoid(gates[:, 3 * h_dim:4 * h_dim])
            c_new = f * c_prev + i * g
            h_new = o * jnp.tanh(c_new)
            return (h_new, c_new), h_new

        init = (jnp.zeros((bsz, h_dim), jnp.float32),
                jnp.zeros((bsz, h_dim), jnp.float32))
        _, x = jax.lax.scan(step, init, gx)
    t1, bsz, h_dim = x.shape
    logits = jnp.dot(x.reshape(t1 * bsz, h_dim).astype(jnp.bfloat16), params["lin_w"],
                     preferred_element_type=jnp.float32) + params["lin_b"]
    return logits.reshape(t1, bsz, -1)


if __name__ == "__main__":
    B, T = 8, 7                 # captions (B, T); LSTM runs over T+1 steps (features prepended)
    EMBED, HIDDEN = 128, 128    # lane-dense (multiples of 128)
    VOCAB = 256
    NUM_LAYERS = 2

    key = jax.random.PRNGKey(0)
    k_feat, k_cap, k_par = jax.random.split(key, 3)
    features = jax.random.normal(k_feat, (B, EMBED), jnp.float32)
    captions = jax.random.randint(k_cap, (B, T), 0, VOCAB, jnp.int32)
    lengths = [8, 8, 7, 6, 6, 5, 3, 2]   # sorted descending, <= T+1 (pack_padded_sequence contract)
    params = init_params(k_par, VOCAB, EMBED, HIDDEN, NUM_LAYERS)

    logits_tm = decoder_rnn_forward(features, captions, params, num_layers=NUM_LAYERS)
    jax.block_until_ready(logits_tm)
    assert logits_tm.shape == (T + 1, B, VOCAB) and logits_tm.dtype == jnp.float32

    # Correctness vs pure-JAX reference (same bf16 casts; tolerance covers accumulation order).
    ref = reference_forward(features, captions, params, NUM_LAYERS)
    jax.block_until_ready(ref)
    np.testing.assert_allclose(np.asarray(logits_tm), np.asarray(ref), atol=5e-2, rtol=5e-2)

    # Gather PyTorch packed order: for each timestep t (ascending), batch rows with length > t.
    packed_idx = np.array([t * B + b for t in range(T + 1) for b in range(B)
                           if lengths[b] > t], np.int32)
    outputs = logits_tm.reshape((T + 1) * B, VOCAB)[packed_idx]   # == self.linear(hiddens[0])
    jax.block_until_ready(outputs)
    assert outputs.shape == (sum(lengths), VOCAB) and outputs.dtype == jnp.float32

    print("KERNEL_OK")
</pallas_src>

<mosaic_0001>
module attributes {stable_mosaic.version = 11 : i64} {
  func.func @_embed_concat_kernel(%arg0: i32, %arg1: memref<56x1xi32, #tpu.memory_space<vmem>>, %arg2: memref<8x128xf32, #tpu.memory_space<vmem>>, %arg3: memref<256x128xbf16, #tpu.memory_space<vmem>>, %arg4: memref<8x8x128xf32, #tpu.memory_space<vmem>>) attributes {dimension_semantics = [#tpu.dimension_semantics<arbitrary>], iteration_bounds = array<i64: 1>, scalar_prefetch = 0 : i64, scratch_operands = 0 : i64, tpu.core_type = #tpu.core_type<tc>, window_params = [{pipeline_mode = #tpu.pipeline_mode<synchronous>, transform_indices = @transform_0, window_bounds = array<i64: 56, 1>}, {pipeline_mode = #tpu.pipeline_mode<synchronous>, transform_indices = @transform_1, window_bounds = array<i64: 8, 128>}, {pipeline_mode = #tpu.pipeline_mode<synchronous>, transform_indices = @transform_2, window_bounds = array<i64: 256, 128>}, {pipeline_mode = #tpu.pipeline_mode<synchronous>, transform_indices = @transform_3, window_bounds = array<i64: 8, 8, 128>}]} {
    %c0 = arith.constant 0 : index
    %c0_0 = arith.constant 0 : index
    %0 = vector.load %arg1[%c0, %c0_0] : memref<56x1xi32, #tpu.memory_space<vmem>>, vector<56x1xi32>
    %1 = tpu.iota {dimensions = array<i32: 1>} : vector<56x256xi32>
    %2 = vector.broadcast %0 : vector<56x1xi32> to vector<56x256xi32>
    %3 = arith.cmpi eq, %1, %2 : vector<56x256xi32>
    %4 = arith.extui %3 : vector<56x256xi1> to vector<56x256xi32>
    %5 = arith.sitofp %4 : vector<56x256xi32> to vector<56x256xf32>
    %6 = arith.truncf %5 : vector<56x256xf32> to vector<56x256xbf16>
    %c0_1 = arith.constant 0 : index
    %c0_2 = arith.constant 0 : index
    %7 = vector.load %arg3[%c0_1, %c0_2] : memref<256x128xbf16, #tpu.memory_space<vmem>>, vector<256x128xbf16>
    %cst = arith.constant dense<0.000000e+00> : vector<56x128xf32>
    %8 = tpu.matmul %6, %7, %cst {dimension_numbers = #tpu.dot_dimension_numbers<[1], [0], [0], [1], [0, 0, 1, 1], [], []>} : vector<56x256xbf16>, vector<256x128xbf16>, vector<56x128xf32> -> vector<56x128xf32>
    %c0_3 = arith.constant 0 : index
    %c0_4 = arith.constant 0 : index
    %9 = vector.load %arg2[%c0_3, %c0_4] : memref<8x128xf32, #tpu.memory_space<vmem>>, vector<8x128xf32>
    %c0_5 = arith.constant 0 : index
    %c0_6 = arith.constant 0 : index
    %c0_7 = arith.constant 0 : index
    %10 = vector.load %arg4[%c0_5, %c0_6, %c0_7] : memref<8x8x128xf32, #tpu.memory_space<vmem>>, vector<1x8x128xf32>
    %11 = vector.shape_cast %10 : vector<1x8x128xf32> to vector<8x128xf32>
    %12 = vector.shape_cast %9 : vector<8x128xf32> to vector<1x8x128xf32>
    tpu.vector_store %arg4[%c0_5, %c0_6, %c0_7], %12 {strides = array<i32>} : memref<8x8x128xf32, #tpu.memory_space<vmem>>, vector<1x8x128xf32>,
    %13 = vector.shape_cast %8 : vector<56x128xf32> to vector<7x8x128xf32>
    %c1 = arith.constant 1 : index
    %c0_8 = arith.constant 0 : index
    %c0_9 = arith.constant 0 : index
    %14 = vector.load %arg4[%c1, %c0_8, %c0_9] : memref<8x8x128xf32, #tpu.memory_space<vmem>>, vector<7x8x128xf32>
    tpu.vector_store %arg4[%c1, %c0_8, %c0_9], %13 {strides = array<i32>} : memref<8x8x128xf32, #tpu.memory_space<vmem>>, vector<7x8x128xf32>,
    return
  }
  func.func @transform_0(%arg0: i32) -> (i32, i32) {
    %c0_i32 = arith.constant 0 : i32
    %c0_i32_0 = arith.constant 0 : i32
    %c0_i32_1 = arith.constant 0 : i32
    return %c0_i32, %c0_i32_0 : i32, i32
  }
  func.func @transform_1(%arg0: i32) -> (i32, i32) {
    %c0_i32 = arith.constant 0 : i32
    %c0_i32_0 = arith.constant 0 : i32
    %c0_i32_1 = arith.constant 0 : i32
    return %c0_i32, %c0_i32_0 : i32, i32
  }
  func.func @transform_2(%arg0: i32) -> (i32, i32) {
    %c0_i32 = arith.constant 0 : i32
    %c0_i32_0 = arith.constant 0 : i32
    %c0_i32_1 = arith.constant 0 : i32
    return %c0_i32, %c0_i32_0 : i32, i32
  }
  func.func @transform_3(%arg0: i32) -> (i32, i32, i32) {
    %c0_i32 = arith.constant 0 : i32
    %c0_i32_0 = arith.constant 0 : i32
    %c0_i32_1 = arith.constant 0 : i32
    %c0_i32_2 = arith.constant 0 : i32
    return %c0_i32, %c0_i32_0, %c0_i32_1 : i32, i32, i32
  }
}

module attributes {stable_mosaic.version = 11 : i64} {
  func.func @_lstm_layer_kernel(%arg0: i32, %arg1: memref<8x8x128xf32, #tpu.memory_space<vmem>>, %arg2: memref<128x512xbf16, #tpu.memory_space<vmem>>, %arg3: memref<128x512xbf16, #tpu.memory_space<vmem>>, %arg4: memref<1x512xf32, #tpu.memory_space<vmem>>, %arg5: memref<8x8x128xf32, #tpu.memory_space<vmem>>, %arg6: memref<8x8x512xf32, #tpu.memory_space<vmem>>) attributes {dimension_semantics = [#tpu.dimension_semantics<arbitrary>], iteration_bounds = array<i64: 1>, scalar_prefetch = 0 : i64, scratch_operands = 1 : i64, tpu.core_type = #tpu.core_type<tc>, window_params = [{pipeline_mode = #tpu.pipeline_mode<synchronous>, transform_indices = @transform_0, window_bounds = array<i64: 8, 8, 128>}, {pipeline_mode = #tpu.pipeline_mode<synchronous>, transform_indices = @transform_1, window_bounds = array<i64: 128, 512>}, {pipeline_mode = #tpu.pipeline_mode<synchronous>, transform_indices = @transform_2, window_bounds = array<i64: 128, 512>}, {pipeline_mode = #tpu.pipeline_mode<synchronous>, transform_indices = @transform_3, window_bounds = array<i64: 1, 512>}, {pipeline_mode = #tpu.pipeline_mode<synchronous>, transform_indices = @transform_4, window_bounds = array<i64: 8, 8, 128>}]} {
    %c0 = arith.constant 0 : index
    %c0_0 = arith.constant 0 : index
    %c0_1 = arith.constant 0 : index
    %0 = vector.load %arg1[%c0, %c0_0, %c0_1] : memref<8x8x128xf32, #tpu.memory_space<vmem>>, vector<8x8x128xf32>
    %1 = vector.shape_cast %0 : vector<8x8x128xf32> to vector<64x128xf32>
    %2 = arith.truncf %1 : vector<64x128xf32> to vector<64x128xbf16>
    %c0_2 = arith.constant 0 : index
    %c0_3 = arith.constant 0 : index
    %3 = vector.load %arg2[%c0_2, %c0_3] : memref<128x512xbf16, #tpu.memory_space<vmem>>, vector<128x512xbf16>
    %cst = arith.constant dense<0.000000e+00> : vector<64x512xf32>
    %4 = tpu.matmul %2, %3, %cst {dimension_numbers = #tpu.dot_dimension_numbers<[1], [0], [0], [1], [0, 0, 1, 1], [], []>} : vector<64x128xbf16>, vector<128x512xbf16>, vector<64x512xf32> -> vector<64x512xf32>
    %c0_4 = arith.constant 0 : index
    %c0_5 = arith.constant 0 : index
    %5 = vector.load %arg4[%c0_4, %c0_5] : memref<1x512xf32, #tpu.memory_space<vmem>>, vector<1x512xf32>
    %6 = vector.broadcast %5 : vector<1x512xf32> to vector<64x512xf32>
    %7 = arith.addf %4, %6 : vector<64x512xf32>
    %8 = vector.shape_cast %7 : vector<64x512xf32> to vector<8x8x512xf32>
    %c0_6 = arith.constant 0 : index
    %c0_7 = arith.constant 0 : index
    %c0_8 = arith.constant 0 : index
    %9 = vector.load %arg6[%c0_6, %c0_7, %c0_8] : memref<8x8x512xf32, #tpu.memory_space<vmem>>, vector<8x8x512xf32>
    tpu.vector_store %arg6[%c0_6, %c0_7, %c0_8], %8 {strides = array<i32>} : memref<8x8x512xf32, #tpu.memory_space<vmem>>, vector<8x8x512xf32>,
    %cst_9 = arith.constant 0.000000e+00 : f32
    %10 = vector.broadcast %cst_9 : f32 to vector<8x128xf32>
    %cst_10 = arith.constant 0.000000e+00 : f32
    %11 = vector.broadcast %cst_10 : f32 to vector<8x128xf32>
    %c0_11 = arith.constant 0 : index
    %c0_12 = arith.constant 0 : index
    %c0_13 = arith.constant 0 : index
    %12 = vector.load %arg6[%c0_11, %c0_12, %c0_13] : memref<8x8x512xf32, #tpu.memory_space<vmem>>, vector<1x8x512xf32>
    %13 = vector.shape_cast %12 : vector<1x8x512xf32> to vector<8x512xf32>
    %14 = arith.truncf %10 : vector<8x128xf32> to vector<8x128xbf16>
    %c0_14 = arith.constant 0 : index
    %c0_15 = arith.constant 0 : index
    %15 = vector.load %arg3[%c0_14, %c0_15] : memref<128x512xbf16, #tpu.memory_space<vmem>>, vector<128x512xbf16>
    %cst_16 = arith.constant dense<0.000000e+00> : vector<8x512xf32>
    %16 = tpu.matmul %14, %15, %cst_16 {dimension_numbers = #tpu.dot_dimension_numbers<[1], [0], [0], [1], [0, 0, 1, 1], [], []>} : vector<8x128xbf16>, vector<128x512xbf16>, vector<8x512xf32> -> vector<8x512xf32>
    %17 = arith.addf %13, %16 : vector<8x512xf32>
    %18 = vector.extract_strided_slice %17 {offsets = [0, 0], sizes = [8, 128], strides = [1, 1]} : vector<8x512xf32> to vector<8x128xf32>
    %19 = arith.negf %18 : vector<8x128xf32>
    %20 = math.exp %19 : vector<8x128xf32>
    %cst_17 = arith.constant 1.000000e+00 : f32
    %21 = vector.broadcast %cst_17 : f32 to vector<8x128xf32>
    %22 = arith.addf %21, %20 : vector<8x128xf32>
    %23 = arith.divf %21, %22 : vector<8x128xf32>
    %24 = vector.extract_strided_slice %17 {offsets = [0, 128], sizes = [8, 128], strides = [1, 1]} : vector<8x512xf32> to vector<8x128xf32>
    %25 = arith.negf %24 : vector<8x128xf32>
    %26 = math.exp %25 : vector<8x128xf32>
    %cst_18 = arith.constant 1.000000e+00 : f32
    %27 = vector.broadcast %cst_18 : f32 to vector<8x128xf32>
    %28 = arith.addf %27, %26 : vector<8x128xf32>
    %29 = arith.divf %27, %28 : vector<8x128xf32>
    %30 = vector.extract_strided_slice %17 {offsets = [0, 256], sizes = [8, 128], strides = [1, 1]} : vector<8x512xf32> to vector<8x128xf32>
    %31 = math.tanh %30 : vector<8x128xf32>
    %32 = vector.extract_strided_slice %17 {offsets = [0, 384], sizes = [8, 128], strides = [1, 1]} : vector<8x512xf32> to vector<8x128xf32>
    %33 = arith.negf %32 : vector<8x128xf32>
    %34 = math.exp %33 : vector<8x128xf32>
    %cst_19 = arith.constant 1.000000e+00 : f32
    %35 = vector.broadcast %cst_19 : f32 to vector<8x128xf32>
    %36 = arith.addf %35, %34 : vector<8x128xf32>
    %37 = arith.divf %35, %36 : vector<8x128xf32>
    %38 = arith.mulf %29, %11 : vector<8x128xf32>
    %39 = arith.mulf %23, %31 : vector<8x128xf32>
    %40 = arith.addf %38, %39 : vector<8x128xf32>
    %41 = math.tanh %40 : vector<8x128xf32>
    %42 = arith.mulf %37, %41 : vector<8x128xf32>
    %c0_20 = arith.constant 0 : index
    %c0_21 = arith.constant 0 : index
    %c0_22 = arith.constant 0 : index
    %43 = vector.load %arg5[%c0_20, %c0_21, %c0_22] : memref<8x8x128xf32, #tpu.memory_space<vmem>>, vector<1x8x128xf32>
    %44 = vector.shape_cast %43 : vector<1x8x128xf32> to vector<8x128xf32>
    %45 = vector.shape_cast %42 : vector<8x128xf32> to vector<1x8x128xf32>
    tpu.vector_store %arg5[%c0_20, %c0_21, %c0_22], %45 {strides = array<i32>} : memref<8x8x128xf32, #tpu.memory_space<vmem>>, vector<1x8x128xf32>,
    %c1 = arith.constant 1 : index
    %c0_23 = arith.constant 0 : index
    %c0_24 = arith.constant 0 : index
    %46 = vector.load %arg6[%c1, %c0_23, %c0_24] : memref<8x8x512xf32, #tpu.memory_space<vmem>>, vector<1x8x512xf32>
    %47 = vector.shape_cast %46 : vector<1x8x512xf32> to vector<8x512xf32>
    %48 = arith.truncf %42 : vector<8x128xf32> to vector<8x128xbf16>
    %c0_25 = arith.constant 0 : index
    %c0_26 = arith.constant 0 : index
    %49 = vector.load %arg3[%c0_25, %c0_26] : memref<128x512xbf16, #tpu.memory_space<vmem>>, vector<128x512xbf16>
    %cst_27 = arith.constant dense<0.000000e+00> : vector<8x512xf32>
    %50 = tpu.matmul %48, %49, %cst_27 {dimension_numbers = #tpu.dot_dimension_numbers<[1], [0], [0], [1], [0, 0, 1, 1], [], []>} : vector<8x128xbf16>, vector<128x512xbf16>, vector<8x512xf32> -> vector<8x512xf32>
    %51 = arith.addf %47, %50 : vector<8x512xf32>
    %52 = vector.extract_strided_slice %51 {offsets = [0, 0], sizes = [8, 128], strides = [1, 1]} : vector<8x512xf32> to vector<8x128xf32>
    %53 = arith.negf %52 : vector<8x128xf32>
    %54 = math.exp %53 : vector<8x128xf32>
    %cst_28 = arith.constant 1.000000e+00 : f32
    %55 = vector.broadcast %cst_28 : f32 to vector<8x128xf32>
    %56 = arith.addf %55, %54 : vector<8x128xf32>
    %57 = arith.divf %55, %56 : vector<8x128xf32>
    %58 = vector.extract_strided_slice %51 {offsets = [0, 128], sizes = [8, 128], strides = [1, 1]} : vector<8x512xf32> to vector<8x128xf32>
    %59 = arith.negf %58 : vector<8x128xf32>
    %60 = math.exp %59 : vector<8x128xf32>
    %cst_29 = arith.constant 1.000000e+00 : f32
    %61 = vector.broadcast %cst_29 : f32 to vector<8x128xf32>
    %62 = arith.addf %61, %60 : vector<8x128xf32>
    %63 = arith.divf %61, %62 : vector<8x128xf32>
    %64 = vector.extract_strided_slice %51 {offsets = [0, 256], sizes = [8, 128], strides = [1, 1]} : vector<8x512xf32> to vector<8x128xf32>
    %65 = math.tanh %64 : vector<8x128xf32>
    %66 = vector.extract_strided_slice %51 {offsets = [0, 384], sizes = [8, 128], strides = [1, 1]} : vector<8x512xf32> to vector<8x128xf32>
    %67 = arith.negf %66 : vector<8x128xf32>
    %68 = math.exp %67 : vector<8x128xf32>
    %cst_30 = arith.constant 1.000000e+00 : f32
    %69 = vector.broadcast %cst_30 : f32 to vector<8x128xf32>
    %70 = arith.addf %69, %68 : vector<8x128xf32>
    %71 = arith.divf %69, %70 : vector<8x128xf32>
    %72 = arith.mulf %63, %40 : vector<8x128xf32>
    %73 = arith.mulf %57, %65 : vector<8x128xf32>
    %74 = arith.addf %72, %73 : vector<8x128xf32>
    %75 = math.tanh %74 : vector<8x128xf32>
    %76 = arith.mulf %71, %75 : vector<8x128xf32>
    %c1_31 = arith.constant 1 : index
    %c0_32 = arith.constant 0 : index
    %c0_33 = arith.constant 0 : index
    %77 = vector.load %arg5[%c1_31, %c0_32, %c0_33] : memref<8x8x128xf32, #tpu.memory_space<vmem>>, vector<1x8x128xf32>
    %78 = vector.shape_cast %77 : vector<1x8x128xf32> to vector<8x128xf32>
    %79 = vector.shape_cast %76 : vector<8x128xf32> to vector<1x8x128xf32>
    tpu.vector_store %arg5[%c1_31, %c0_32, %c0_33], %79 {strides = array<i32>} : memref<8x8x128xf32, #tpu.memory_space<vmem>>, vector<1x8x128xf32>,
    %c2 = arith.constant 2 : index
    %c0_34 = arith.constant 0 : index
    %c0_35 = arith.constant 0 : index
    %80 = vector.load %arg6[%c2, %c0_34, %c0_35] : memref<8x8x512xf32, #tpu.memory_space<vmem>>, vector<1x8x512xf32>
    %81 = vector.shape_cast %80 : vector<1x8x512xf32> to vector<8x512xf32>
    %82 = arith.truncf %76 : vector<8x128xf32> to vector<8x128xbf16>
    %c0_36 = arith.constant 0 : index
    %c0_37 = arith.constant 0 : index
    %83 = vector.load %arg3[%c0_36, %c0_37] : memref<128x512xbf16, #tpu.memory_space<vmem>>, vector<128x512xbf16>
    %cst_38 = arith.constant dense<0.000000e+00> : vector<8x512xf32>
    %84 = tpu.matmul %82, %83, %cst_38 {dimension_numbers = #tpu.dot_dimension_numbers<[1], [0], [0], [1], [0, 0, 1, 1], [], []>} : vector<8x128xbf16>, vector<128x512xbf16>, vector<8x512xf32> -> vector<8x512xf32>
    %85 = arith.addf %81, %84 : vector<8x512xf32>
    %86 = vector.extract_strided_slice %85 {offsets = [0, 0], sizes = [8, 128], strides = [1, 1]} : vector<8x512xf32> to vector<8x128xf32>
    %87 = arith.negf %86 : vector<8x128xf32>
    %88 = math.exp %87 : vector<8x128xf32>
    %cst_39 = arith.constant 1.000000e+00 : f32
    %89 = vector.broadcast %cst_39 : f32 to vector<8x128xf32>
    %90 = arith.addf %89, %88 : vector<8x128xf32>
    %91 = arith.divf %89, %90 : vector<8x128xf32>
    %92 = vector.extract_strided_slice %85 {offsets = [0, 128], sizes = [8, 128], strides = [1, 1]} : vector<8x512xf32> to vector<8x128xf32>
    %93 = arith.negf %92 : vector<8x128xf32>
    %94 = math.exp %93 : vector<8x128xf32>
    %cst_40 = arith.constant 1.000000e+00 : f32
    %95 = vector.broadcast %cst_40 : f32 to vector<8x128xf32>
    %96 = arith.addf %95, %94 : vector<8x128xf32>
    %97 = arith.divf %95, %96 : vector<8x128xf32>
    %98 = vector.extract_strided_slice %85 {offsets = [0, 256], sizes = [8, 128], strides = [1, 1]} : vector<8x512xf32> to vector<8x128xf32>
    %99 = math.tanh %98 : vector<8x128xf32>
    %100 = vector.extract_strided_slice %85 {offsets = [0, 384], sizes = [8, 128], strides = [1, 1]} : vector<8x512xf32> to vector<8x128xf32>
    %101 = arith.negf %100 : vector<8x128xf32>
    %102 = math.exp %101 : vector<8x128xf32>
    %cst_41 = arith.constant 1.000000e+00 : f32
    %103 = vector.broadcast %cst_41 : f32 to vector<8x128xf32>
    %104 = arith.addf %103, %102 : vector<8x128xf32>
    %105 = arith.divf %103, %104 : vector<8x128xf32>
    %106 = arith.mulf %97, %74 : vector<8x128xf32>
    %107 = arith.mulf %91, %99 : vector<8x128xf32>
    %108 = arith.addf %106, %107 : vector<8x128xf32>
    %109 = math.tanh %108 : vector<8x128xf32>
    %110 = arith.mulf %105, %109 : vector<8x128xf32>
    %c2_42 = arith.constant 2 : index
    %c0_43 = arith.constant 0 : index
    %c0_44 = arith.constant 0 : index
    %111 = vector.load %arg5[%c2_42, %c0_43, %c0_44] : memref<8x8x128xf32, #tpu.memory_space<vmem>>, vector<1x8x128xf32>
    %112 = vector.shape_cast %111 : vector<1x8x128xf32> to vector<8x128xf32>
    %113 = vector.shape_cast %110 : vector<8x128xf32> to vector<1x8x128xf32>
    tpu.vector_store %arg5[%c2_42, %c0_43, %c0_44], %113 {strides = array<i32>} : memref<8x8x128xf32, #tpu.memory_space<vmem>>, vector<1x8x128xf32>,
    %c3 = arith.constant 3 : index
    %c0_45 = arith.constant 0 : index
    %c0_46 = arith.constant 0 : index
    %114 = vector.load %arg6[%c3, %c0_45, %c0_46] : memref<8x8x512xf32, #tpu.memory_space<vmem>>, vector<1x8x512xf32>
    %115 = vector.shape_cast %114 : vector<1x8x512xf32> to vector<8x512xf32>
    %116 = arith.truncf %110 : vector<8x128xf32> to vector<8x128xbf16>
    %c0_47 = arith.constant 0 : index
    %c0_48 = arith.constant 0 : index
    %117 = vector.load %arg3[%c0_47, %c0_48] : memref<128x512xbf16, #tpu.memory_space<vmem>>, vector<128x512xbf16>
    %cst_49 = arith.constant dense<0.000000e+00> : vector<8x512xf32>
    %118 = tpu.matmul %116, %117, %cst_49 {dimension_numbers = #tpu.dot_dimension_numbers<[1], [0], [0], [1], [0, 0, 1, 1], [], []>} : vector<8x128xbf16>, vector<128x512xbf16>, vector<8x512xf32> -> vector<8x512xf32>
    %119 = arith.addf %115, %118 : vector<8x512xf32>
    %120 = vector.extract_strided_slice %119 {offsets = [0, 0], sizes = [8, 128], strides = [1, 1]} : vector<8x512xf32> to vector<8x128xf32>
    %121 = arith.negf %120 : vector<8x128xf32>
    %122 = math.exp %121 : vector<8x128xf32>
    %cst_50 = arith.constant 1.000000e+00 : f32
    %123 = vector.broadcast %cst_50 : f32 to vector<8x128xf32>
    %124 = arith.addf %123, %122 : vector<8x128xf32>
    %125 = arith.divf %123, %124 : vector<8x128xf32>
    %126 = vector.extract_strided_slice %119 {offsets = [0, 128], sizes = [8, 128], strides = [1, 1]} : vector<8x512xf32> to vector<8x128xf32>
    %127 = arith.negf %126 : vector<8x128xf32>
    %128 = math.exp %127 : vector<8x128xf32>
    %cst_51 = arith.constant 1.000000e+00 : f32
    %129 = vector.broadcast %cst_51 : f32 to vector<8x128xf32>
    %130 = arith.addf %129, %128 : vector<8x128xf32>
    %131 = arith.divf %129, %130 : vector<8x128xf32>
    %132 = vector.extract_strided_slice %119 {offsets = [0, 256], sizes = [8, 128], strides = [1, 1]} : vector<8x512xf32> to vector<8x128xf32>
    %133 = math.tanh %132 : vector<8x128xf32>
    %134 = vector.extract_strided_slice %119 {offsets = [0, 384], sizes = [8, 128], strides = [1, 1]} : vector<8x512xf32> to vector<8x128xf32>
    %135 = arith.negf %134 : vector<8x128xf32>
    %136 = math.exp %135 : vector<8x128xf32>
    %cst_52 = arith.constant 1.000000e+00 : f32
    %137 = vector.broadcast %cst_52 : f32 to vector<8x128xf32>
    %138 = arith.addf %137, %136 : vector<8x128xf32>
    %139 = arith.divf %137, %138 : vector<8x128xf32>
    %140 = arith.mulf %131, %108 : vector<8x128xf32>
    %141 = arith.mulf %125, %133 : vector<8x128xf32>
    %142 = arith.addf %140, %141 : vector<8x128xf32>
    %143 = math.tanh %142 : vector<8x128xf32>
    %144 = arith.mulf %139, %143 : vector<8x128xf32>
    %c3_53 = arith.constant 3 : index
    %c0_54 = arith.constant 0 : index
    %c0_55 = arith.constant 0 : index
    %145 = vector.load %arg5[%c3_53, %c0_54, %c0_55] : memref<8x8x128xf32, #tpu.memory_space<vmem>>, vector<1x8x128xf32>
    %146 = vector.shape_cast %145 : vector<1x8x128xf32> to vector<8x128xf32>
    %147 = vector.shape_cast %144 : vector<8x128xf32> to vector<1x8x128xf32>
    tpu.vector_store %arg5[%c3_53, %c0_54, %c0_55], %147 {strides = array<i32>} : memref<8x8x128xf32, #tpu.memory_space<vmem>>, vector<1x8x128xf32>,
    %c4 = arith.constant 4 : index
    %c0_56 = arith.constant 0 : index
    %c0_57 = arith.constant 0 : index
    %148 = vector.load %arg6[%c4, %c0_56, %c0_57] : memref<8x8x512xf32, #tpu.memory_space<vmem>>, vector<1x8x512xf32>
    %149 = vector.shape_cast %148 : vector<1x8x512xf32> to vector<8x512xf32>
    %150 = arith.truncf %144 : vector<8x128xf32> to vector<8x128xbf16>
    %c0_58 = arith.constant 0 : index
    %c0_59 = arith.constant 0 : index
    %151 = vector.load %arg3[%c0_58, %c0_59] : memref<128x512xbf16, #tpu.memory_space<vmem>>, vector<128x512xbf16>
    %cst_60 = arith.constant dense<0.000000e+00> : vector<8x512xf32>
    %152 = tpu.matmul %150, %151, %cst_60 {dimension_numbers = #tpu.dot_dimension_numbers<[1], [0], [0], [1], [0, 0, 1, 1], [], []>} : vector<8x128xbf16>, vector<128x512xbf16>, vector<8x512xf32> -> vector<8x512xf32>
    %153 = arith.addf %149, %152 : vector<8x512xf32>
    %154 = vector.extract_strided_slice %153 {offsets = [0, 0], sizes = [8, 128], strides = [1, 1]} : vector<8x512xf32> to vector<8x128xf32>
    %155 = arith.negf %154 : vector<8x128xf32>
    %156 = math.exp %155 : vector<8x128xf32>
    %cst_61 = arith.constant 1.000000e+00 : f32
    %157 = vector.broadcast %cst_61 : f32 to vector<8x128xf32>
    %158 = arith.addf %157, %156 : vector<8x128xf32>
    %159 = arith.divf %157, %158 : vector<8x128xf32>
    %160 = vector.extract_strided_slice %153 {offsets = [0, 128], sizes = [8, 128], strides = [1, 1]} : vector<8x512xf32> to vector<8x128xf32>
    %161 = arith.negf %160 : vector<8x128xf32>
    %162 = math.exp %161 : vector<8x128xf32>
    %cst_62 = arith.constant 1.000000e+00 : f32
    %163 = vector.broadcast %cst_62 : f32 to vector<8x128xf32>
    %164 = arith.addf %163, %162 : vector<8x128xf32>
    %165 = arith.divf %163, %164 : vector<8x128xf32>
    %166 = vector.extract_strided_slice %153 {offsets = [0, 256], sizes = [8, 128], strides = [1, 1]} : vector<8x512xf32> to vector<8x128xf32>
    %167 = math.tanh %166 : vector<8x128xf32>
    %168 = vector.extract_strided_slice %153 {offsets = [0, 384], sizes = [8, 128], strides = [1, 1]} : vector<8x512xf32> to vector<8x128xf32>
    %169 = arith.negf %168 : vector<8x128xf32>
    %170 = math.exp %169 : vector<8x128xf32>
    %cst_63 = arith.constant 1.000000e+00 : f32
    %171 = vector.broadcast %cst_63 : f32 to vector<8x128xf32>
    %172 = arith.addf %171, %170 : vector<8x128xf32>
    %173 = arith.divf %171, %172 : vector<8x128xf32>
    %174 = arith.mulf %165, %142 : vector<8x128xf32>
    %175 = arith.mulf %159, %167 : vector<8x128xf32>
    %176 = arith.addf %174, %175 : vector<8x128xf32>
    %177 = math.tanh %176 : vector<8x128xf32>
    %178 = arith.mulf %173, %177 : vector<8x128xf32>
    %c4_64 = arith.constant 4 : index
    %c0_65 = arith.constant 0 : index
    %c0_66 = arith.constant 0 : index
    %179 = vector.load %arg5[%c4_64, %c0_65, %c0_66] : memref<8x8x128xf32, #tpu.memory_space<vmem>>, vector<1x8x128xf32>
    %180 = vector.shape_cast %179 : vector<1x8x128xf32> to vector<8x128xf32>
    %181 = vector.shape_cast %178 : vector<8x128xf32> to vector<1x8x128xf32>
    tpu.vector_store %arg5[%c4_64, %c0_65, %c0_66], %181 {strides = array<i32>} : memref<8x8x128xf32, #tpu.memory_space<vmem>>, vector<1x8x128xf32>,
    %c5 = arith.constant 5 : index
    %c0_67 = arith.constant 0 : index
    %c0_68 = arith.constant 0 : index
    %182 = vector.load %arg6[%c5, %c0_67, %c0_68] : memref<8x8x512xf32, #tpu.memory_space<vmem>>, vector<1x8x512xf32>
    %183 = vector.shape_cast %182 : vector<1x8x512xf32> to vector<8x512xf32>
    %184 = arith.truncf %178 : vector<8x128xf32> to vector<8x128xbf16>
    %c0_69 = arith.constant 0 : index
    %c0_70 = arith.constant 0 : index
    %185 = vector.load %arg3[%c0_69, %c0_70] : memref<128x512xbf16, #tpu.memory_space<vmem>>, vector<128x512xbf16>
    %cst_71 = arith.constant dense<0.000000e+00> : vector<8x512xf32>
    %186 = tpu.matmul %184, %185, %cst_71 {dimension_numbers = #tpu.dot_dimension_numbers<[1], [0], [0], [1], [0, 0, 1, 1], [], []>} : vector<8x128xbf16>, vector<128x512xbf16>, vector<8x512xf32> -> vector<8x512xf32>
    %187 = arith.addf %183, %186 : vector<8x512xf32>
    %188 = vector.extract_strided_slice %187 {offsets = [0, 0], sizes = [8, 128], strides = [1, 1]} : vector<8x512xf32> to vector<8x128xf32>
    %189 = arith.negf %188 : vector<8x128xf32>
    %190 = math.exp %189 : vector<8x128xf32>
    %cst_72 = arith.constant 1.000000e+00 : f32
    %191 = vector.broadcast %cst_72 : f32 to vector<8x128xf32>
    %192 = arith.addf %191, %190 : vector<8x128xf32>
    %193 = arith.divf %191, %192 : vector<8x128xf32>
    %194 = vector.extract_strided_slice %187 {offsets = [0, 128], sizes = [8, 128], strides = [1, 1]} : vector<8x512xf32> to vector<8x128xf32>
    %195 = arith.negf %194 : vector<8x128xf32>
    %196 = math.exp %195 : vector<8x128xf32>
    %cst_73 = arith.constant 1.000000e+00 : f32
    %197 = vector.broadcast %cst_73 : f32 to vector<8x128xf32>
    %198 = arith.addf %197, %196 : vector<8x128xf32>
    %199 = arith.divf %197, %198 : vector<8x128xf32>
    %200 = vector.extract_strided_slice %187 {offsets = [0, 256], sizes = [8, 128], strides = [1, 1]} : vector<8x512xf32> to vector<8x128xf32>
    %201 = math.tanh %200 : vector<8x128xf32>
    %202 = vector.extract_strided_slice %187 {offsets = [0, 384], sizes = [8, 128], strides = [1, 1]} : vector<8x512xf32> to vector<8x128xf32>
    %203 = arith.negf %202 : vector<8x128xf32>
    %204 = math.exp %203 : vector<8x128xf32>
    %cst_74 = arith.constant 1.000000e+00 : f32
    %205 = vector.broadcast %cst_74 : f32 to vector<8x128xf32>
    %206 = arith.addf %205, %204 : vector<8x128xf32>
    %207 = arith.divf %205, %206 : vector<8x128xf32>
    %208 = arith.mulf %199, %176 : vector<8x128xf32>
    %209 = arith.mulf %193, %201 : vector<8x128xf32>
    %210 = arith.addf %208, %209 : vector<8x128xf32>
    %211 = math.tanh %210 : vector<8x128xf32>
    %212 = arith.mulf %207, %211 : vector<8x128xf32>
    %c5_75 = arith.constant 5 : index
    %c0_76 = arith.constant 0 : index
    %c0_77 = arith.constant 0 : index
    %213 = vector.load %arg5[%c5_75, %c0_76, %c0_77] : memref<8x8x128xf32, #tpu.memory_space<vmem>>, vector<1x8x128xf32>
    %214 = vector.shape_cast %213 : vector<1x8x128xf32> to vector<8x128xf32>
    %215 = vector.shape_cast %212 : vector<8x128xf32> to vector<1x8x128xf32>
    tpu.vector_store %arg5[%c5_75, %c0_76, %c0_77], %215 {strides = array<i32>} : memref<8x8x128xf32, #tpu.memory_space<vmem>>, vector<1x8x128xf32>,
    %c6 = arith.constant 6 : index
    %c0_78 = arith.constant 0 : index
    %c0_79 = arith.constant 0 : index
    %216 = vector.load %arg6[%c6, %c0_78, %c0_79] : memref<8x8x512xf32, #tpu.memory_space<vmem>>, vector<1x8x512xf32>
    %217 = vector.shape_cast %216 : vector<1x8x512xf32> to vector<8x512xf32>
    %218 = arith.truncf %212 : vector<8x128xf32> to vector<8x128xbf16>
    %c0_80 = arith.constant 0 : index
    %c0_81 = arith.constant 0 : index
    %219 = vector.load %arg3[%c0_80, %c0_81] : memref<128x512xbf16, #tpu.memory_space<vmem>>, vector<128x512xbf16>
    %cst_82 = arith.constant dense<0.000000e+00> : vector<8x512xf32>
    %220 = tpu.matmul %218, %219, %cst_82 {dimension_numbers = #tpu.dot_dimension_numbers<[1], [0], [0], [1], [0, 0, 1, 1], [], []>} : vector<8x128xbf16>, vector<128x512xbf16>, vector<8x512xf32> -> vector<8x512xf32>
    %221 = arith.addf %217, %220 : vector<8x512xf32>
    %222 = vector.extract_strided_slice %221 {offsets = [0, 0], sizes = [8, 128], strides = [1, 1]} : vector<8x512xf32> to vector<8x128xf32>
    %223 = arith.negf %222 : vector<8x128xf32>
    %224 = math.exp %223 : vector<8x128xf32>
    %cst_83 = arith.constant 1.000000e+00 : f32
    %225 = vector.broadcast %cst_83 : f32 to vector<8x128xf32>
    %226 = arith.addf %225, %224 : vector<8x128xf32>
    %227 = arith.divf %225, %226 : vector<8x128xf32>
    %228 = vector.extract_strided_slice %221 {offsets = [0, 128], sizes = [8, 128], strides = [1, 1]} : vector<8x512xf32> to vector<8x128xf32>
    %229 = arith.negf %228 : vector<8x128xf32>
    %230 = math.exp %229 : vector<8x128xf32>
    %cst_84 = arith.constant 1.000000e+00 : f32
    %231 = vector.broadcast %cst_84 : f32 to vector<8x128xf32>
    %232 = arith.addf %231, %230 : vector<8x128xf32>
    %233 = arith.divf %231, %232 : vector<8x128xf32>
    %234 = vector.extract_strided_slice %221 {offsets = [0, 256], sizes = [8, 128], strides = [1, 1]} : vector<8x512xf32> to vector<8x128xf32>
    %235 = math.tanh %234 : vector<8x128xf32>
    %236 = vector.extract_strided_slice %221 {offsets = [0, 384], sizes = [8, 128], strides = [1, 1]} : vector<8x512xf32> to vector<8x128xf32>
    %237 = arith.negf %236 : vector<8x128xf32>
    %238 = math.exp %237 : vector<8x128xf32>
    %cst_85 = arith.constant 1.000000e+00 : f32
    %239 = vector.broadcast %cst_85 : f32 to vector<8x128xf32>
    %240 = arith.addf %239, %238 : vector<8x128xf32>
    %241 = arith.divf %239, %240 : vector<8x128xf32>
    %242 = arith.mulf %233, %210 : vector<8x128xf32>
    %243 = arith.mulf %227, %235 : vector<8x128xf32>
    %244 = arith.addf %242, %243 : vector<8x128xf32>
    %245 = math.tanh %244 : vector<8x128xf32>
    %246 = arith.mulf %241, %245 : vector<8x128xf32>
    %c6_86 = arith.constant 6 : index
    %c0_87 = arith.constant 0 : index
    %c0_88 = arith.constant 0 : index
    %247 = vector.load %arg5[%c6_86, %c0_87, %c0_88] : memref<8x8x128xf32, #tpu.memory_space<vmem>>, vector<1x8x128xf32>
    %248 = vector.shape_cast %247 : vector<1x8x128xf32> to vector<8x128xf32>
    %249 = vector.shape_cast %246 : vector<8x128xf32> to vector<1x8x128xf32>
    tpu.vector_store %arg5[%c6_86, %c0_87, %c0_88], %249 {strides = array<i32>} : memref<8x8x128xf32, #tpu.memory_space<vmem>>, vector<1x8x128xf32>,
    %c7 = arith.constant 7 : index
    %c0_89 = arith.constant 0 : index
    %c0_90 = arith.constant 0 : index
    %250 = vector.load %arg6[%c7, %c0_89, %c0_90] : memref<8x8x512xf32, #tpu.memory_space<vmem>>, vector<1x8x512xf32>
    %251 = vector.shape_cast %250 : vector<1x8x512xf32> to vector<8x512xf32>
    %252 = arith.truncf %246 : vector<8x128xf32> to vector<8x128xbf16>
    %c0_91 = arith.constant 0 : index
    %c0_92 = arith.constant 0 : index
    %253 = vector.load %arg3[%c0_91, %c0_92] : memref<128x512xbf16, #tpu.memory_space<vmem>>, vector<128x512xbf16>
    %cst_93 = arith.constant dense<0.000000e+00> : vector<8x512xf32>
    %254 = tpu.matmul %252, %253, %cst_93 {dimension_numbers = #tpu.dot_dimension_numbers<[1], [0], [0], [1], [0, 0, 1, 1], [], []>} : vector<8x128xbf16>, vector<128x512xbf16>, vector<8x512xf32> -> vector<8x512xf32>
    %255 = arith.addf %251, %254 : vector<8x512xf32>
    %256 = vector.extract_strided_slice %255 {offsets = [0, 0], sizes = [8, 128], strides = [1, 1]} : vector<8x512xf32> to vector<8x128xf32>
    %257 = arith.negf %256 : vector<8x128xf32>
    %258 = math.exp %257 : vector<8x128xf32>
    %cst_94 = arith.constant 1.000000e+00 : f32
    %259 = vector.broadcast %cst_94 : f32 to vector<8x128xf32>
    %260 = arith.addf %259, %258 : vector<8x128xf32>
    %261 = arith.divf %259, %260 : vector<8x128xf32>
    %262 = vector.extract_strided_slice %255 {offsets = [0, 128], sizes = [8, 128], strides = [1, 1]} : vector<8x512xf32> to vector<8x128xf32>
    %263 = arith.negf %262 : vector<8x128xf32>
    %264 = math.exp %263 : vector<8x128xf32>
    %cst_95 = arith.constant 1.000000e+00 : f32
    %265 = vector.broadcast %cst_95 : f32 to vector<8x128xf32>
    %266 = arith.addf %265, %264 : vector<8x128xf32>
    %267 = arith.divf %265, %266 : vector<8x128xf32>
    %268 = vector.extract_strided_slice %255 {offsets = [0, 256], sizes = [8, 128], strides = [1, 1]} : vector<8x512xf32> to vector<8x128xf32>
    %269 = math.tanh %268 : vector<8x128xf32>
    %270 = vector.extract_strided_slice %255 {offsets = [0, 384], sizes = [8, 128], strides = [1, 1]} : vector<8x512xf32> to vector<8x128xf32>
    %271 = arith.negf %270 : vector<8x128xf32>
    %272 = math.exp %271 : vector<8x128xf32>
    %cst_96 = arith.constant 1.000000e+00 : f32
    %273 = vector.broadcast %cst_96 : f32 to vector<8x128xf32>
    %274 = arith.addf %273, %272 : vector<8x128xf32>
    %275 = arith.divf %273, %274 : vector<8x128xf32>
    %276 = arith.mulf %267, %244 : vector<8x128xf32>
    %277 = arith.mulf %261, %269 : vector<8x128xf32>
    %278 = arith.addf %276, %277 : vector<8x128xf32>
    %279 = math.tanh %278 : vector<8x128xf32>
    %280 = arith.mulf %275, %279 : vector<8x128xf32>
    %c7_97 = arith.constant 7 : index
    %c0_98 = arith.constant 0 : index
    %c0_99 = arith.constant 0 : index
    %281 = vector.load %arg5[%c7_97, %c0_98, %c0_99] : memref<8x8x128xf32, #tpu.memory_space<vmem>>, vector<1x8x128xf32>
    %282 = vector.shape_cast %281 : vector<1x8x128xf32> to vector<8x128xf32>
    %283 = vector.shape_cast %280 : vector<8x128xf32> to vector<1x8x128xf32>
    tpu.vector_store %arg5[%c7_97, %c0_98, %c0_99], %283 {strides = array<i32>} : memref<8x8x128xf32, #tpu.memory_space<vmem>>, vector<1x8x128xf32>,
    return
  }
  func.func @transform_0(%arg0: i32) -> (i32, i32, i32) {
    %c0_i32 = arith.constant 0 : i32
    %c0_i32_0 = arith.constant 0 : i32
    %c0_i32_1 = arith.constant 0 : i32
    %c0_i32_2 = arith.constant 0 : i32
    return %c0_i32, %c0_i32_0, %c0_i32_1 : i32, i32, i32
  }
  func.func @transform_1(%arg0: i32) -> (i32, i32) {
    %c0_i32 = arith.constant 0 : i32
    %c0_i32_0 = arith.constant 0 : i32
    %c0_i32_1 = arith.constant 0 : i32
    return %c0_i32, %c0_i32_0 : i32, i32
  }
  func.func @transform_2(%arg0: i32) -> (i32, i32) {
    %c0_i32 = arith.constant 0 : i32
    %c0_i32_0 = arith.constant 0 : i32
    %c0_i32_1 = arith.constant 0 : i32
    return %c0_i32, %c0_i32_0 : i32, i32
  }
  func.func @transform_3(%arg0: i32) -> (i32, i32) {
    %c0_i32 = arith.constant 0 : i32
    %c0_i32_0 = arith.constant 0 : i32
    %c0_i32_1 = arith.constant 0 : i32
    return %c0_i32, %c0_i32_0 : i32, i32
  }
  func.func @transform_4(%arg0: i32) -> (i32, i32, i32) {
    %c0_i32 = arith.constant 0 : i32
    %c0_i32_0 = arith.constant 0 : i32
    %c0_i32_1 = arith.constant 0 : i32
    %c0_i32_2 = arith.constant 0 : i32
    return %c0_i32, %c0_i32_0, %c0_i32_1 : i32, i32, i32
  }
}

module attributes {stable_mosaic.version = 11 : i64} {
  func.func @_lstm_layer_linear_kernel(%arg0: i32, %arg1: memref<8x8x128xf32, #tpu.memory_space<vmem>>, %arg2: memref<128x512xbf16, #tpu.memory_space<vmem>>, %arg3: memref<128x512xbf16, #tpu.memory_space<vmem>>, %arg4: memref<1x512xf32, #tpu.memory_space<vmem>>, %arg5: memref<128x256xbf16, #tpu.memory_space<vmem>>, %arg6: memref<1x256xf32, #tpu.memory_space<vmem>>, %arg7: memref<8x8x256xf32, #tpu.memory_space<vmem>>, %arg8: memref<8x8x512xf32, #tpu.memory_space<vmem>>, %arg9: memref<8x8x128xf32, #tpu.memory_space<vmem>>) attributes {dimension_semantics = [#tpu.dimension_semantics<arbitrary>], iteration_bounds = array<i64: 1>, scalar_prefetch = 0 : i64, scratch_operands = 2 : i64, tpu.core_type = #tpu.core_type<tc>, window_params = [{pipeline_mode = #tpu.pipeline_mode<synchronous>, transform_indices = @transform_0, window_bounds = array<i64: 8, 8, 128>}, {pipeline_mode = #tpu.pipeline_mode<synchronous>, transform_indices = @transform_1, window_bounds = array<i64: 128, 512>}, {pipeline_mode = #tpu.pipeline_mode<synchronous>, transform_indices = @transform_2, window_bounds = array<i64: 128, 512>}, {pipeline_mode = #tpu.pipeline_mode<synchronous>, transform_indices = @transform_3, window_bounds = array<i64: 1, 512>}, {pipeline_mode = #tpu.pipeline_mode<synchronous>, transform_indices = @transform_4, window_bounds = array<i64: 128, 256>}, {pipeline_mode = #tpu.pipeline_mode<synchronous>, transform_indices = @transform_5, window_bounds = array<i64: 1, 256>}, {pipeline_mode = #tpu.pipeline_mode<synchronous>, transform_indices = @transform_6, window_bounds = array<i64: 8, 8, 256>}]} {
    %c0 = arith.constant 0 : index
    %c0_0 = arith.constant 0 : index
    %c0_1 = arith.constant 0 : index
    %0 = vector.load %arg1[%c0, %c0_0, %c0_1] : memref<8x8x128xf32, #tpu.memory_space<vmem>>, vector<8x8x128xf32>
    %1 = vector.shape_cast %0 : vector<8x8x128xf32> to vector<64x128xf32>
    %2 = arith.truncf %1 : vector<64x128xf32> to vector<64x128xbf16>
    %c0_2 = arith.constant 0 : index
    %c0_3 = arith.constant 0 : index
    %3 = vector.load %arg2[%c0_2, %c0_3] : memref<128x512xbf16, #tpu.memory_space<vmem>>, vector<128x512xbf16>
    %cst = arith.constant dense<0.000000e+00> : vector<64x512xf32>
    %4 = tpu.matmul %2, %3, %cst {dimension_numbers = #tpu.dot_dimension_numbers<[1], [0], [0], [1], [0, 0, 1, 1], [], []>} : vector<64x128xbf16>, vector<128x512xbf16>, vector<64x512xf32> -> vector<64x512xf32>
    %c0_4 = arith.constant 0 : index
    %c0_5 = arith.constant 0 : index
    %5 = vector.load %arg4[%c0_4, %c0_5] : memref<1x512xf32, #tpu.memory_space<vmem>>, vector<1x512xf32>
    %6 = vector.broadcast %5 : vector<1x512xf32> to vector<64x512xf32>
    %7 = arith.addf %4, %6 : vector<64x512xf32>
    %8 = vector.shape_cast %7 : vector<64x512xf32> to vector<8x8x512xf32>
    %c0_6 = arith.constant 0 : index
    %c0_7 = arith.constant 0 : index
    %c0_8 = arith.constant 0 : index
    %9 = vector.load %arg8[%c0_6, %c0_7, %c0_8] : memref<8x8x512xf32, #tpu.memory_space<vmem>>, vector<8x8x512xf32>
    tpu.vector_store %arg8[%c0_6, %c0_7, %c0_8], %8 {strides = array<i32>} : memref<8x8x512xf32, #tpu.memory_space<vmem>>, vector<8x8x512xf32>,
    %cst_9 = arith.constant 0.000000e+00 : f32
    %10 = vector.broadcast %cst_9 : f32 to vector<8x128xf32>
    %cst_10 = arith.constant 0.000000e+00 : f32
    %11 = vector.broadcast %cst_10 : f32 to vector<8x128xf32>
    %c0_11 = arith.constant 0 : index
    %c0_12 = arith.constant 0 : index
    %c0_13 = arith.constant 0 : index
    %12 = vector.load %arg8[%c0_11, %c0_12, %c0_13] : memref<8x8x512xf32, #tpu.memory_space<vmem>>, vector<1x8x512xf32>
    %13 = vector.shape_cast %12 : vector<1x8x512xf32> to vector<8x512xf32>
    %14 = arith.truncf %10 : vector<8x128xf32> to vector<8x128xbf16>
    %c0_14 = arith.constant 0 : index
    %c0_15 = arith.constant 0 : index
    %15 = vector.load %arg3[%c0_14, %c0_15] : memref<128x512xbf16, #tpu.memory_space<vmem>>, vector<128x512xbf16>
    %cst_16 = arith.constant dense<0.000000e+00> : vector<8x512xf32>
    %16 = tpu.matmul %14, %15, %cst_16 {dimension_numbers = #tpu.dot_dimension_numbers<[1], [0], [0], [1], [0, 0, 1, 1], [], []>} : vector<8x128xbf16>, vector<128x512xbf16>, vector<8x512xf32> -> vector<8x512xf32>
    %17 = arith.addf %13, %16 : vector<8x512xf32>
    %18 = vector.extract_strided_slice %17 {offsets = [0, 0], sizes = [8, 128], strides = [1, 1]} : vector<8x512xf32> to vector<8x128xf32>
    %19 = arith.negf %18 : vector<8x128xf32>
    %20 = math.exp %19 : vector<8x128xf32>
    %cst_17 = arith.constant 1.000000e+00 : f32
    %21 = vector.broadcast %cst_17 : f32 to vector<8x128xf32>
    %22 = arith.addf %21, %20 : vector<8x128xf32>
    %23 = arith.divf %21, %22 : vector<8x128xf32>
    %24 = vector.extract_strided_slice %17 {offsets = [0, 128], sizes = [8, 128], strides = [1, 1]} : vector<8x512xf32> to vector<8x128xf32>
    %25 = arith.negf %24 : vector<8x128xf32>
    %26 = math.exp %25 : vector<8x128xf32>
    %cst_18 = arith.constant 1.000000e+00 : f32
    %27 = vector.broadcast %cst_18 : f32 to vector<8x128xf32>
    %28 = arith.addf %27, %26 : vector<8x128xf32>
    %29 = arith.divf %27, %28 : vector<8x128xf32>
    %30 = vector.extract_strided_slice %17 {offsets = [0, 256], sizes = [8, 128], strides = [1, 1]} : vector<8x512xf32> to vector<8x128xf32>
    %31 = math.tanh %30 : vector<8x128xf32>
    %32 = vector.extract_strided_slice %17 {offsets = [0, 384], sizes = [8, 128], strides = [1, 1]} : vector<8x512xf32> to vector<8x128xf32>
    %33 = arith.negf %32 : vector<8x128xf32>
    %34 = math.exp %33 : vector<8x128xf32>
    %cst_19 = arith.constant 1.000000e+00 : f32
    %35 = vector.broadcast %cst_19 : f32 to vector<8x128xf32>
    %36 = arith.addf %35, %34 : vector<8x128xf32>
    %37 = arith.divf %35, %36 : vector<8x128xf32>
    %38 = arith.mulf %29, %11 : vector<8x128xf32>
    %39 = arith.mulf %23, %31 : vector<8x128xf32>
    %40 = arith.addf %38, %39 : vector<8x128xf32>
    %41 = math.tanh %40 : vector<8x128xf32>
    %42 = arith.mulf %37, %41 : vector<8x128xf32>
    %c0_20 = arith.constant 0 : index
    %c0_21 = arith.constant 0 : index
    %c0_22 = arith.constant 0 : index
    %43 = vector.load %arg9[%c0_20, %c0_21, %c0_22] : memref<8x8x128xf32, #tpu.memory_space<vmem>>, vector<1x8x128xf32>
    %44 = vector.shape_cast %43 : vector<1x8x128xf32> to vector<8x128xf32>
    %45 = vector.shape_cast %42 : vector<8x128xf32> to vector<1x8x128xf32>
    tpu.vector_store %arg9[%c0_20, %c0_21, %c0_22], %45 {strides = array<i32>} : memref<8x8x128xf32, #tpu.memory_space<vmem>>, vector<1x8x128xf32>,
    %c1 = arith.constant 1 : index
    %c0_23 = arith.constant 0 : index
    %c0_24 = arith.constant 0 : index
    %46 = vector.load %arg8[%c1, %c0_23, %c0_24] : memref<8x8x512xf32, #tpu.memory_space<vmem>>, vector<1x8x512xf32>
    %47 = vector.shape_cast %46 : vector<1x8x512xf32> to vector<8x512xf32>
    %48 = arith.truncf %42 : vector<8x128xf32> to vector<8x128xbf16>
    %c0_25 = arith.constant 0 : index
    %c0_26 = arith.constant 0 : index
    %49 = vector.load %arg3[%c0_25, %c0_26] : memref<128x512xbf16, #tpu.memory_space<vmem>>, vector<128x512xbf16>
    %cst_27 = arith.constant dense<0.000000e+00> : vector<8x512xf32>
    %50 = tpu.matmul %48, %49, %cst_27 {dimension_numbers = #tpu.dot_dimension_numbers<[1], [0], [0], [1], [0, 0, 1, 1], [], []>} : vector<8x128xbf16>, vector<128x512xbf16>, vector<8x512xf32> -> vector<8x512xf32>
    %51 = arith.addf %47, %50 : vector<8x512xf32>
    %52 = vector.extract_strided_slice %51 {offsets = [0, 0], sizes = [8, 128], strides = [1, 1]} : vector<8x512xf32> to vector<8x128xf32>
    %53 = arith.negf %52 : vector<8x128xf32>
    %54 = math.exp %53 : vector<8x128xf32>
    %cst_28 = arith.constant 1.000000e+00 : f32
    %55 = vector.broadcast %cst_28 : f32 to vector<8x128xf32>
    %56 = arith.addf %55, %54 : vector<8x128xf32>
    %57 = arith.divf %55, %56 : vector<8x128xf32>
    %58 = vector.extract_strided_slice %51 {offsets = [0, 128], sizes = [8, 128], strides = [1, 1]} : vector<8x512xf32> to vector<8x128xf32>
    %59 = arith.negf %58 : vector<8x128xf32>
    %60 = math.exp %59 : vector<8x128xf32>
    %cst_29 = arith.constant 1.000000e+00 : f32
    %61 = vector.broadcast %cst_29 : f32 to vector<8x128xf32>
    %62 = arith.addf %61, %60 : vector<8x128xf32>
    %63 = arith.divf %61, %62 : vector<8x128xf32>
    %64 = vector.extract_strided_slice %51 {offsets = [0, 256], sizes = [8, 128], strides = [1, 1]} : vector<8x512xf32> to vector<8x128xf32>
    %65 = math.tanh %64 : vector<8x128xf32>
    %66 = vector.extract_strided_slice %51 {offsets = [0, 384], sizes = [8, 128], strides = [1, 1]} : vector<8x512xf32> to vector<8x128xf32>
    %67 = arith.negf %66 : vector<8x128xf32>
    %68 = math.exp %67 : vector<8x128xf32>
    %cst_30 = arith.constant 1.000000e+00 : f32
    %69 = vector.broadcast %cst_30 : f32 to vector<8x128xf32>
    %70 = arith.addf %69, %68 : vector<8x128xf32>
    %71 = arith.divf %69, %70 : vector<8x128xf32>
    %72 = arith.mulf %63, %40 : vector<8x128xf32>
    %73 = arith.mulf %57, %65 : vector<8x128xf32>
    %74 = arith.addf %72, %73 : vector<8x128xf32>
    %75 = math.tanh %74 : vector<8x128xf32>
    %76 = arith.mulf %71, %75 : vector<8x128xf32>
    %c1_31 = arith.constant 1 : index
    %c0_32 = arith.constant 0 : index
    %c0_33 = arith.constant 0 : index
    %77 = vector.load %arg9[%c1_31, %c0_32, %c0_33] : memref<8x8x128xf32, #tpu.memory_space<vmem>>, vector<1x8x128xf32>
    %78 = vector.shape_cast %77 : vector<1x8x128xf32> to vector<8x128xf32>
    %79 = vector.shape_cast %76 : vector<8x128xf32> to vector<1x8x128xf32>
    tpu.vector_store %arg9[%c1_31, %c0_32, %c0_33], %79 {strides = array<i32>} : memref<8x8x128xf32, #tpu.memory_space<vmem>>, vector<1x8x128xf32>,
    %c2 = arith.constant 2 : index
    %c0_34 = arith.constant 0 : index
    %c0_35 = arith.constant 0 : index
    %80 = vector.load %arg8[%c2, %c0_34, %c0_35] : memref<8x8x512xf32, #tpu.memory_space<vmem>>, vector<1x8x512xf32>
    %81 = vector.shape_cast %80 : vector<1x8x512xf32> to vector<8x512xf32>
    %82 = arith.truncf %76 : vector<8x128xf32> to vector<8x128xbf16>
    %c0_36 = arith.constant 0 : index
    %c0_37 = arith.constant 0 : index
    %83 = vector.load %arg3[%c0_36, %c0_37] : memref<128x512xbf16, #tpu.memory_space<vmem>>, vector<128x512xbf16>
    %cst_38 = arith.constant dense<0.000000e+00> : vector<8x512xf32>
    %84 = tpu.matmul %82, %83, %cst_38 {dimension_numbers = #tpu.dot_dimension_numbers<[1], [0], [0], [1], [0, 0, 1, 1], [], []>} : vector<8x128xbf16>, vector<128x512xbf16>, vector<8x512xf32> -> vector<8x512xf32>
    %85 = arith.addf %81, %84 : vector<8x512xf32>
    %86 = vector.extract_strided_slice %85 {offsets = [0, 0], sizes = [8, 128], strides = [1, 1]} : vector<8x512xf32> to vector<8x128xf32>
    %87 = arith.negf %86 : vector<8x128xf32>
    %88 = math.exp %87 : vector<8x128xf32>
    %cst_39 = arith.constant 1.000000e+00 : f32
    %89 = vector.broadcast %cst_39 : f32 to vector<8x128xf32>
    %90 = arith.addf %89, %88 : vector<8x128xf32>
    %91 = arith.divf %89, %90 : vector<8x128xf32>
    %92 = vector.extract_strided_slice %85 {offsets = [0, 128], sizes = [8, 128], strides = [1, 1]} : vector<8x512xf32> to vector<8x128xf32>
    %93 = arith.negf %92 : vector<8x128xf32>
    %94 = math.exp %93 : vector<8x128xf32>
    %cst_40 = arith.constant 1.000000e+00 : f32
    %95 = vector.broadcast %cst_40 : f32 to vector<8x128xf32>
    %96 = arith.addf %95, %94 : vector<8x128xf32>
    %97 = arith.divf %95, %96 : vector<8x128xf32>
    %98 = vector.extract_strided_slice %85 {offsets = [0, 256], sizes = [8, 128], strides = [1, 1]} : vector<8x512xf32> to vector<8x128xf32>
    %99 = math.tanh %98 : vector<8x128xf32>
    %100 = vector.extract_strided_slice %85 {offsets = [0, 384], sizes = [8, 128], strides = [1, 1]} : vector<8x512xf32> to vector<8x128xf32>
    %101 = arith.negf %100 : vector<8x128xf32>
    %102 = math.exp %101 : vector<8x128xf32>
    %cst_41 = arith.constant 1.000000e+00 : f32
    %103 = vector.broadcast %cst_41 : f32 to vector<8x128xf32>
    %104 = arith.addf %103, %102 : vector<8x128xf32>
    %105 = arith.divf %103, %104 : vector<8x128xf32>
    %106 = arith.mulf %97, %74 : vector<8x128xf32>
    %107 = arith.mulf %91, %99 : vector<8x128xf32>
    %108 = arith.addf %106, %107 : vector<8x128xf32>
    %109 = math.tanh %108 : vector<8x128xf32>
    %110 = arith.mulf %105, %109 : vector<8x128xf32>
    %c2_42 = arith.constant 2 : index
    %c0_43 = arith.constant 0 : index
    %c0_44 = arith.constant 0 : index
    %111 = vector.load %arg9[%c2_42, %c0_43, %c0_44] : memref<8x8x128xf32, #tpu.memory_space<vmem>>, vector<1x8x128xf32>
    %112 = vector.shape_cast %111 : vector<1x8x128xf32> to vector<8x128xf32>
    %113 = vector.shape_cast %110 : vector<8x128xf32> to vector<1x8x128xf32>
    tpu.vector_store %arg9[%c2_42, %c0_43, %c0_44], %113 {strides = array<i32>} : memref<8x8x128xf32, #tpu.memory_space<vmem>>, vector<1x8x128xf32>,
    %c3 = arith.constant 3 : index
    %c0_45 = arith.constant 0 : index
    %c0_46 = arith.constant 0 : index
    %114 = vector.load %arg8[%c3, %c0_45, %c0_46] : memref<8x8x512xf32, #tpu.memory_space<vmem>>, vector<1x8x512xf32>
    %115 = vector.shape_cast %114 : vector<1x8x512xf32> to vector<8x512xf32>
    %116 = arith.truncf %110 : vector<8x128xf32> to vector<8x128xbf16>
    %c0_47 = arith.constant 0 : index
    %c0_48 = arith.constant 0 : index
    %117 = vector.load %arg3[%c0_47, %c0_48] : memref<128x512xbf16, #tpu.memory_space<vmem>>, vector<128x512xbf16>
    %cst_49 = arith.constant dense<0.000000e+00> : vector<8x512xf32>
    %118 = tpu.matmul %116, %117, %cst_49 {dimension_numbers = #tpu.dot_dimension_numbers<[1], [0], [0], [1], [0, 0, 1, 1], [], []>} : vector<8x128xbf16>, vector<128x512xbf16>, vector<8x512xf32> -> vector<8x512xf32>
    %119 = arith.addf %115, %118 : vector<8x512xf32>
    %120 = vector.extract_strided_slice %119 {offsets = [0, 0], sizes = [8, 128], strides = [1, 1]} : vector<8x512xf32> to vector<8x128xf32>
    %121 = arith.negf %120 : vector<8x128xf32>
    %122 = math.exp %121 : vector<8x128xf32>
    %cst_50 = arith.constant 1.000000e+00 : f32
    %123 = vector.broadcast %cst_50 : f32 to vector<8x128xf32>
    %124 = arith.addf %123, %122 : vector<8x128xf32>
    %125 = arith.divf %123, %124 : vector<8x128xf32>
    %126 = vector.extract_strided_slice %119 {offsets = [0, 128], sizes = [8, 128], strides = [1, 1]} : vector<8x512xf32> to vector<8x128xf32>
    %127 = arith.negf %126 : vector<8x128xf32>
    %128 = math.exp %127 : vector<8x128xf32>
    %cst_51 = arith.constant 1.000000e+00 : f32
    %129 = vector.broadcast %cst_51 : f32 to vector<8x128xf32>
    %130 = arith.addf %129, %128 : vector<8x128xf32>
    %131 = arith.divf %129, %130 : vector<8x128xf32>
    %132 = vector.extract_strided_slice %119 {offsets = [0, 256], sizes = [8, 128], strides = [1, 1]} : vector<8x512xf32> to vector<8x128xf32>
    %133 = math.tanh %132 : vector<8x128xf32>
    %134 = vector.extract_strided_slice %119 {offsets = [0, 384], sizes = [8, 128], strides = [1, 1]} : vector<8x512xf32> to vector<8x128xf32>
    %135 = arith.negf %134 : vector<8x128xf32>
    %136 = math.exp %135 : vector<8x128xf32>
    %cst_52 = arith.constant 1.000000e+00 : f32
    %137 = vector.broadcast %cst_52 : f32 to vector<8x128xf32>
    %138 = arith.addf %137, %136 : vector<8x128xf32>
    %139 = arith.divf %137, %138 : vector<8x128xf32>
    %140 = arith.mulf %131, %108 : vector<8x128xf32>
    %141 = arith.mulf %125, %133 : vector<8x128xf32>
    %142 = arith.addf %140, %141 : vector<8x128xf32>
    %143 = math.tanh %142 : vector<8x128xf32>
    %144 = arith.mulf %139, %143 : vector<8x128xf32>
    %c3_53 = arith.constant 3 : index
    %c0_54 = arith.constant 0 : index
    %c0_55 = arith.constant 0 : index
    %145 = vector.load %arg9[%c3_53, %c0_54, %c0_55] : memref<8x8x128xf32, #tpu.memory_space<vmem>>, vector<1x8x128xf32>
    %146 = vector.shape_cast %145 : vector<1x8x128xf32> to vector<8x128xf32>
    %147 = vector.shape_cast %144 : vector<8x128xf32> to vector<1x8x128xf32>
    tpu.vector_store %arg9[%c3_53, %c0_54, %c0_55], %147 {strides = array<i32>} : memref<8x8x128xf32, #tpu.memory_space<vmem>>, vector<1x8x128xf32>,
    %c4 = arith.constant 4 : index
    %c0_56 = arith.constant 0 : index
    %c0_57 = arith.constant 0 : index
    %148 = vector.load %arg8[%c4, %c0_56, %c0_57] : memref<8x8x512xf32, #tpu.memory_space<vmem>>, vector<1x8x512xf32>
    %149 = vector.shape_cast %148 : vector<1x8x512xf32> to vector<8x512xf32>
    %150 = arith.truncf %144 : vector<8x128xf32> to vector<8x128xbf16>
    %c0_58 = arith.constant 0 : index
    %c0_59 = arith.constant 0 : index
    %151 = vector.load %arg3[%c0_58, %c0_59] : memref<128x512xbf16, #tpu.memory_space<vmem>>, vector<128x512xbf16>
    %cst_60 = arith.constant dense<0.000000e+00> : vector<8x512xf32>
    %152 = tpu.matmul %150, %151, %cst_60 {dimension_numbers = #tpu.dot_dimension_numbers<[1], [0], [0], [1], [0, 0, 1, 1], [], []>} : vector<8x128xbf16>, vector<128x512xbf16>, vector<8x512xf32> -> vector<8x512xf32>
    %153 = arith.addf %149, %152 : vector<8x512xf32>
    %154 = vector.extract_strided_slice %153 {offsets = [0, 0], sizes = [8, 128], strides = [1, 1]} : vector<8x512xf32> to vector<8x128xf32>
    %155 = arith.negf %154 : vector<8x128xf32>
    %156 = math.exp %155 : vector<8x128xf32>
    %cst_61 = arith.constant 1.000000e+00 : f32
    %157 = vector.broadcast %cst_61 : f32 to vector<8x128xf32>
    %158 = arith.addf %157, %156 : vector<8x128xf32>
    %159 = arith.divf %157, %158 : vector<8x128xf32>
    %160 = vector.extract_strided_slice %153 {offsets = [0, 128], sizes = [8, 128], strides = [1, 1]} : vector<8x512xf32> to vector<8x128xf32>
    %161 = arith.negf %160 : vector<8x128xf32>
    %162 = math.exp %161 : vector<8x128xf32>
    %cst_62 = arith.constant 1.000000e+00 : f32
    %163 = vector.broadcast %cst_62 : f32 to vector<8x128xf32>
    %164 = arith.addf %163, %162 : vector<8x128xf32>
    %165 = arith.divf %163, %164 : vector<8x128xf32>
    %166 = vector.extract_strided_slice %153 {offsets = [0, 256], sizes = [8, 128], strides = [1, 1]} : vector<8x512xf32> to vector<8x128xf32>
    %167 = math.tanh %166 : vector<8x128xf32>
    %168 = vector.extract_strided_slice %153 {offsets = [0, 384], sizes = [8, 128], strides = [1, 1]} : vector<8x512xf32> to vector<8x128xf32>
    %169 = arith.negf %168 : vector<8x128xf32>
    %170 = math.exp %169 : vector<8x128xf32>
    %cst_63 = arith.constant 1.000000e+00 : f32
    %171 = vector.broadcast %cst_63 : f32 to vector<8x128xf32>
    %172 = arith.addf %171, %170 : vector<8x128xf32>
    %173 = arith.divf %171, %172 : vector<8x128xf32>
    %174 = arith.mulf %165, %142 : vector<8x128xf32>
    %175 = arith.mulf %159, %167 : vector<8x128xf32>
    %176 = arith.addf %174, %175 : vector<8x128xf32>
    %177 = math.tanh %176 : vector<8x128xf32>
    %178 = arith.mulf %173, %177 : vector<8x128xf32>
    %c4_64 = arith.constant 4 : index
    %c0_65 = arith.constant 0 : index
    %c0_66 = arith.constant 0 : index
    %179 = vector.load %arg9[%c4_64, %c0_65, %c0_66] : memref<8x8x128xf32, #tpu.memory_space<vmem>>, vector<1x8x128xf32>
    %180 = vector.shape_cast %179 : vector<1x8x128xf32> to vector<8x128xf32>
    %181 = vector.shape_cast %178 : vector<8x128xf32> to vector<1x8x128xf32>
    tpu.vector_store %arg9[%c4_64, %c0_65, %c0_66], %181 {strides = array<i32>} : memref<8x8x128xf32, #tpu.memory_space<vmem>>, vector<1x8x128xf32>,
    %c5 = arith.constant 5 : index
    %c0_67 = arith.constant 0 : index
    %c0_68 = arith.constant 0 : index
    %182 = vector.load %arg8[%c5, %c0_67, %c0_68] : memref<8x8x512xf32, #tpu.memory_space<vmem>>, vector<1x8x512xf32>
    %183 = vector.shape_cast %182 : vector<1x8x512xf32> to vector<8x512xf32>
    %184 = arith.truncf %178 : vector<8x128xf32> to vector<8x128xbf16>
    %c0_69 = arith.constant 0 : index
    %c0_70 = arith.constant 0 : index
    %185 = vector.load %arg3[%c0_69, %c0_70] : memref<128x512xbf16, #tpu.memory_space<vmem>>, vector<128x512xbf16>
    %cst_71 = arith.constant dense<0.000000e+00> : vector<8x512xf32>
    %186 = tpu.matmul %184, %185, %cst_71 {dimension_numbers = #tpu.dot_dimension_numbers<[1], [0], [0], [1], [0, 0, 1, 1], [], []>} : vector<8x128xbf16>, vector<128x512xbf16>, vector<8x512xf32> -> vector<8x512xf32>
    %187 = arith.addf %183, %186 : vector<8x512xf32>
    %188 = vector.extract_strided_slice %187 {offsets = [0, 0], sizes = [8, 128], strides = [1, 1]} : vector<8x512xf32> to vector<8x128xf32>
    %189 = arith.negf %188 : vector<8x128xf32>
    %190 = math.exp %189 : vector<8x128xf32>
    %cst_72 = arith.constant 1.000000e+00 : f32
    %191 = vector.broadcast %cst_72 : f32 to vector<8x128xf32>
    %192 = arith.addf %191, %190 : vector<8x128xf32>
    %193 = arith.divf %191, %192 : vector<8x128xf32>
    %194 = vector.extract_strided_slice %187 {offsets = [0, 128], sizes = [8, 128], strides = [1, 1]} : vector<8x512xf32> to vector<8x128xf32>
    %195 = arith.negf %194 : vector<8x128xf32>
    %196 = math.exp %195 : vector<8x128xf32>
    %cst_73 = arith.constant 1.000000e+00 : f32
    %197 = vector.broadcast %cst_73 : f32 to vector<8x128xf32>
    %198 = arith.addf %197, %196 : vector<8x128xf32>
    %199 = arith.divf %197, %198 : vector<8x128xf32>
    %200 = vector.extract_strided_slice %187 {offsets = [0, 256], sizes = [8, 128], strides = [1, 1]} : vector<8x512xf32> to vector<8x128xf32>
    %201 = math.tanh %200 : vector<8x128xf32>
    %202 = vector.extract_strided_slice %187 {offsets = [0, 384], sizes = [8, 128], strides = [1, 1]} : vector<8x512xf32> to vector<8x128xf32>
    %203 = arith.negf %202 : vector<8x128xf32>
    %204 = math.exp %203 : vector<8x128xf32>
    %cst_74 = arith.constant 1.000000e+00 : f32
    %205 = vector.broadcast %cst_74 : f32 to vector<8x128xf32>
    %206 = arith.addf %205, %204 : vector<8x128xf32>
    %207 = arith.divf %205, %206 : vector<8x128xf32>
    %208 = arith.mulf %199, %176 : vector<8x128xf32>
    %209 = arith.mulf %193, %201 : vector<8x128xf32>
    %210 = arith.addf %208, %209 : vector<8x128xf32>
    %211 = math.tanh %210 : vector<8x128xf32>
    %212 = arith.mulf %207, %211 : vector<8x128xf32>
    %c5_75 = arith.constant 5 : index
    %c0_76 = arith.constant 0 : index
    %c0_77 = arith.constant 0 : index
    %213 = vector.load %arg9[%c5_75, %c0_76, %c0_77] : memref<8x8x128xf32, #tpu.memory_space<vmem>>, vector<1x8x128xf32>
    %214 = vector.shape_cast %213 : vector<1x8x128xf32> to vector<8x128xf32>
    %215 = vector.shape_cast %212 : vector<8x128xf32> to vector<1x8x128xf32>
    tpu.vector_store %arg9[%c5_75, %c0_76, %c0_77], %215 {strides = array<i32>} : memref<8x8x128xf32, #tpu.memory_space<vmem>>, vector<1x8x128xf32>,
    %c6 = arith.constant 6 : index
    %c0_78 = arith.constant 0 : index
    %c0_79 = arith.constant 0 : index
    %216 = vector.load %arg8[%c6, %c0_78, %c0_79] : memref<8x8x512xf32, #tpu.memory_space<vmem>>, vector<1x8x512xf32>
    %217 = vector.shape_cast %216 : vector<1x8x512xf32> to vector<8x512xf32>
    %218 = arith.truncf %212 : vector<8x128xf32> to vector<8x128xbf16>
    %c0_80 = arith.constant 0 : index
    %c0_81 = arith.constant 0 : index
    %219 = vector.load %arg3[%c0_80, %c0_81] : memref<128x512xbf16, #tpu.memory_space<vmem>>, vector<128x512xbf16>
    %cst_82 = arith.constant dense<0.000000e+00> : vector<8x512xf32>
    %220 = tpu.matmul %218, %219, %cst_82 {dimension_numbers = #tpu.dot_dimension_numbers<[1], [0], [0], [1], [0, 0, 1, 1], [], []>} : vector<8x128xbf16>, vector<128x512xbf16>, vector<8x512xf32> -> vector<8x512xf32>
    %221 = arith.addf %217, %220 : vector<8x512xf32>
    %222 = vector.extract_strided_slice %221 {offsets = [0, 0], sizes = [8, 128], strides = [1, 1]} : vector<8x512xf32> to vector<8x128xf32>
    %223 = arith.negf %222 : vector<8x128xf32>
    %224 = math.exp %223 : vector<8x128xf32>
    %cst_83 = arith.constant 1.000000e+00 : f32
    %225 = vector.broadcast %cst_83 : f32 to vector<8x128xf32>
    %226 = arith.addf %225, %224 : vector<8x128xf32>
    %227 = arith.divf %225, %226 : vector<8x128xf32>
    %228 = vector.extract_strided_slice %221 {offsets = [0, 128], sizes = [8, 128], strides = [1, 1]} : vector<8x512xf32> to vector<8x128xf32>
    %229 = arith.negf %228 : vector<8x128xf32>
    %230 = math.exp %229 : vector<8x128xf32>
    %cst_84 = arith.constant 1.000000e+00 : f32
    %231 = vector.broadcast %cst_84 : f32 to vector<8x128xf32>
    %232 = arith.addf %231, %230 : vector<8x128xf32>
    %233 = arith.divf %231, %232 : vector<8x128xf32>
    %234 = vector.extract_strided_slice %221 {offsets = [0, 256], sizes = [8, 128], strides = [1, 1]} : vector<8x512xf32> to vector<8x128xf32>
    %235 = math.tanh %234 : vector<8x128xf32>
    %236 = vector.extract_strided_slice %221 {offsets = [0, 384], sizes = [8, 128], strides = [1, 1]} : vector<8x512xf32> to vector<8x128xf32>
    %237 = arith.negf %236 : vector<8x128xf32>
    %238 = math.exp %237 : vector<8x128xf32>
    %cst_85 = arith.constant 1.000000e+00 : f32
    %239 = vector.broadcast %cst_85 : f32 to vector<8x128xf32>
    %240 = arith.addf %239, %238 : vector<8x128xf32>
    %241 = arith.divf %239, %240 : vector<8x128xf32>
    %242 = arith.mulf %233, %210 : vector<8x128xf32>
    %243 = arith.mulf %227, %235 : vector<8x128xf32>
    %244 = arith.addf %242, %243 : vector<8x128xf32>
    %245 = math.tanh %244 : vector<8x128xf32>
    %246 = arith.mulf %241, %245 : vector<8x128xf32>
    %c6_86 = arith.constant 6 : index
    %c0_87 = arith.constant 0 : index
    %c0_88 = arith.constant 0 : index
    %247 = vector.load %arg9[%c6_86, %c0_87, %c0_88] : memref<8x8x128xf32, #tpu.memory_space<vmem>>, vector<1x8x128xf32>
    %248 = vector.shape_cast %247 : vector<1x8x128xf32> to vector<8x128xf32>
    %249 = vector.shape_cast %246 : vector<8x128xf32> to vector<1x8x128xf32>
    tpu.vector_store %arg9[%c6_86, %c0_87, %c0_88], %249 {strides = array<i32>} : memref<8x8x128xf32, #tpu.memory_space<vmem>>, vector<1x8x128xf32>,
    %c7 = arith.constant 7 : index
    %c0_89 = arith.constant 0 : index
    %c0_90 = arith.constant 0 : index
    %250 = vector.load %arg8[%c7, %c0_89, %c0_90] : memref<8x8x512xf32, #tpu.memory_space<vmem>>, vector<1x8x512xf32>
    %251 = vector.shape_cast %250 : vector<1x8x512xf32> to vector<8x512xf32>
    %252 = arith.truncf %246 : vector<8x128xf32> to vector<8x128xbf16>
    %c0_91 = arith.constant 0 : index
    %c0_92 = arith.constant 0 : index
    %253 = vector.load %arg3[%c0_91, %c0_92] : memref<128x512xbf16, #tpu.memory_space<vmem>>, vector<128x512xbf16>
    %cst_93 = arith.constant dense<0.000000e+00> : vector<8x512xf32>
    %254 = tpu.matmul %252, %253, %cst_93 {dimension_numbers = #tpu.dot_dimension_numbers<[1], [0], [0], [1], [0, 0, 1, 1], [], []>} : vector<8x128xbf16>, vector<128x512xbf16>, vector<8x512xf32> -> vector<8x512xf32>
    %255 = arith.addf %251, %254 : vector<8x512xf32>
    %256 = vector.extract_strided_slice %255 {offsets = [0, 0], sizes = [8, 128], strides = [1, 1]} : vector<8x512xf32> to vector<8x128xf32>
    %257 = arith.negf %256 : vector<8x128xf32>
    %258 = math.exp %257 : vector<8x128xf32>
    %cst_94 = arith.constant 1.000000e+00 : f32
    %259 = vector.broadcast %cst_94 : f32 to vector<8x128xf32>
    %260 = arith.addf %259, %258 : vector<8x128xf32>
    %261 = arith.divf %259, %260 : vector<8x128xf32>
    %262 = vector.extract_strided_slice %255 {offsets = [0, 128], sizes = [8, 128], strides = [1, 1]} : vector<8x512xf32> to vector<8x128xf32>
    %263 = arith.negf %262 : vector<8x128xf32>
    %264 = math.exp %263 : vector<8x128xf32>
    %cst_95 = arith.constant 1.000000e+00 : f32
    %265 = vector.broadcast %cst_95 : f32 to vector<8x128xf32>
    %266 = arith.addf %265, %264 : vector<8x128xf32>
    %267 = arith.divf %265, %266 : vector<8x128xf32>
    %268 = vector.extract_strided_slice %255 {offsets = [0, 256], sizes = [8, 128], strides = [1, 1]} : vector<8x512xf32> to vector<8x128xf32>
    %269 = math.tanh %268 : vector<8x128xf32>
    %270 = vector.extract_strided_slice %255 {offsets = [0, 384], sizes = [8, 128], strides = [1, 1]} : vector<8x512xf32> to vector<8x128xf32>
    %271 = arith.negf %270 : vector<8x128xf32>
    %272 = math.exp %271 : vector<8x128xf32>
    %cst_96 = arith.constant 1.000000e+00 : f32
    %273 = vector.broadcast %cst_96 : f32 to vector<8x128xf32>
    %274 = arith.addf %273, %272 : vector<8x128xf32>
    %275 = arith.divf %273, %274 : vector<8x128xf32>
    %276 = arith.mulf %267, %244 : vector<8x128xf32>
    %277 = arith.mulf %261, %269 : vector<8x128xf32>
    %278 = arith.addf %276, %277 : vector<8x128xf32>
    %279 = math.tanh %278 : vector<8x128xf32>
    %280 = arith.mulf %275, %279 : vector<8x128xf32>
    %c7_97 = arith.constant 7 : index
    %c0_98 = arith.constant 0 : index
    %c0_99 = arith.constant 0 : index
    %281 = vector.load %arg9[%c7_97, %c0_98, %c0_99] : memref<8x8x128xf32, #tpu.memory_space<vmem>>, vector<1x8x128xf32>
    %282 = vector.shape_cast %281 : vector<1x8x128xf32> to vector<8x128xf32>
    %283 = vector.shape_cast %280 : vector<8x128xf32> to vector<1x8x128xf32>
    tpu.vector_store %arg9[%c7_97, %c0_98, %c0_99], %283 {strides = array<i32>} : memref<8x8x128xf32, #tpu.memory_space<vmem>>, vector<1x8x128xf32>,
    %c0_100 = arith.constant 0 : index
    %c0_101 = arith.constant 0 : index
    %c0_102 = arith.constant 0 : index
    %284 = vector.load %arg9[%c0_100, %c0_101, %c0_102] : memref<8x8x128xf32, #tpu.memory_space<vmem>>, vector<8x8x128xf32>
    %285 = vector.shape_cast %284 : vector<8x8x128xf32> to vector<64x128xf32>
    %286 = arith.truncf %285 : vector<64x128xf32> to vector<64x128xbf16>
    %c0_103 = arith.constant 0 : index
    %c0_104 = arith.constant 0 : index
    %287 = vector.load %arg5[%c0_103, %c0_104] : memref<128x256xbf16, #tpu.memory_space<vmem>>, vector<128x256xbf16>
    %cst_105 = arith.constant dense<0.000000e+00> : vector<64x256xf32>
    %288 = tpu.matmul %286, %287, %cst_105 {dimension_numbers = #tpu.dot_dimension_numbers<[1], [0], [0], [1], [0, 0, 1, 1], [], []>} : vector<64x128xbf16>, vector<128x256xbf16>, vector<64x256xf32> -> vector<64x256xf32>
    %c0_106 = arith.constant 0 : index
    %c0_107 = arith.constant 0 : index
    %289 = vector.load %arg6[%c0_106, %c0_107] : memref<1x256xf32, #tpu.memory_space<vmem>>, vector<1x256xf32>
    %290 = vector.broadcast %289 : vector<1x256xf32> to vector<64x256xf32>
    %291 = arith.addf %288, %290 : vector<64x256xf32>
    %292 = vector.shape_cast %291 : vector<64x256xf32> to vector<8x8x256xf32>
    %c0_108 = arith.constant 0 : index
    %c0_109 = arith.constant 0 : index
    %c0_110 = arith.constant 0 : index
    %293 = vector.load %arg7[%c0_108, %c0_109, %c0_110] : memref<8x8x256xf32, #tpu.memory_space<vmem>>, vector<8x8x256xf32>
    tpu.vector_store %arg7[%c0_108, %c0_109, %c0_110], %292 {strides = array<i32>} : memref<8x8x256xf32, #tpu.memory_space<vmem>>, vector<8x8x256xf32>,
    return
  }
  func.func @transform_0(%arg0: i32) -> (i32, i32, i32) {
    %c0_i32 = arith.constant 0 : i32
    %c0_i32_0 = arith.constant 0 : i32
    %c0_i32_1 = arith.constant 0 : i32
    %c0_i32_2 = arith.constant 0 : i32
    return %c0_i32, %c0_i32_0, %c0_i32_1 : i32, i32, i32
  }
  func.func @transform_1(%arg0: i32) -> (i32, i32) {
    %c0_i32 = arith.constant 0 : i32
    %c0_i32_0 = arith.constant 0 : i32
    %c0_i32_1 = arith.constant 0 : i32
    return %c0_i32, %c0_i32_0 : i32, i32
  }
  func.func @transform_2(%arg0: i32) -> (i32, i32) {
    %c0_i32 = arith.constant 0 : i32
    %c0_i32_0 = arith.constant 0 : i32
    %c0_i32_1 = arith.constant 0 : i32
    return %c0_i32, %c0_i32_0 : i32, i32
  }
  func.func @transform_3(%arg0: i32) -> (i32, i32) {
    %c0_i32 = arith.constant 0 : i32
    %c0_i32_0 = arith.constant 0 : i32
    %c0_i32_1 = arith.constant 0 : i32
    return %c0_i32, %c0_i32_0 : i32, i32
  }
  func.func @transform_4(%arg0: i32) -> (i32, i32) {
    %c0_i32 = arith.constant 0 : i32
    %c0_i32_0 = arith.constant 0 : i32
    %c0_i32_1 = arith.constant 0 : i32
    return %c0_i32, %c0_i32_0 : i32, i32
  }
  func.func @transform_5(%arg0: i32) -> (i32, i32) {
    %c0_i32 = arith.constant 0 : i32
    %c0_i32_0 = arith.constant 0 : i32
    %c0_i32_1 = arith.constant 0 : i32
    return %c0_i32, %c0_i32_0 : i32, i32
  }
  func.func @transform_6(%arg0: i32) -> (i32, i32, i32) {
    %c0_i32 = arith.constant 0 : i32
    %c0_i32_0 = arith.constant 0 : i32
    %c0_i32_1 = arith.constant 0 : i32
    %c0_i32_2 = arith.constant 0 : i32
    return %c0_i32, %c0_i32_0, %c0_i32_1 : i32, i32, i32
  }
}

</mosaic_0001>

<bundles_post_ra>
// kernel: decoder_rnn_forward.3
= control target key start
LH: loop header
LB: loop body
LE: loop exit
PB: predicated region body
PF: predicated region fallthrough
CT: control target
= control target key end

     0   :  { %8 = vsyncpa [#allocation3], 0  ;;  %s619_s0 = inlined_call_operand.vmem [shape: s32[56,1], index: 0, kind: input, shape index: {}]   ;;  %s620_s1 = inlined_call_operand.hbm [shape: f32[8,128], index: 1, kind: input, shape index: {}]   ;;  %s621_s2 = inlined_call_operand.hbm [shape: bf16[256,128], index: 2, kind: input, shape index: {}]   ;;  %s622_s3 = inlined_call_operand.vmem [shape: f32[8,8,128], index: 3, kind: output, shape index: {}]  }
   0x1   :  { %9 = vsyncpa [#allocation5], 0  ;;  %s511_s12 = smov [#allocation2]   ;;  %s512_s14 = smov [#allocation4]  }
   0x2   :  { %s18_s13 = sshll.u32 %s511_s12, 4  ;;  %s27_s15 = sshll.u32 %s512_s14, 4  ;;  %s19_s13 = int_to_ptr.vmem [resolvable:$true] %s18_s13  ;;  %s537_s15 = int_to_ptr.vmem [resolvable:$true] %s27_s15 }
   0x3   :  { %s463_s18 = scalar_lea.hbm %s620_s1, 128 }
   0x4   :  { %p464_p0 = scmp.ne.s32.totalorder %s620_s1, %s463_s18  ;;  %p467_p1 = scmp.lt.u32.totalorder %s463_s18, %s620_s1 }
   0x6   :  { %p469_p2 = pnand %p467_p1, %p464_p0 }
   0x8   :  { %472 = shalt.err (!%p469_p2)
}
   0x9   :  { %s473_s23 = scalar_lea.vmem %s19_s13, 128  ;;  %p478_p4 = scmp.lt.s32.totalorder %s19_s13, %s19_s13 }
   0xa   :  { %p474_p3 = scmp.ne.s32.totalorder %s19_s13, %s473_s23  ;;  %p479_p5 = scmp.lt.s32.totalorder %s473_s23, %s473_s23 }
   0xc   :  { %p480_p6 = por %p479_p5, %p478_p4 }
   0xe   :  { %p481_p7 = pnand %p480_p6, %p474_p3 }
  0x10   :  { %484 = shalt.err (!%p481_p7)
}
  0x11   :  { %21 = dma.hbm_to_vmem [thread:$0]  %s620_s1, 128, %s19_s13, [#allocation3]  }
  0x12   :  { %s485_s28 = scalar_lea.hbm %s621_s2, 2048 }
  0x13   :  { %p486_p8 = scmp.ne.s32.totalorder %s621_s2, %s485_s28  ;;  %p489_p9 = scmp.lt.u32.totalorder %s485_s28, %s621_s2 }
  0x15   :  { %p491_p10 = pnand %p489_p9, %p486_p8 }
  0x17   :  { %494 = shalt.err (!%p491_p10)
}
  0x18   :  { %s495_s6 = scalar_lea.vmem %s537_s15, 2048  ;;  %p500_p12 = scmp.lt.s32.totalorder %s537_s15, %s537_s15 }
  0x19   :  { %p496_p11 = scmp.ne.s32.totalorder %s537_s15, %s495_s6  ;;  %p501_p13 = scmp.lt.s32.totalorder %s495_s6, %s495_s6 }
  0x1b   :  { %p502_p0 = por %p501_p13, %p500_p12 }
  0x1d   :  { %p503_p1 = pnand %p502_p0, %p496_p11 }
  0x1f   :  { %506 = shalt.err (!%p503_p1)
}
  0x20   :  { %s513_s1 = smov 64   ;;  %s514_s7 = smov 4  }
  0x21   :  { %33 = dma.hbm_to_vmem [thread:$0]  %s621_s2, 2048, %s537_s15, [#allocation5], %s513_s1, %s513_s1, %s514_s7  }
  0x22   :  { %507 = dma.done.wait [#allocation3], 128  }
  0x23   :  { %508 = vsyncadd [#allocation3], 4294967168 }
  0x24   :  { %509 = dma.done.wait [#allocation5], 2048  }
  0x25   :  { %510 = vsyncadd [#allocation5], 4294965248  ;;  %v515_v0 = vmov 0   ;;  %v314_v1 = vld [vmem:[#allocation2] sm:$0xff]  ;;  %v46_v4 = vld [vmem:[%s619_s0 + $0x28] sm:$0xff]  ;;  %v48_v25 = vlaneseq }
  0x26   :  { %446 = vset.pattern.permute.xlu1 %v515_v0  ;;  %445 = vset.pattern.permute.xlu0 %v515_v0  ;;  %v45_v2 = vld [vmem:[%s619_s0 + $0x20] sm:$0xff]  ;;  %315 = vst [vmem:[%s622_s3] sm:$0xff] %v314_v1  ;;  %v42_v5 = vld [vmem:[%s619_s0 + $0x8] sm:$0xff]  ;;  %v44_v7 = vld [vmem:[%s619_s0 + $0x18] sm:$0xff]  ;;  %v516_v35 = vmov 1.0|1.0  }
  0x27   :  { %v41_v3 = vld [vmem:[%s619_s0] sm:$0xff]  ;;  %64 = vperm.xlu1 %446, %v45_v2   ;;  %v447_v6 = vld [vmem:[#allocation4 + $0x40] sm:$0xff]   ;;  %v449_v9 = vld [vmem:[#allocation4 + $0x48] sm:$0xff]   ;;  %v49_v26 = vand.u32 127, %v48_v25 }
  0x28   :  { %52 = vperm.xlu0 %445, %v41_v3   ;;  %v448_v8 = vld [vmem:[#allocation4] sm:$0xff]   ;;  %v43_v10 = vld [vmem:[%s619_s0 + $0x10] sm:$0xff]  ;;  %383 = vmatprep.subr.bf16.mxu0 %v447_v6  ;;  %v451_v12 = vld [vmem:[#allocation4 + $0x50] sm:$0xff]  }
  0x29   :  { %423 = vmatprep.subr.bf16.mxu1 %v447_v6  ;;  %384 = vmatpush3.bf16.msra.mxu0 %v448_v8  ;;  %v450_v11 = vld [vmem:[#allocation4 + $0x8] sm:$0xff]   ;;  %v452_v14 = vld [vmem:[#allocation4 + $0x10] sm:$0xff]   ;;  %v453_v15 = vld [vmem:[#allocation4 + $0x58] sm:$0xff]   ;;  %v50_v29 = vadd.s32 128, %v49_v26 }
  0x2a   :  { %431 = vmatpush3.bf16.msra.mxu1 %v448_v8  ;;  %385 = vmatprep.subr.bf16.mxu0 %v449_v9  ;;  %v47_v13 = vld [vmem:[%s619_s0 + $0x30] sm:$0xff]  ;;  %v454_v16 = vld [vmem:[#allocation4 + $0x18] sm:$0xff]   ;;  %v455_v17 = vld [vmem:[#allocation4 + $0x60] sm:$0xff]  }
  0x2b   :  { %67 = vperm.xlu1 %446, %v46_v4   ;;  %424 = vmatprep.subr.bf16.mxu1 %v449_v9  ;;  %v456_v18 = vld [vmem:[#allocation4 + $0x20] sm:$0xff]   ;;  %v457_v19 = vld [vmem:[#allocation4 + $0x68] sm:$0xff]   ;;  %v459_v21 = vld [vmem:[#allocation4 + $0x70] sm:$0xff]  }
  0x2c   :  { %55 = vperm.xlu0 %445, %v42_v5   ;;  %v458_v20 = vld [vmem:[#allocation4 + $0x28] sm:$0xff]   ;;  %v460_v22 = vld [vmem:[#allocation4 + $0x30] sm:$0xff]   ;;  %v461_v23 = vld [vmem:[#allocation4 + $0x78] sm:$0xff]  }
  0x2d   :  { %386 = vmatpush3.bf16.msra.mxu0 %v450_v11  ;;  %v462_v24 = vld [vmem:[#allocation4 + $0x38] sm:$0xff]  }
  0x2e   :  { %432 = vmatpush3.bf16.msra.mxu1 %v450_v11  ;;  %387 = vmatprep.subr.bf16.mxu0 %v451_v12 }
  0x2f   :  { %61 = vperm.xlu1 %446, %v44_v7   ;;  %425 = vmatprep.subr.bf16.mxu1 %v451_v12 }
  0x30   :  { %58 = vperm.xlu0 %445, %v43_v10  }
  0x31   :  { %388 = vmatpush3.bf16.msra.mxu0 %v452_v14 }
  0x32   :  { %433 = vmatpush3.bf16.msra.mxu1 %v452_v14  ;;  %389 = vmatprep.subr.bf16.mxu0 %v453_v15 }
  0x33   :  { %426 = vmatprep.subr.bf16.mxu1 %v453_v15 }
  0x34   :  { %70 = vperm.xlu0 %445, %v47_v13  }
  0x35   :  { %390 = vmatpush3.bf16.msra.mxu0 %v454_v16 }
  0x36   :  { %434 = vmatpush3.bf16.msra.mxu1 %v454_v16  ;;  %391 = vmatprep.subr.bf16.mxu0 %v455_v17 }
  0x37   :  { %427 = vmatprep.subr.bf16.mxu1 %v455_v17 }
  0x39   :  { %392 = vmatpush3.bf16.msra.mxu0 %v456_v18 }
  0x3a   :  { %435 = vmatpush3.bf16.msra.mxu1 %v456_v18  ;;  %393 = vmatprep.subr.bf16.mxu0 %v457_v19 }
  0x3b   :  { %428 = vmatprep.subr.bf16.mxu1 %v457_v19 }
  0x3d   :  { %394 = vmatpush3.bf16.msra.mxu0 %v458_v20 }
  0x3e   :  { %436 = vmatpush3.bf16.msra.mxu1 %v458_v20  ;;  %395 = vmatprep.subr.bf16.mxu0 %v459_v21 }
  0x3f   :  { %429 = vmatprep.subr.bf16.mxu1 %v459_v21 }
  0x41   :  { %396 = vmatpush3.bf16.msra.mxu0 %v460_v22 }
  0x42   :  { %437 = vmatpush3.bf16.msra.mxu1 %v460_v22  ;;  %397 = vmatprep.subr.bf16.mxu0 %v461_v23 }
  0x43   :  { %430 = vmatprep.subr.bf16.mxu1 %v461_v23 }
  0x45   :  { %398 = vmatpush3.bf16.msra.mxu0 %v462_v24 }
  0x46   :  { %438 = vmatpush3.bf16.msra.mxu1 %v462_v24 }
  0xa6   :  { %v65_v27 = vpop.permute.xlu1 %64 }
  0xa7   :  { %v53_v28 = vpop.permute.xlu0 %52  ;;  %vm80_vm0 = vcmp.eq.s32.totalorder %v49_v26, %v65_v27  ;;  %vm81_vm10 = vcmp.eq.s32.totalorder %v50_v29, %v65_v27 }
  0xa8   :  { %vm72_vm4 = vcmp.eq.s32.totalorder %v49_v26, %v53_v28  ;;  %vm73_vm8 = vcmp.eq.s32.totalorder %v50_v29, %v53_v28 }
  0xaa   :  { %v68_v30 = vpop.permute.xlu1 %67 }
  0xab   :  { %v56_v31 = vpop.permute.xlu0 %55  ;;  %vm82_vm1 = vcmp.eq.s32.totalorder %v49_v26, %v68_v30  ;;  %vm83_vm6 = vcmp.eq.s32.totalorder %v50_v29, %v68_v30 }
  0xac   :  { %vm74_vm2 = vcmp.eq.s32.totalorder %v49_v26, %v56_v31  ;;  %vm75_vm3 = vcmp.eq.s32.totalorder %v50_v29, %v56_v31  ;;  %vm592_vm5 = vmpackc.low %vm82_vm1, %vm80_vm0 }
  0xad   :  { %vm362_vm7 = vmpackc.low %vm74_vm2, %vm72_vm4 }
  0xae   :  { %vm360_vm9 = vmpackc.low %vm75_vm3, %vm73_vm8  ;;  %v62_v33 = vpop.permute.xlu1 %61 }
  0xaf   :  { %v59_v34 = vpop.permute.xlu0 %58  ;;  %361 = vmatprep.mubr.msk.bf16.mxu0 %vm360_vm9, %v516_v35  ;;  %vm368_vm11 = vmpackc.low %vm83_vm6, %vm81_vm10  ;;  %vm79_vm12 = vcmp.eq.s32.totalorder %v50_v29, %v62_v33  ;;  %vm78_vm1 = vcmp.eq.s32.totalorder %v49_v26, %v62_v33 }
  0xb0   :  { %vm77_vm13 = vcmp.eq.s32.totalorder %v50_v29, %v59_v34  ;;  %369 = vmatprep.mubr.msk.bf16.mxu1 %vm368_vm11, %v516_v35  ;;  %363 = vmatmul.mubr.msk.bf16.vlgmr.msra.gmra.mrb[0].mxu0 %vm362_vm7, %v516_v35  ;;  %vm76_vm2 = vcmp.eq.s32.totalorder %v49_v26, %v59_v34 }
  0xb1   :  { %vm364_vm14 = vmpackc.low %vm79_vm12, %vm77_vm13  ;;  %371 = vmatmul.mubr.msk.bf16.vlgmr.msra.gmra.mrb[0].mxu1 %vm592_vm5, %v516_v35 }
  0xb2   :  { %365 = vmatprep.mubr.msk.bf16.mxu0 %vm364_vm14, %v516_v35  ;;  %vm366_vm8 = vmpackc.low %vm78_vm1, %vm76_vm2 }
  0xb3   :  { %v71_v36 = vpop.permute.xlu0 %70 }
  0xb4   :  { %vm84_vm15 = vcmp.eq.s32.totalorder %v49_v26, %v71_v36  ;;  %vm85_vm0 = vcmp.eq.s32.totalorder %v50_v29, %v71_v36 }
  0xb5   :  { %vm372_vm3 = vmpackc.low %vm85_vm0, %vm85_vm0 }
  0xb6   :  { %373 = vmatprep.mubr.msk.bf16.mxu1 %vm372_vm3, %v516_v35  ;;  %vm374_vm4 = vmpackc.low %vm84_vm15, %vm84_vm15 }
  0xb8   :  { %367 = vmatmul.mubr.msk.bf16.gmra.mrb[4].mxu0 %vm366_vm8, %v516_v35 }
  0xb9   :  { %375 = vmatmul.mubr.msk.bf16.gmra.mrb[4].mxu1 %vm374_vm4, %v516_v35 }
 0x183   :  { %v399_v37 = vpop.f32.mrb[0].mxu0 }
 0x184   :  { %v411_v38 = vpop.f32.mrb[0].mxu1  ;;  %v400_v39 = vpop.f32.mrb[1].mxu0 }
 0x185   :  { %v401_v40 = vadd.f32 %v400_v39, %v399_v37  ;;  %v412_v41 = vpop.f32.mrb[1].mxu1  ;;  %v402_v42 = vpop.f32.mrb[2].mxu0 }
 0x186   :  { %v413_v43 = vadd.f32 %v412_v41, %v411_v38  ;;  %v414_v44 = vpop.f32.mrb[2].mxu1  ;;  %v403_v45 = vpop.f32.mrb[3].mxu0 }
 0x187   :  { %376 = vst [vmem:[%s622_s3 + $0x8] sm:$0xff] %v401_v40  ;;  %v404_v46 = vadd.f32 %v403_v45, %v402_v42  ;;  %v415_v47 = vpop.f32.mrb[3].mxu1 }
 0x188   :  { %380 = vst [vmem:[%s622_s3 + $0x28] sm:$0xff] %v413_v43  ;;  %v416_v48 = vadd.f32 %v415_v47, %v414_v44 }
 0x189   :  { %377 = vst [vmem:[%s622_s3 + $0x10] sm:$0xff] %v404_v46 }
 0x18a   :  { %381 = vst [vmem:[%s622_s3 + $0x30] sm:$0xff] %v416_v48 }
 0x18b   :  { %v405_v49 = vpop.f32.mrb[4].mxu0 }
 0x18c   :  { %v417_v50 = vpop.f32.mrb[4].mxu1  ;;  %v406_v51 = vpop.f32.mrb[5].mxu0 }
 0x18d   :  { %v407_v52 = vadd.f32 %v406_v51, %v405_v49  ;;  %v418_v53 = vpop.f32.mrb[5].mxu1  ;;  %v408_v54 = vpop.f32.mrb[6].mxu0 }
 0x18e   :  { %v419_v55 = vadd.f32 %v418_v53, %v417_v50  ;;  %v420_v56 = vpop.f32.mrb[6].mxu1  ;;  %v409_v57 = vpop.f32.mrb[7].mxu0 }
 0x18f   :  { %378 = vst [vmem:[%s622_s3 + $0x18] sm:$0xff] %v407_v52  ;;  %v410_v58 = vadd.f32 %v409_v57, %v408_v54  ;;  %v421_v59 = vpop.f32.mrb[7].mxu1 }
 0x190   :  { %382 = vst [vmem:[%s622_s3 + $0x38] sm:$0xff] %v419_v55 }
 0x191   :  { %379 = vst [vmem:[%s622_s3 + $0x20] sm:$0xff] %v410_v58 }
 0x192   :  { %328 = vsyncpa [#allocation3], 1 }
 0x193   :  { %329 = vsyncpa [#allocation5], 1 }

// kernel: decoder_rnn_forward.5
= control target key start
LH: loop header
LB: loop body
LE: loop exit
PB: predicated region body
PF: predicated region fallthrough
CT: control target
= control target key end

     0   :  { %v4848_v2 = vmov 0   ;;  %s4839_s0 = inlined_call_operand.vmem [shape: f32[8,8,128], index: 0, kind: input, shape index: {}]   ;;  %s4840_s1 = inlined_call_operand.vmem [shape: bf16[128,512], index: 1, kind: input, shape index: {}]   ;;  %s4841_s2 = inlined_call_operand.vmem [shape: bf16[128,512], index: 2, kind: input, shape index: {}]   ;;  %s4842_s3 = inlined_call_operand.vmem [shape: f32[1,512], index: 3, kind: input, shape index: {}]   ;;  %s4843_s4 = inlined_call_operand.vmem [shape: bf16[128,256], index: 4, kind: input, shape index: {}]   ;;  %s4844_s5 = inlined_call_operand.vmem [shape: f32[1,256], index: 5, kind: input, shape index: {}]   ;;  %s4845_s6 = inlined_call_operand.hbm [shape: f32[8,8,256], index: 6, kind: output, shape index: {}]  }
   0x1   :  { %v3463_v0 = vld [vmem:[%s4840_s1 + $0x4] ss:$16 sps:$4 sm:$0xff]   ;;  %v3465_v1 = vld [vmem:[%s4840_s1] ss:$16 sps:$4 sm:$0xff]   ;;  %283 = vmatprep.mubr.bf16.mxu1 %v4848_v2  ;;  %657 = vmatprep.mubr.bf16.mxu0 %v4848_v2  ;;  %v26_v33 = vld [vmem:[%s4839_s0 + $0x8] sm:$0xff] }
   0x2   :  { %251 = vmatprep.subr.bf16.mxu1 %v3463_v0  ;;  %v3857_v3 = vld [vmem:[%s4841_s2 + $0x4] ss:$16 sps:$4 sm:$0xff]   ;;  %v3862_v4 = vld [vmem:[%s4841_s2] ss:$16 sps:$4 sm:$0xff]   ;;  %v3513_v34 = vld [vmem:[%s4840_s1 + $0xc] ss:$16 sps:$4 sm:$0xff]  }
   0x3   :  { %252 = vmatpush1.bf16.msra.mxu1 %v3465_v1  ;;  %v3469_v5 = vld [vmem:[%s4840_s1 + $0x24] ss:$16 sps:$4 sm:$0xff]   ;;  %v3471_v6 = vld [vmem:[%s4840_s1 + $0x20] ss:$16 sps:$4 sm:$0xff]   ;;  %625 = vmatprep.subr.bf16.mxu0 %v3857_v3  ;;  %v3511_v37 = vld [vmem:[%s4840_s1 + $0x8] ss:$16 sps:$4 sm:$0xff]  }
   0x4   :  { %v3874_v7 = vld [vmem:[%s4841_s2 + $0x24] ss:$16 sps:$4 sm:$0xff]   ;;  %626 = vmatpush1.bf16.msra.mxu0 %v3862_v4  ;;  %253 = vmatprep.subr.bf16.mxu1 %v3469_v5  ;;  %v3880_v8 = vld [vmem:[%s4841_s2 + $0x20] ss:$16 sps:$4 sm:$0xff]   ;;  %v3516_v38 = vld [vmem:[%s4840_s1 + $0x2c] ss:$16 sps:$4 sm:$0xff]  }
   0x5   :  { %627 = vmatprep.subr.bf16.mxu0 %v3874_v7  ;;  %v3475_v9 = vld [vmem:[%s4840_s1 + $0x44] ss:$16 sps:$4 sm:$0xff]   ;;  %v3477_v10 = vld [vmem:[%s4840_s1 + $0x40] ss:$16 sps:$4 sm:$0xff]   ;;  %v3514_v39 = vld [vmem:[%s4840_s1 + $0x28] ss:$16 sps:$4 sm:$0xff]  }
   0x6   :  { %v3892_v11 = vld [vmem:[%s4841_s2 + $0x44] ss:$16 sps:$4 sm:$0xff]   ;;  %v3901_v13 = vld [vmem:[%s4841_s2 + $0x40] ss:$16 sps:$4 sm:$0xff]   ;;  %v28_v41 = vld [vmem:[%s4839_s0 + $0x18] sm:$0xff] }
   0x7   :  { %254 = vmatpush1.bf16.msra.mxu1 %v3471_v6  ;;  %v3481_v12 = vld [vmem:[%s4840_s1 + $0x64] ss:$16 sps:$4 sm:$0xff]   ;;  %v3483_v15 = vld [vmem:[%s4840_s1 + $0x60] ss:$16 sps:$4 sm:$0xff]   ;;  %v3519_v42 = vld [vmem:[%s4840_s1 + $0x4c] ss:$16 sps:$4 sm:$0xff]  }
   0x8   :  { %255 = vmatprep.subr.bf16.mxu1 %v3475_v9  ;;  %628 = vmatpush1.bf16.msra.mxu0 %v3880_v8  ;;  %v3907_v14 = vld [vmem:[%s4841_s2 + $0x64] ss:$16 sps:$4 sm:$0xff]   ;;  %v3919_v17 = vld [vmem:[%s4841_s2 + $0x60] ss:$16 sps:$4 sm:$0xff]   ;;  %v3517_v44 = vld [vmem:[%s4840_s1 + $0x48] ss:$16 sps:$4 sm:$0xff]  }
   0x9   :  { %629 = vmatprep.subr.bf16.mxu0 %v3892_v11  ;;  %v3487_v16 = vld [vmem:[%s4840_s1 + $0x84] ss:$16 sps:$4 sm:$0xff]   ;;  %v3489_v19 = vld [vmem:[%s4840_s1 + $0x80] ss:$16 sps:$4 sm:$0xff]   ;;  %v3522_v45 = vld [vmem:[%s4840_s1 + $0x6c] ss:$16 sps:$4 sm:$0xff]  }
   0xa   :  { %v3925_v18 = vld [vmem:[%s4841_s2 + $0x84] ss:$16 sps:$4 sm:$0xff]   ;;  %v3937_v21 = vld [vmem:[%s4841_s2 + $0x80] ss:$16 sps:$4 sm:$0xff]   ;;  %v3520_v46 = vld [vmem:[%s4840_s1 + $0x68] ss:$16 sps:$4 sm:$0xff]  }
   0xb   :  { %256 = vmatpush1.bf16.msra.mxu1 %v3477_v10  ;;  %v3493_v20 = vld [vmem:[%s4840_s1 + $0xa4] ss:$16 sps:$4 sm:$0xff]   ;;  %v3495_v23 = vld [vmem:[%s4840_s1 + $0xa0] ss:$16 sps:$4 sm:$0xff]   ;;  %v30_v48 = vld [vmem:[%s4839_s0 + $0x28] sm:$0xff] }
   0xc   :  { %257 = vmatprep.subr.bf16.mxu1 %v3481_v12  ;;  %630 = vmatpush1.bf16.msra.mxu0 %v3901_v13  ;;  %v3943_v22 = vld [vmem:[%s4841_s2 + $0xa4] ss:$16 sps:$4 sm:$0xff]   ;;  %v3955_v25 = vld [vmem:[%s4841_s2 + $0xa0] ss:$16 sps:$4 sm:$0xff]   ;;  %v3525_v49 = vld [vmem:[%s4840_s1 + $0x8c] ss:$16 sps:$4 sm:$0xff]  }
   0xd   :  { %631 = vmatprep.subr.bf16.mxu0 %v3907_v14  ;;  %v3499_v24 = vld [vmem:[%s4840_s1 + $0xc4] ss:$16 sps:$4 sm:$0xff]   ;;  %v3501_v27 = vld [vmem:[%s4840_s1 + $0xc0] ss:$16 sps:$4 sm:$0xff]   ;;  %v3523_v50 = vld [vmem:[%s4840_s1 + $0x88] ss:$16 sps:$4 sm:$0xff]  }
   0xe   :  { %v3961_v26 = vld [vmem:[%s4841_s2 + $0xc4] ss:$16 sps:$4 sm:$0xff]   ;;  %v3973_v29 = vld [vmem:[%s4841_s2 + $0xc0] ss:$16 sps:$4 sm:$0xff]   ;;  %v3528_v52 = vld [vmem:[%s4840_s1 + $0xac] ss:$16 sps:$4 sm:$0xff]  }
   0xf   :  { %258 = vmatpush1.bf16.msra.mxu1 %v3483_v15  ;;  %v3505_v28 = vld [vmem:[%s4840_s1 + $0xe4] ss:$16 sps:$4 sm:$0xff]   ;;  %v3507_v30 = vld [vmem:[%s4840_s1 + $0xe0] ss:$16 sps:$4 sm:$0xff]   ;;  %v3526_v53 = vld [vmem:[%s4840_s1 + $0xa8] ss:$16 sps:$4 sm:$0xff]  }
  0x10   :  { %259 = vmatprep.subr.bf16.mxu1 %v3487_v16  ;;  %632 = vmatpush1.bf16.msra.mxu0 %v3919_v17  ;;  %v3982_v31 = vld [vmem:[%s4841_s2 + $0xe4] ss:$16 sps:$4 sm:$0xff]   ;;  %v3997_v35 = vld [vmem:[%s4841_s2 + $0xe0] ss:$16 sps:$4 sm:$0xff]   ;;  %v32_v55 = vld [vmem:[%s4839_s0 + $0x38] sm:$0xff] }
  0x11   :  { %633 = vmatprep.subr.bf16.mxu0 %v3925_v18  ;;  %v25_v32 = vld [vmem:[%s4839_s0] sm:$0xff]  ;;  %v27_v40 = vld [vmem:[%s4839_s0 + $0x10] sm:$0xff]  ;;  %v3531_v56 = vld [vmem:[%s4840_s1 + $0xcc] ss:$16 sps:$4 sm:$0xff]  }
  0x12   :  { %v4000_v36 = vpack.c.bf16 %v26_v33, %v25_v32  ;;  %v4027_v43 = vpack.c.bf16 %v28_v41, %v27_v40  ;;  %v29_v47 = vld [vmem:[%s4839_s0 + $0x20] sm:$0xff]  ;;  %v31_v54 = vld [vmem:[%s4839_s0 + $0x30] sm:$0xff]  ;;  %v3529_v57 = vld [vmem:[%s4840_s1 + $0xc8] ss:$16 sps:$4 sm:$0xff]  }
  0x13   :  { %260 = vmatpush1.bf16.msra.mxu1 %v3489_v19  ;;  %v35_v51 = vpack.c.bf16 %v30_v48, %v29_v47  ;;  %v36_v58 = vpack.c.bf16 %v32_v55, %v31_v54  ;;  %v3534_v59 = vld [vmem:[%s4840_s1 + $0xec] ss:$16 sps:$4 sm:$0xff]   ;;  %v3532_v60 = vld [vmem:[%s4840_s1 + $0xe8] ss:$16 sps:$4 sm:$0xff]  }
  0x14   :  { %261 = vmatprep.subr.bf16.mxu1 %v3493_v20  ;;  %634 = vmatpush1.bf16.msra.mxu0 %v3937_v21  ;;  %v4090_v61 = vld [vmem:[%s4841_s2 + $0xc] ss:$16 sps:$4 sm:$0xff]   ;;  %v4097_v62 = vld [vmem:[%s4841_s2 + $0x8] ss:$16 sps:$4 sm:$0xff]  }
  0x15   :  { %635 = vmatprep.subr.bf16.mxu0 %v3943_v22  ;;  %v4103_v63 = vld [vmem:[%s4841_s2 + $0x2c] ss:$16 sps:$4 sm:$0xff]   ;;  %v4114_v0 = vld [vmem:[%s4841_s2 + $0x28] ss:$16 sps:$4 sm:$0xff]  }
  0x17   :  { %262 = vmatpush1.bf16.msra.mxu1 %v3495_v23 }
  0x18   :  { %263 = vmatprep.subr.bf16.mxu1 %v3499_v24  ;;  %636 = vmatpush1.bf16.msra.mxu0 %v3955_v25 }
  0x19   :  { %637 = vmatprep.subr.bf16.mxu0 %v3961_v26 }
  0x1b   :  { %264 = vmatpush1.bf16.msra.mxu1 %v3501_v27 }
  0x1c   :  { %265 = vmatprep.subr.bf16.mxu1 %v3505_v28  ;;  %638 = vmatpush1.bf16.msra.mxu0 %v3973_v29 }
  0x1d   :  { %639 = vmatprep.subr.bf16.mxu0 %v3982_v31 }
  0x1f   :  { %266 = vmatpush1.bf16.msra.mxu1 %v3507_v30 }
  0x20   :  { %324 = vmatprep.subr.bf16.mxu1 %v3513_v34  ;;  %640 = vmatpush1.bf16.msra.mxu0 %v3997_v35 }
  0x21   :  { %934 = vmatprep.subr.bf16.mxu0 %v3857_v3 }
  0x22   :  { %284 = vmatmul.mubr.bf16.vlgmr.msra.gmra.mrb[0].mxu1 %v4000_v36 }
  0x23   :  { %325 = vmatpush1.bf16.msra.mxu1 %v3511_v37  ;;  %293 = vmatprep.mubr.bf16.mxu1 %v4848_v2 }
  0x24   :  { %658 = vmatmul.mubr.bf16.vlgmr.msra.gmra.mrb[0].mxu0 %v4848_v2  ;;  %326 = vmatprep.subr.bf16.mxu1 %v3516_v38 }
  0x25   :  { %935 = vmatpush1.bf16.msra.mxu0 %v3862_v4  ;;  %966 = vmatprep.mubr.bf16.mxu0 %v4848_v2 }
  0x26   :  { %936 = vmatprep.subr.bf16.mxu0 %v3874_v7 }
  0x27   :  { %327 = vmatpush1.bf16.msra.mxu1 %v3514_v39 }
  0x28   :  { %328 = vmatprep.subr.bf16.mxu1 %v3519_v42 }
  0x29   :  { %937 = vmatpush1.bf16.msra.mxu0 %v3880_v8 }
  0x2a   :  { %294 = vmatmul.mubr.bf16.gmra.mrb[4].mxu1 %v4027_v43  ;;  %938 = vmatprep.subr.bf16.mxu0 %v3892_v11 }
  0x2b   :  { %329 = vmatpush1.bf16.msra.mxu1 %v3517_v44  ;;  %303 = vmatprep.mubr.bf16.mxu1 %v4848_v2 }
  0x2c   :  { %330 = vmatprep.subr.bf16.mxu1 %v3522_v45 }
  0x2d   :  { %939 = vmatpush1.bf16.msra.mxu0 %v3901_v13 }
  0x2e   :  { %940 = vmatprep.subr.bf16.mxu0 %v3907_v14 }
  0x2f   :  { %331 = vmatpush1.bf16.msra.mxu1 %v3520_v46 }
  0x30   :  { %332 = vmatprep.subr.bf16.mxu1 %v3525_v49 }
  0x31   :  { %941 = vmatpush1.bf16.msra.mxu0 %v3919_v17 }
  0x32   :  { %304 = vmatmul.mubr.bf16.gmra.mrb[8].mxu1 %v35_v51  ;;  %942 = vmatprep.subr.bf16.mxu0 %v3925_v18 }
  0x33   :  { %333 = vmatpush1.bf16.msra.mxu1 %v3523_v50  ;;  %313 = vmatprep.mubr.bf16.mxu1 %v4848_v2 }
  0x34   :  { %334 = vmatprep.subr.bf16.mxu1 %v3528_v52 }
  0x35   :  { %943 = vmatpush1.bf16.msra.mxu0 %v3937_v21 }
  0x36   :  { %944 = vmatprep.subr.bf16.mxu0 %v3943_v22 }
  0x37   :  { %335 = vmatpush1.bf16.msra.mxu1 %v3526_v53 }
  0x38   :  { %336 = vmatprep.subr.bf16.mxu1 %v3531_v56 }
  0x39   :  { %945 = vmatpush1.bf16.msra.mxu0 %v3955_v25 }
  0x3a   :  { %314 = vmatmul.mubr.bf16.gmra.mrb[12].mxu1 %v36_v58  ;;  %946 = vmatprep.subr.bf16.mxu0 %v3961_v26 }
  0x3b   :  { %337 = vmatpush1.bf16.msra.mxu1 %v3529_v57  ;;  %356 = vmatprep.mubr.bf16.mxu1 %v4848_v2 }
  0x3c   :  { %338 = vmatprep.subr.bf16.mxu1 %v3534_v59 }
  0x3d   :  { %947 = vmatpush1.bf16.msra.mxu0 %v3973_v29 }
  0x3e   :  { %948 = vmatprep.subr.bf16.mxu0 %v3982_v31 }
  0x3f   :  { %339 = vmatpush1.bf16.msra.mxu1 %v3532_v60 }
  0x40   :  { %666 = vmatprep.subr.bf16.mxu1 %v4090_v61 }
  0x41   :  { %949 = vmatpush1.bf16.msra.mxu0 %v3997_v35 }
  0x42   :  { %357 = vmatmul.mubr.bf16.vlgmr.msra.gmra.mrb[16].mxu1 %v4000_v36  ;;  %1244 = vmatprep.subr.bf16.mxu0 %v3857_v3 }
  0x43   :  { %667 = vmatpush1.bf16.msra.mxu1 %v4097_v62  ;;  %366 = vmatprep.mubr.bf16.mxu1 %v4848_v2 }
  0x44   :  { %11 = vsyncpa [#allocation5], 0  ;;  %668 = vmatprep.subr.bf16.mxu1 %v4103_v63  ;;  %v4121_v1 = vld [vmem:[%s4841_s2 + $0x4c] ss:$16 sps:$4 sm:$0xff]   ;;  %v4127_v3 = vld [vmem:[%s4841_s2 + $0x48] ss:$16 sps:$4 sm:$0xff]   ;;  %v71_v24 = vlaneseq }
  0x45   :  { %v4133_v5 = vld [vmem:[%s4841_s2 + $0x6c] ss:$16 sps:$4 sm:$0xff]   ;;  %v4140_v6 = vld [vmem:[%s4841_s2 + $0x68] ss:$16 sps:$4 sm:$0xff]   ;;  %v69_v30 = vld [vmem:[%s4842_s3] sm:$0xf] }
  0x46   :  { %v4147_v9 = vld [vmem:[%s4841_s2 + $0x8c] ss:$16 sps:$4 sm:$0xff]   ;;  %v4153_v10 = vld [vmem:[%s4841_s2 + $0x88] ss:$16 sps:$4 sm:$0xff]   ;;  %v4214_v27 = vshrl.u32 %v71_v24, 7 }
  0x47   :  { %669 = vmatpush1.bf16.msra.mxu1 %v4114_v0  ;;  %v4159_v12 = vld [vmem:[%s4841_s2 + $0xac] ss:$16 sps:$4 sm:$0xff]   ;;  %v4165_v15 = vld [vmem:[%s4841_s2 + $0xa8] ss:$16 sps:$4 sm:$0xff]  }
  0x48   :  { %670 = vmatprep.subr.bf16.mxu1 %v4121_v1  ;;  %v4172_v16 = vld [vmem:[%s4841_s2 + $0xcc] ss:$16 sps:$4 sm:$0xff]   ;;  %v4178_v19 = vld [vmem:[%s4841_s2 + $0xc8] ss:$16 sps:$4 sm:$0xff]   ;;  %4852 = vst [vmem:[#allocation7_spill] sm:$0xff] %v4214_v27  ;;  %v4847_v28 = vsub.s32 0, %v4214_v27 }
  0x49   :  { %v4184_v20 = vld [vmem:[%s4841_s2 + $0xec] ss:$16 sps:$4 sm:$0xff]   ;;  %v4190_v23 = vld [vmem:[%s4841_s2 + $0xe8] ss:$16 sps:$4 sm:$0xff]   ;;  %v4846_v32 = vsub.s32 1, %v4214_v27 }
  0x4a   :  { %367 = vmatmul.mubr.bf16.gmra.mrb[20].mxu1 %v4027_v43  ;;  %v74_v33 = vrot.slane %v69_v30, %v4847_v28 }
  0x4b   :  { %671 = vmatpush1.bf16.msra.mxu1 %v4127_v3  ;;  %376 = vmatprep.mubr.bf16.mxu1 %v4848_v2  ;;  %v78_v34 = vrot.slane %v69_v30, %v4846_v32 }
  0x4c   :  { %672 = vmatprep.subr.bf16.mxu1 %v4133_v5 }
  0x4f   :  { %673 = vmatpush1.bf16.msra.mxu1 %v4140_v6 }
  0x50   :  { %674 = vmatprep.subr.bf16.mxu1 %v4147_v9 }
  0x52   :  { %377 = vmatmul.mubr.bf16.gmra.mrb[24].mxu1 %v35_v51 }
  0x53   :  { %675 = vmatpush1.bf16.msra.mxu1 %v4153_v10  ;;  %386 = vmatprep.mubr.bf16.mxu1 %v4848_v2 }
  0x54   :  { %676 = vmatprep.subr.bf16.mxu1 %v4159_v12 }
  0x57   :  { %677 = vmatpush1.bf16.msra.mxu1 %v4165_v15 }
  0x58   :  { %678 = vmatprep.subr.bf16.mxu1 %v4172_v16 }
  0x5a   :  { %387 = vmatmul.mubr.bf16.gmra.mrb[28].mxu1 %v36_v58 }
  0x5b   :  { %679 = vmatpush1.bf16.msra.mxu1 %v4178_v19  ;;  %698 = vmatprep.mubr.bf16.mxu1 %v4848_v2 }
  0x5c   :  { %680 = vmatprep.subr.bf16.mxu1 %v4184_v20 }
  0x5f   :  { %681 = vmatpush1.bf16.msra.mxu1 %v4190_v23 }
  0x60   :  { %975 = vmatprep.subr.bf16.mxu1 %v4090_v61 }
  0x62   :  { %699 = vmatmul.mubr.bf16.vlgmr.msra.gmra.mrb[32].mxu1 %v4848_v2 }
  0x63   :  { %976 = vmatpush1.bf16.msra.mxu1 %v4097_v62  ;;  %1007 = vmatprep.mubr.bf16.mxu1 %v4848_v2 }
  0x64   :  { %977 = vmatprep.subr.bf16.mxu1 %v4103_v63 }
  0x67   :  { %978 = vmatpush1.bf16.msra.mxu1 %v4114_v0 }
  0x68   :  { %979 = vmatprep.subr.bf16.mxu1 %v4121_v1 }
  0x6b   :  { %980 = vmatpush1.bf16.msra.mxu1 %v4127_v3 }
  0x6c   :  { %981 = vmatprep.subr.bf16.mxu1 %v4133_v5 }
  0x6f   :  { %982 = vmatpush1.bf16.msra.mxu1 %v4140_v6 }
  0x70   :  { %983 = vmatprep.subr.bf16.mxu1 %v4147_v9 }
  0x73   :  { %984 = vmatpush1.bf16.msra.mxu1 %v4153_v10 }
  0x74   :  { %985 = vmatprep.subr.bf16.mxu1 %v4159_v12 }
  0x77   :  { %986 = vmatpush1.bf16.msra.mxu1 %v4165_v15 }
  0x78   :  { %987 = vmatprep.subr.bf16.mxu1 %v4172_v16 }
  0x7b   :  { %988 = vmatpush1.bf16.msra.mxu1 %v4178_v19 }
  0x7c   :  { %989 = vmatprep.subr.bf16.mxu1 %v4184_v20 }
  0x7f   :  { %990 = vmatpush1.bf16.msra.mxu1 %v4190_v23 }
  0x80   :  { %1285 = vmatprep.subr.bf16.mxu1 %v4090_v61 }
  0xf5   :  { %v285_v36 = vpop.f32.mrb[0].mxu1 }
  0xf6   :  { %v286_v37 = vadd.f32 %v285_v36, %v74_v33  ;;  %v287_v38 = vpop.f32.mrb[1].mxu1 }
  0xf7   :  { %v288_v39 = vadd.f32 %v287_v38, %v78_v34  ;;  %v289_v40 = vpop.f32.mrb[2].mxu1  ;;  %v659_v41 = vpop.f32.mrb[0].mxu0 }
  0xf8   :  { %v4225_v42 = vadd.f32 %v289_v40, %v74_v33  ;;  %v707_v43 = vadd.f32 %v659_v41, %v286_v37  ;;  %v291_v44 = vpop.f32.mrb[3].mxu1  ;;  %v661_v45 = vpop.f32.mrb[1].mxu0 }
  0xf9   :  { %v4227_v46 = vadd.f32 %v291_v44, %v78_v34  ;;  %v708_v47 = vadd.f32 %v661_v45, %v288_v39  ;;  %v663_v48 = vpop.f32.mrb[2].mxu0 }
  0xfa   :  { %v664_v49 = vpop.f32.mrb[3].mxu0 }
  0xfd   :  { %v295_v50 = vpop.f32.mrb[4].mxu1 }
  0xfe   :  { %v4229_v51 = vadd.f32 %v295_v50, %v74_v33  ;;  %v297_v52 = vpop.f32.mrb[5].mxu1 }
  0xff   :  { %v4231_v53 = vadd.f32 %v297_v52, %v78_v34  ;;  %v299_v54 = vpop.f32.mrb[6].mxu1 }
 0x100   :  { %v4233_v55 = vadd.f32 %v299_v54, %v74_v33  ;;  %v301_v56 = vpop.f32.mrb[7].mxu1  ;;  %v81_v54 = vsub.s32 2, %v4214_v27 }
 0x101   :  { %v4235_v57 = vadd.f32 %v301_v56, %v78_v34  ;;  %v85_v56 = vsub.s32 3, %v4214_v27 }
 0x105   :  { %v305_v58 = vpop.f32.mrb[8].mxu1 }
 0x106   :  { %v4237_v59 = vadd.f32 %v305_v58, %v74_v33  ;;  %v307_v60 = vpop.f32.mrb[9].mxu1 }
 0x107   :  { %v4239_v24 = vadd.f32 %v307_v60, %v78_v34  ;;  %v309_v36 = vpop.f32.mrb[10].mxu1  ;;  %v82_v60 = vrot.slane %v69_v30, %v81_v54 }
 0x108   :  { %4853 = vst [vmem:[#allocation8_spill] sm:$0xff] %v4237_v59  ;;  %v4241_v37 = vadd.f32 %v309_v36, %v74_v33  ;;  %v311_v38 = vpop.f32.mrb[11].mxu1 }
 0x109   :  { %4854 = vst [vmem:[#allocation9_spill] sm:$0xff] %v4239_v24  ;;  %v4243_v39 = vadd.f32 %v311_v38, %v78_v34  ;;  %v86_v38 = vrot.slane %v69_v30, %v85_v56  ;;  %v3195_v30 = vmul.f32 -1.442695, %v707_v43 }
 0x10a   :  { %4855 = vst [vmem:[#allocation10_spill] sm:$0xff] %v4241_v37 }
 0x10b   :  { %4856 = vst [vmem:[#allocation11_spill] sm:$0xff] %v4243_v39 }
 0x10d   :  { %v315_v40 = vpop.f32.mrb[12].mxu1 }
 0x10e   :  { %v4245_v41 = vadd.f32 %v315_v40, %v74_v33  ;;  %v317_v44 = vpop.f32.mrb[13].mxu1 }
 0x10f   :  { %v4247_v45 = vadd.f32 %v317_v44, %v78_v34  ;;  %v319_v48 = vpop.f32.mrb[14].mxu1 }
 0x110   :  { %4857 = vst [vmem:[#allocation12_spill] sm:$0xff] %v4245_v41  ;;  %v4249_v49 = vadd.f32 %v319_v48, %v74_v33  ;;  %v321_v50 = vpop.f32.mrb[15].mxu1 }
 0x111   :  { %4858 = vst [vmem:[#allocation13_spill] sm:$0xff] %v4247_v45  ;;  %v4251_v52 = vadd.f32 %v321_v50, %v78_v34 }
 0x112   :  { %4859 = vst [vmem:[#allocation14_spill] sm:$0xff] %v4249_v49  ;;  %v3196_v49 = vmul.f32 -1.442695, %v708_v47 }
 0x113   :  { %4860 = vst [vmem:[#allocation15_spill] sm:$0xff] %v4251_v52 }
 0x114   :  { %3655 = vpow2.f32 %v3196_v49 }
 0x115   :  { %v358_v58 = vpop.f32.mrb[16].mxu1  ;;  %3657 = vpow2.f32 %v3195_v30 }
 0x116   :  { %v360_v36 = vpop.f32.mrb[17].mxu1 }
 0x117   :  { %v362_v32 = vpop.f32.mrb[18].mxu1 }
 0x118   :  { %v4255_v40 = vadd.f32 %v362_v32, %v82_v60  ;;  %v364_v28 = vpop.f32.mrb[19].mxu1 }
 0x119   :  { %v4257_v44 = vadd.f32 %v364_v28, %v86_v38 }
 0x11d   :  { %v368_v2 = vpop.f32.mrb[20].mxu1 }
 0x11e   :  { %v4259_v33 = vadd.f32 %v368_v2, %v82_v60  ;;  %v370_v48 = vpop.f32.mrb[21].mxu1  ;;  %v3656_v47 = vpop.eup %3655 }
 0x11f   :  { %v4261_v34 = vadd.f32 %v370_v48, %v86_v38  ;;  %v372_v50 = vpop.f32.mrb[22].mxu1  ;;  %v3658_v30 = vpop.eup %3657 }
 0x120   :  { %v4263_v52 = vadd.f32 %v372_v50, %v82_v60  ;;  %v374_v27 = vpop.f32.mrb[23].mxu1 }
 0x121   :  { %v4265_v54 = vadd.f32 %v374_v27, %v86_v38 }
 0x123   :  { %4861 = vst [vmem:[#allocation16_spill] sm:$0xff] %v4265_v54 }
 0x125   :  { %v378_v32 = vpop.f32.mrb[24].mxu1 }
 0x126   :  { %v4267_v56 = vadd.f32 %v378_v32, %v82_v60  ;;  %v380_v28 = vpop.f32.mrb[25].mxu1 }
 0x127   :  { %v4269_v45 = vadd.f32 %v380_v28, %v86_v38  ;;  %v382_v2 = vpop.f32.mrb[26].mxu1 }
 0x128   :  { %4862 = vst [vmem:[#allocation17_spill] sm:$0xff] %v4267_v56  ;;  %v4271_v41 = vadd.f32 %v382_v2, %v82_v60  ;;  %v384_v48 = vpop.f32.mrb[27].mxu1  ;;  %v714_v2 = vadd.f32 1.0, %v3658_v30  ;;  %v361_v56 = vadd.f32 %v360_v36, %v86_v38 }
 0x129   :  { %4863 = vst [vmem:[#allocation18_spill] sm:$0xff] %v4269_v45  ;;  %v4273_v39 = vadd.f32 %v384_v48, %v86_v38  ;;  %v720_v45 = vadd.f32 1.0, %v3656_v47 }
 0x12a   :  { %4864 = vst [vmem:[#allocation19_spill] sm:$0xff] %v4271_v41  ;;  %v359_v41 = vadd.f32 %v358_v58, %v82_v60 }
 0x12b   :  { %4865 = vst [vmem:[#allocation20_spill] sm:$0xff] %v4273_v39  ;;  %3659 = vrcp.f32 %v720_v45 }
 0x12c   :  { %3661 = vrcp.f32 %v714_v2 }
 0x12d   :  { %v388_v50 = vpop.f32.mrb[28].mxu1 }
 0x12e   :  { %v4275_v37 = vadd.f32 %v388_v50, %v82_v60  ;;  %v390_v27 = vpop.f32.mrb[29].mxu1 }
 0x12f   :  { %v4277_v43 = vadd.f32 %v390_v27, %v86_v38  ;;  %v392_v49 = vpop.f32.mrb[30].mxu1 }
 0x130   :  { %4866 = vst [vmem:[#allocation21_spill] sm:$0xff] %v4275_v37  ;;  %v4279_v32 = vadd.f32 %v392_v49, %v82_v60  ;;  %v394_v24 = vpop.f32.mrb[31].mxu1 }
 0x131   :  { %4867 = vst [vmem:[#allocation22_spill] sm:$0xff] %v4277_v43  ;;  %v4281_v28 = vadd.f32 %v394_v24, %v86_v38 }
 0x132   :  { %4868 = vst [vmem:[#allocation23_spill] sm:$0xff] %v4279_v32 }
 0x133   :  { %4869 = vst [vmem:[#allocation24_spill] sm:$0xff] %v4281_v28 }
 0x135   :  { %v700_v48 = vpop.f32.mrb[32].mxu1  ;;  %v3660_v49 = vpop.eup %3659 }
 0x136   :  { %v709_v39 = vadd.f32 %v700_v48, %v359_v41  ;;  %v702_v50 = vpop.f32.mrb[33].mxu1  ;;  %v3662_v32 = vpop.eup %3661  ;;  %v730_v24 = vmul.f32 0.0, %v3660_v49 }
 0x137   :  { %v710_v37 = vadd.f32 %v702_v50, %v361_v56  ;;  %v704_v59 = vpop.f32.mrb[34].mxu1 }
 0x138   :  { %3663 = vtanh.f32 %v709_v39  ;;  %v705_v27 = vpop.f32.mrb[35].mxu1 }
 0x139   :  { %v3197_v43 = vmul.f32 -1.442695, %v710_v37  ;;  %v4870_v37 = vmov 0   ;;  %v4444_v27 = vld [vmem:[%s4841_s2 + $0xe0] ss:$16 sps:$4 sm:$0xff]  }
 0x13b   :  { %3665 = vpow2.f32 %v3197_v43 }
 0x142   :  { %v3664_v54 = vpop.eup %3663 }
 0x143   :  { %v731_v28 = vmul.f32 %v3664_v54, %v3662_v32 }
 0x145   :  { %v3666_v47 = vpop.eup %3665  ;;  %v4283_v30 = vadd.f32 %v731_v28, %v730_v24 }
 0x146   :  { %v727_v58 = vadd.f32 1.0, %v3666_v47 }
 0x147   :  { %3667 = vtanh.f32 %v4283_v30 }
 0x148   :  { %3669 = vrcp.f32 %v727_v58 }
 0x151   :  { %v3668_v41 = vpop.eup %3667 }
 0x152   :  { %v3670_v45 = vpop.eup %3669 }
 0x153   :  { %v4286_v60 = vmul.f32 %v3670_v45, %v3668_v41 }
 0x155   :  { %v741_v59 = vpack.c.bf16 %v4286_v60, %v4286_v60 }
 0x157   :  { %967 = vmatmul.mubr.bf16.vlgmr.msra.gmra.mrb[4].mxu0 %v741_v59  ;;  %1008 = vmatmul.mubr.bf16.vlgmr.msra.gmra.mrb[36].mxu1 %v741_v59 }
 0x158   :  { %1245 = vmatpush1.bf16.msra.mxu0 %v3862_v4  ;;  %1286 = vmatpush1.bf16.msra.mxu1 %v4097_v62 }
 0x159   :  { %1246 = vmatprep.subr.bf16.mxu0 %v3874_v7  ;;  %1287 = vmatprep.subr.bf16.mxu1 %v4103_v63 }
 0x15a   :  { %1276 = vmatprep.mubr.bf16.mxu0 %v4870_v37  ;;  %1317 = vmatprep.mubr.bf16.mxu1 %v4870_v37 }
 0x15c   :  { %1247 = vmatpush1.bf16.msra.mxu0 %v3880_v8  ;;  %1288 = vmatpush1.bf16.msra.mxu1 %v4114_v0 }
 0x15d   :  { %1248 = vmatprep.subr.bf16.mxu0 %v3892_v11  ;;  %1289 = vmatprep.subr.bf16.mxu1 %v4121_v1 }
 0x160   :  { %1249 = vmatpush1.bf16.msra.mxu0 %v3901_v13  ;;  %1290 = vmatpush1.bf16.msra.mxu1 %v4127_v3 }
 0x161   :  { %1250 = vmatprep.subr.bf16.mxu0 %v3907_v14  ;;  %1291 = vmatprep.subr.bf16.mxu1 %v4133_v5 }
 0x164   :  { %1251 = vmatpush1.bf16.msra.mxu0 %v3919_v17  ;;  %1292 = vmatpush1.bf16.msra.mxu1 %v4140_v6 }
 0x165   :  { %1252 = vmatprep.subr.bf16.mxu0 %v3925_v18  ;;  %1293 = vmatprep.subr.bf16.mxu1 %v4147_v9 }
 0x168   :  { %1253 = vmatpush1.bf16.msra.mxu0 %v3937_v21  ;;  %1294 = vmatpush1.bf16.msra.mxu1 %v4153_v10 }
 0x169   :  { %1254 = vmatprep.subr.bf16.mxu0 %v3943_v22  ;;  %1295 = vmatprep.subr.bf16.mxu1 %v4159_v12 }
 0x16c   :  { %1255 = vmatpush1.bf16.msra.mxu0 %v3955_v25  ;;  %1296 = vmatpush1.bf16.msra.mxu1 %v4165_v15 }
 0x16d   :  { %1256 = vmatprep.subr.bf16.mxu0 %v3961_v26  ;;  %1297 = vmatprep.subr.bf16.mxu1 %v4172_v16 }
 0x170   :  { %1257 = vmatpush1.bf16.msra.mxu0 %v3973_v29  ;;  %1298 = vmatpush1.bf16.msra.mxu1 %v4178_v19 }
 0x171   :  { %1258 = vmatprep.subr.bf16.mxu0 %v3982_v31  ;;  %1299 = vmatprep.subr.bf16.mxu1 %v4184_v20 }
 0x174   :  { %1259 = vmatpush1.bf16.msra.mxu0 %v3997_v35  ;;  %1300 = vmatpush1.bf16.msra.mxu1 %v4190_v23 }
 0x175   :  { %1595 = vmatprep.subr.bf16.mxu1 %v4090_v61 }
 0x22a   :  { %v968_v4 = vpop.f32.mrb[4].mxu0  ;;  %v1009_v7 = vpop.f32.mrb[36].mxu1 }
 0x22b   :  { %v1016_v8 = vadd.f32 %v968_v4, %v4225_v42  ;;  %v1018_v11 = vadd.f32 %v1009_v7, %v4255_v40  ;;  %v970_v13 = vpop.f32.mrb[5].mxu0  ;;  %v1011_v14 = vpop.f32.mrb[37].mxu1 }
 0x22c   :  { %v1017_v17 = vadd.f32 %v970_v13, %v4227_v46  ;;  %v1019_v18 = vadd.f32 %v1011_v14, %v4257_v44  ;;  %v972_v21 = vpop.f32.mrb[6].mxu0  ;;  %v1013_v22 = vpop.f32.mrb[38].mxu1 }
 0x22d   :  { %v3230_v25 = vmul.f32 -1.442695, %v1016_v8  ;;  %v973_v26 = vpop.f32.mrb[7].mxu0  ;;  %v1014_v29 = vpop.f32.mrb[39].mxu1 }
 0x22e   :  { %v3231_v31 = vmul.f32 -1.442695, %v1017_v17  ;;  %v3232_v35 = vmul.f32 -1.442695, %v1019_v18 }
 0x22f   :  { %3671 = vpow2.f32 %v3230_v25 }
 0x230   :  { %3673 = vpow2.f32 %v3231_v31 }
 0x231   :  { %3675 = vpow2.f32 %v3232_v35 }
 0x232   :  { %3677 = vtanh.f32 %v1018_v11 }
 0x239   :  { %v3672_v61 = vpop.eup %3671 }
 0x23a   :  { %v3674_v39 = vpop.eup %3673  ;;  %v1023_v42 = vadd.f32 1.0, %v3672_v61 }
 0x23b   :  { %v1029_v36 = vadd.f32 1.0, %v3674_v39  ;;  %v3676_v46 = vpop.eup %3675 }
 0x23c   :  { %3679 = vrcp.f32 %v1023_v42  ;;  %v3678_v38 = vpop.eup %3677  ;;  %v1036_v56 = vadd.f32 1.0, %v3676_v46  ;;  %v4482_v46 = vld [vmem:[%s4841_s2 + $0xc] ss:$16 sps:$4 sm:$0xff]  }
 0x23d   :  { %3681 = vrcp.f32 %v1029_v36 }
 0x23e   :  { %3683 = vrcp.f32 %v1036_v56  ;;  %v4511_v56 = vld [vmem:[%s4841_s2 + $0x48] ss:$16 sps:$4 sm:$0xff]  }
 0x246   :  { %v3680_v40 = vpop.eup %3679 }
 0x247   :  { %v3682_v44 = vpop.eup %3681  ;;  %v1040_v54 = vmul.f32 %v3680_v40, %v3678_v38  ;;  %v4487_v38 = vld [vmem:[%s4841_s2 + $0x8] ss:$16 sps:$4 sm:$0xff]   ;;  %v4494_v40 = vld [vmem:[%s4841_s2 + $0x2c] ss:$16 sps:$4 sm:$0xff]  }
 0x248   :  { %v1039_v43 = vmul.f32 %v3682_v44, %v4283_v30  ;;  %v3684_v28 = vpop.eup %3683  ;;  %v4499_v44 = vld [vmem:[%s4841_s2 + $0x28] ss:$16 sps:$4 sm:$0xff]  }
 0x24a   :  { %v4328_v32 = vadd.f32 %v1040_v54, %v1039_v43  ;;  %v4506_v54 = vld [vmem:[%s4841_s2 + $0x4c] ss:$16 sps:$4 sm:$0xff]  }
 0x24b   :  { %v4518_v43 = vld [vmem:[%s4841_s2 + $0x6c] ss:$16 sps:$4 sm:$0xff]  }
 0x24c   :  { %3685 = vtanh.f32 %v4328_v32 }
 0x256   :  { %v3686_v2 = vpop.eup %3685 }
 0x257   :  { %v4331_v48 = vmul.f32 %v3686_v2, %v3684_v28  ;;  %v4530_v28 = vld [vmem:[%s4841_s2 + $0x8c] ss:$16 sps:$4 sm:$0xff]   ;;  %v4535_v2 = vld [vmem:[%s4841_s2 + $0x88] ss:$16 sps:$4 sm:$0xff]  }
 0x259   :  { %v1051_v50 = vpack.c.bf16 %v4331_v48, %v4331_v48 }
 0x25b   :  { %1277 = vmatmul.mubr.bf16.vlgmr.msra.gmra.mrb[8].mxu0 %v1051_v50  ;;  %1318 = vmatmul.mubr.bf16.vlgmr.msra.gmra.mrb[40].mxu1 %v1051_v50  ;;  %v4541_v50 = vld [vmem:[%s4841_s2 + $0xac] ss:$16 sps:$4 sm:$0xff]  }
 0x25c   :  { %1596 = vmatpush1.bf16.msra.mxu1 %v4097_v62  ;;  %1586 = vmatprep.mubr.bf16.mxu0 %v4870_v37  ;;  %v4355_v62 = vld [vmem:[%s4841_s2 + $0x4] ss:$16 sps:$4 sm:$0xff]  }
 0x25d   :  { %1597 = vmatprep.subr.bf16.mxu1 %v4103_v63  ;;  %1627 = vmatprep.mubr.bf16.mxu1 %v4870_v37  ;;  %v4360_v63 = vld [vmem:[%s4841_s2] ss:$16 sps:$4 sm:$0xff]  }
 0x25e   :  { %1554 = vmatprep.subr.bf16.mxu0 %v4355_v62 }
 0x25f   :  { %1555 = vmatpush1.bf16.msra.mxu0 %v4360_v63 }
 0x260   :  { %1598 = vmatpush1.bf16.msra.mxu1 %v4114_v0  ;;  %v4367_v0 = vld [vmem:[%s4841_s2 + $0x24] ss:$16 sps:$4 sm:$0xff]  }
 0x261   :  { %1599 = vmatprep.subr.bf16.mxu1 %v4121_v1  ;;  %v4372_v1 = vld [vmem:[%s4841_s2 + $0x20] ss:$16 sps:$4 sm:$0xff]   ;;  %1556 = vmatprep.subr.bf16.mxu0 %v4367_v0 }
 0x263   :  { %1557 = vmatpush1.bf16.msra.mxu0 %v4372_v1 }
 0x264   :  { %1600 = vmatpush1.bf16.msra.mxu1 %v4127_v3  ;;  %v4379_v3 = vld [vmem:[%s4841_s2 + $0x44] ss:$16 sps:$4 sm:$0xff]  }
 0x265   :  { %1601 = vmatprep.subr.bf16.mxu1 %v4133_v5  ;;  %v4384_v5 = vld [vmem:[%s4841_s2 + $0x40] ss:$16 sps:$4 sm:$0xff]   ;;  %1558 = vmatprep.subr.bf16.mxu0 %v4379_v3 }
 0x267   :  { %1559 = vmatpush1.bf16.msra.mxu0 %v4384_v5 }
 0x268   :  { %1602 = vmatpush1.bf16.msra.mxu1 %v4140_v6  ;;  %v4391_v6 = vld [vmem:[%s4841_s2 + $0x64] ss:$16 sps:$4 sm:$0xff]  }
 0x269   :  { %1603 = vmatprep.subr.bf16.mxu1 %v4147_v9  ;;  %v4396_v9 = vld [vmem:[%s4841_s2 + $0x60] ss:$16 sps:$4 sm:$0xff]   ;;  %1560 = vmatprep.subr.bf16.mxu0 %v4391_v6 }
 0x26b   :  { %1561 = vmatpush1.bf16.msra.mxu0 %v4396_v9 }
 0x26c   :  { %1604 = vmatpush1.bf16.msra.mxu1 %v4153_v10  ;;  %v4403_v10 = vld [vmem:[%s4841_s2 + $0x84] ss:$16 sps:$4 sm:$0xff]  }
 0x26d   :  { %1605 = vmatprep.subr.bf16.mxu1 %v4159_v12  ;;  %v4408_v12 = vld [vmem:[%s4841_s2 + $0x80] ss:$16 sps:$4 sm:$0xff]   ;;  %1562 = vmatprep.subr.bf16.mxu0 %v4403_v10 }
 0x26f   :  { %1563 = vmatpush1.bf16.msra.mxu0 %v4408_v12 }
 0x270   :  { %1606 = vmatpush1.bf16.msra.mxu1 %v4165_v15  ;;  %v4414_v15 = vld [vmem:[%s4841_s2 + $0xa4] ss:$16 sps:$4 sm:$0xff]  }
 0x271   :  { %1607 = vmatprep.subr.bf16.mxu1 %v4172_v16  ;;  %v4420_v16 = vld [vmem:[%s4841_s2 + $0xa0] ss:$16 sps:$4 sm:$0xff]   ;;  %1564 = vmatprep.subr.bf16.mxu0 %v4414_v15 }
 0x273   :  { %1565 = vmatpush1.bf16.msra.mxu0 %v4420_v16 }
 0x274   :  { %1608 = vmatpush1.bf16.msra.mxu1 %v4178_v19  ;;  %v4426_v19 = vld [vmem:[%s4841_s2 + $0xc4] ss:$16 sps:$4 sm:$0xff]  }
 0x275   :  { %1609 = vmatprep.subr.bf16.mxu1 %v4184_v20  ;;  %v4432_v20 = vld [vmem:[%s4841_s2 + $0xc0] ss:$16 sps:$4 sm:$0xff]   ;;  %1566 = vmatprep.subr.bf16.mxu0 %v4426_v19 }
 0x277   :  { %1567 = vmatpush1.bf16.msra.mxu0 %v4432_v20 }
 0x278   :  { %1610 = vmatpush1.bf16.msra.mxu1 %v4190_v23  ;;  %v4438_v23 = vld [vmem:[%s4841_s2 + $0xe4] ss:$16 sps:$4 sm:$0xff]  }
 0x279   :  { %1568 = vmatprep.subr.bf16.mxu0 %v4438_v23  ;;  %1905 = vmatprep.subr.bf16.mxu1 %v4482_v46 }
 0x27b   :  { %1569 = vmatpush1.bf16.msra.mxu0 %v4444_v27 }
 0x27c   :  { %1864 = vmatprep.subr.bf16.mxu0 %v4355_v62 }
 0x32e   :  { %v1278_v49 = vpop.f32.mrb[8].mxu0  ;;  %v1319_v24 = vpop.f32.mrb[40].mxu1 }
 0x32f   :  { %v1326_v47 = vadd.f32 %v1278_v49, %v4229_v51  ;;  %v1328_v30 = vadd.f32 %v1319_v24, %v4259_v33  ;;  %v1280_v58 = vpop.f32.mrb[9].mxu0  ;;  %v1321_v41 = vpop.f32.mrb[41].mxu1  ;;  %v4547_v49 = vld [vmem:[%s4841_s2 + $0xa8] ss:$16 sps:$4 sm:$0xff]   ;;  %v4553_v24 = vld [vmem:[%s4841_s2 + $0xcc] ss:$16 sps:$4 sm:$0xff]  }
 0x330   :  { %v1327_v45 = vadd.f32 %v1280_v58, %v4231_v53  ;;  %v1329_v59 = vadd.f32 %v1321_v41, %v4261_v34  ;;  %v1282_v4 = vpop.f32.mrb[10].mxu0  ;;  %v1323_v7 = vpop.f32.mrb[42].mxu1  ;;  %v4571_v58 = vld [vmem:[%s4841_s2 + $0xe8] ss:$16 sps:$4 sm:$0xff]  }
 0x331   :  { %v3265_v8 = vmul.f32 -1.442695, %v1326_v47  ;;  %v1283_v11 = vpop.f32.mrb[11].mxu0  ;;  %v1324_v13 = vpop.f32.mrb[43].mxu1  ;;  %v4559_v47 = vld [vmem:[%s4841_s2 + $0xc8] ss:$16 sps:$4 sm:$0xff]  }
 0x332   :  { %v3266_v14 = vmul.f32 -1.442695, %v1327_v45  ;;  %v3267_v17 = vmul.f32 -1.442695, %v1329_v59  ;;  %v4871_v13 = vld [vmem:[#allocation16_spill] sm:$0xff] }
 0x333   :  { %3687 = vpow2.f32 %v3265_v8 }
 0x334   :  { %3689 = vpow2.f32 %v3266_v14 }
 0x335   :  { %3691 = vpow2.f32 %v3267_v17 }
 0x336   :  { %3693 = vtanh.f32 %v1328_v30  ;;  %v4565_v30 = vld [vmem:[%s4841_s2 + $0xec] ss:$16 sps:$4 sm:$0xff]  }
 0x33d   :  { %v3688_v18 = vpop.eup %3687 }
 0x33e   :  { %v3690_v21 = vpop.eup %3689  ;;  %v1333_v51 = vadd.f32 1.0, %v3688_v18 }
 0x33f   :  { %v1339_v33 = vadd.f32 1.0, %v3690_v21  ;;  %v3692_v53 = vpop.eup %3691 }
 0x340   :  { %3695 = vrcp.f32 %v1333_v51  ;;  %v3694_v22 = vpop.eup %3693  ;;  %v1346_v29 = vadd.f32 1.0, %v3692_v53 }
 0x341   :  { %3697 = vrcp.f32 %v1339_v33 }
 0x342   :  { %3699 = vrcp.f32 %v1346_v29 }
 0x34a   :  { %v3696_v34 = vpop.eup %3695 }
 0x34b   :  { %v3698_v25 = vpop.eup %3697  ;;  %v1350_v26 = vmul.f32 %v3696_v34, %v3694_v22 }
 0x34c   :  { %v1349_v31 = vmul.f32 %v3698_v25, %v4328_v32  ;;  %v3700_v61 = vpop.eup %3699  ;;  %v4523_v32 = vld [vmem:[%s4841_s2 + $0x68] ss:$16 sps:$4 sm:$0xff]  }
 0x34e   :  { %v4454_v35 = vadd.f32 %v1350_v26, %v1349_v31 }
 0x350   :  { %3701 = vtanh.f32 %v4454_v35 }
 0x35a   :  { %v3702_v39 = vpop.eup %3701 }
 0x35b   :  { %v4457_v42 = vmul.f32 %v3702_v39, %v3700_v61 }
 0x35d   :  { %v1361_v36 = vpack.c.bf16 %v4457_v42, %v4457_v42 }
 0x35f   :  { %1587 = vmatmul.mubr.bf16.vlgmr.msra.gmra.mrb[12].mxu0 %v1361_v36  ;;  %1628 = vmatmul.mubr.bf16.vlgmr.msra.gmra.mrb[44].mxu1 %v1361_v36 }
 0x360   :  { %1865 = vmatpush1.bf16.msra.mxu0 %v4360_v63  ;;  %1896 = vmatprep.mubr.bf16.mxu0 %v4870_v37 }
 0x361   :  { %1866 = vmatprep.subr.bf16.mxu0 %v4367_v0  ;;  %1937 = vmatprep.mubr.bf16.mxu1 %v4870_v37 }
 0x362   :  { %1906 = vmatpush1.bf16.msra.mxu1 %v4487_v38 }
 0x363   :  { %1907 = vmatprep.subr.bf16.mxu1 %v4494_v40 }
 0x364   :  { %1867 = vmatpush1.bf16.msra.mxu0 %v4372_v1 }
 0x365   :  { %1868 = vmatprep.subr.bf16.mxu0 %v4379_v3 }
 0x366   :  { %1908 = vmatpush1.bf16.msra.mxu1 %v4499_v44 }
 0x367   :  { %1909 = vmatprep.subr.bf16.mxu1 %v4506_v54 }
 0x368   :  { %1869 = vmatpush1.bf16.msra.mxu0 %v4384_v5 }
 0x369   :  { %1870 = vmatprep.subr.bf16.mxu0 %v4391_v6 }
 0x36a   :  { %1910 = vmatpush1.bf16.msra.mxu1 %v4511_v56 }
 0x36b   :  { %1911 = vmatprep.subr.bf16.mxu1 %v4518_v43 }
 0x36c   :  { %1871 = vmatpush1.bf16.msra.mxu0 %v4396_v9 }
 0x36d   :  { %1872 = vmatprep.subr.bf16.mxu0 %v4403_v10 }
 0x36e   :  { %1912 = vmatpush1.bf16.msra.mxu1 %v4523_v32 }
 0x36f   :  { %1913 = vmatprep.subr.bf16.mxu1 %v4530_v28 }
 0x370   :  { %1873 = vmatpush1.bf16.msra.mxu0 %v4408_v12 }
 0x371   :  { %1874 = vmatprep.subr.bf16.mxu0 %v4414_v15 }
 0x372   :  { %1914 = vmatpush1.bf16.msra.mxu1 %v4535_v2 }
 0x373   :  { %1915 = vmatprep.subr.bf16.mxu1 %v4541_v50 }
 0x374   :  { %1875 = vmatpush1.bf16.msra.mxu0 %v4420_v16 }
 0x375   :  { %1876 = vmatprep.subr.bf16.mxu0 %v4426_v19 }
 0x376   :  { %1916 = vmatpush1.bf16.msra.mxu1 %v4547_v49 }
 0x377   :  { %1917 = vmatprep.subr.bf16.mxu1 %v4553_v24 }
 0x378   :  { %1877 = vmatpush1.bf16.msra.mxu0 %v4432_v20 }
 0x379   :  { %1878 = vmatprep.subr.bf16.mxu0 %v4438_v23 }
 0x37a   :  { %1918 = vmatpush1.bf16.msra.mxu1 %v4559_v47 }
 0x37b   :  { %1919 = vmatprep.subr.bf16.mxu1 %v4565_v30 }
 0x37c   :  { %1879 = vmatpush1.bf16.msra.mxu0 %v4444_v27 }
 0x37d   :  { %2174 = vmatprep.subr.bf16.mxu0 %v4355_v62 }
 0x37e   :  { %1920 = vmatpush1.bf16.msra.mxu1 %v4571_v58 }
 0x37f   :  { %2215 = vmatprep.subr.bf16.mxu1 %v4482_v46 }
 0x432   :  { %v1588_v41 = vpop.f32.mrb[12].mxu0  ;;  %v1629_v45 = vpop.f32.mrb[44].mxu1 }
 0x433   :  { %v1636_v59 = vadd.f32 %v1588_v41, %v4233_v55  ;;  %v1638_v4 = vadd.f32 %v1629_v45, %v4263_v52  ;;  %v1590_v7 = vpop.f32.mrb[13].mxu0  ;;  %v1631_v8 = vpop.f32.mrb[45].mxu1 }
 0x434   :  { %v1637_v11 = vadd.f32 %v1590_v7, %v4235_v57  ;;  %v1639_v14 = vadd.f32 %v1631_v8, %v4871_v13  ;;  %v1592_v17 = vpop.f32.mrb[14].mxu0  ;;  %v1633_v18 = vpop.f32.mrb[46].mxu1 }
 0x435   :  { %v3300_v21 = vmul.f32 -1.442695, %v1636_v59  ;;  %v1593_v51 = vpop.f32.mrb[15].mxu0  ;;  %v1634_v33 = vpop.f32.mrb[47].mxu1 }
 0x436   :  { %v3301_v53 = vmul.f32 -1.442695, %v1637_v11  ;;  %v3302_v22 = vmul.f32 -1.442695, %v1639_v14  ;;  %v4872_v11 = vld [vmem:[#allocation8_spill] sm:$0xff]  ;;  %v4873_v14 = vld [vmem:[#allocation17_spill] sm:$0xff] }
 0x437   :  { %3703 = vpow2.f32 %v3300_v21  ;;  %v4874_v51 = vld [vmem:[#allocation9_spill] sm:$0xff] }
 0x438   :  { %3705 = vpow2.f32 %v3301_v53  ;;  %v4875_v53 = vld [vmem:[#allocation18_spill] sm:$0xff] }
 0x439   :  { %3707 = vpow2.f32 %v3302_v22 }
 0x43a   :  { %3709 = vtanh.f32 %v1638_v4 }
 0x441   :  { %v3704_v34 = vpop.eup %3703 }
 0x442   :  { %v3706_v25 = vpop.eup %3705  ;;  %v1643_v55 = vadd.f32 1.0, %v3704_v34 }
 0x443   :  { %v1649_v52 = vadd.f32 1.0, %v3706_v25  ;;  %v3708_v57 = vpop.eup %3707 }
 0x444   :  { %3711 = vrcp.f32 %v1643_v55  ;;  %v3710_v26 = vpop.eup %3709  ;;  %v1656_v39 = vadd.f32 1.0, %v3708_v57 }
 0x445   :  { %3713 = vrcp.f32 %v1649_v52 }
 0x446   :  { %3715 = vrcp.f32 %v1656_v39 }
 0x44e   :  { %v3712_v29 = vpop.eup %3711 }
 0x44f   :  { %v3714_v31 = vpop.eup %3713  ;;  %v1660_v61 = vmul.f32 %v3712_v29, %v3710_v26 }
 0x450   :  { %v1659_v36 = vmul.f32 %v3714_v31, %v4454_v35  ;;  %v3716_v45 = vpop.eup %3715 }
 0x452   :  { %v4581_v41 = vadd.f32 %v1660_v61, %v1659_v36 }
 0x454   :  { %3717 = vtanh.f32 %v4581_v41 }
 0x45e   :  { %v3718_v59 = vpop.eup %3717 }
 0x45f   :  { %v4584_v7 = vmul.f32 %v3718_v59, %v3716_v45 }
 0x461   :  { %v1671_v4 = vpack.c.bf16 %v4584_v7, %v4584_v7 }
 0x463   :  { %1897 = vmatmul.mubr.bf16.vlgmr.msra.gmra.mrb[16].mxu0 %v1671_v4  ;;  %1938 = vmatmul.mubr.bf16.vlgmr.msra.gmra.mrb[48].mxu1 %v1671_v4 }
 0x464   :  { %2175 = vmatpush1.bf16.msra.mxu0 %v4360_v63  ;;  %2216 = vmatpush1.bf16.msra.mxu1 %v4487_v38 }
 0x465   :  { %2176 = vmatprep.subr.bf16.mxu0 %v4367_v0  ;;  %2217 = vmatprep.subr.bf16.mxu1 %v4494_v40 }
 0x466   :  { %2206 = vmatprep.mubr.bf16.mxu0 %v4870_v37  ;;  %2247 = vmatprep.mubr.bf16.mxu1 %v4870_v37 }
 0x468   :  { %2177 = vmatpush1.bf16.msra.mxu0 %v4372_v1  ;;  %2218 = vmatpush1.bf16.msra.mxu1 %v4499_v44 }
 0x469   :  { %2178 = vmatprep.subr.bf16.mxu0 %v4379_v3  ;;  %2219 = vmatprep.subr.bf16.mxu1 %v4506_v54 }
 0x46c   :  { %2179 = vmatpush1.bf16.msra.mxu0 %v4384_v5  ;;  %2220 = vmatpush1.bf16.msra.mxu1 %v4511_v56 }
 0x46d   :  { %2180 = vmatprep.subr.bf16.mxu0 %v4391_v6  ;;  %2221 = vmatprep.subr.bf16.mxu1 %v4518_v43 }
 0x470   :  { %2181 = vmatpush1.bf16.msra.mxu0 %v4396_v9  ;;  %2222 = vmatpush1.bf16.msra.mxu1 %v4523_v32 }
 0x471   :  { %2182 = vmatprep.subr.bf16.mxu0 %v4403_v10  ;;  %2223 = vmatprep.subr.bf16.mxu1 %v4530_v28 }
 0x474   :  { %2183 = vmatpush1.bf16.msra.mxu0 %v4408_v12  ;;  %2224 = vmatpush1.bf16.msra.mxu1 %v4535_v2 }
 0x475   :  { %2184 = vmatprep.subr.bf16.mxu0 %v4414_v15  ;;  %2225 = vmatprep.subr.bf16.mxu1 %v4541_v50 }
 0x478   :  { %2185 = vmatpush1.bf16.msra.mxu0 %v4420_v16  ;;  %2226 = vmatpush1.bf16.msra.mxu1 %v4547_v49 }
 0x479   :  { %2186 = vmatprep.subr.bf16.mxu0 %v4426_v19  ;;  %2227 = vmatprep.subr.bf16.mxu1 %v4553_v24 }
 0x47c   :  { %2187 = vmatpush1.bf16.msra.mxu0 %v4432_v20  ;;  %2228 = vmatpush1.bf16.msra.mxu1 %v4559_v47 }
 0x47d   :  { %2188 = vmatprep.subr.bf16.mxu0 %v4438_v23  ;;  %2229 = vmatprep.subr.bf16.mxu1 %v4565_v30 }
 0x480   :  { %2189 = vmatpush1.bf16.msra.mxu0 %v4444_v27  ;;  %2230 = vmatpush1.bf16.msra.mxu1 %v4571_v58 }
 0x481   :  { %2484 = vmatprep.subr.bf16.mxu0 %v4355_v62  ;;  %2525 = vmatprep.subr.bf16.mxu1 %v4482_v46 }
 0x536   :  { %v1898_v35 = vpop.f32.mrb[16].mxu0  ;;  %v1939_v8 = vpop.f32.mrb[48].mxu1 }
 0x537   :  { %v1946_v13 = vadd.f32 %v1898_v35, %v4872_v11  ;;  %v1948_v17 = vadd.f32 %v1939_v8, %v4873_v14  ;;  %v1900_v18 = vpop.f32.mrb[17].mxu0  ;;  %v1941_v21 = vpop.f32.mrb[49].mxu1 }
 0x538   :  { %v1947_v33 = vadd.f32 %v1900_v18, %v4874_v51  ;;  %v1949_v22 = vadd.f32 %v1941_v21, %v4875_v53  ;;  %v1902_v34 = vpop.f32.mrb[18].mxu0  ;;  %v1943_v25 = vpop.f32.mrb[50].mxu1 }
 0x539   :  { %v3335_v55 = vmul.f32 -1.442695, %v1946_v13  ;;  %v1903_v52 = vpop.f32.mrb[19].mxu0  ;;  %v1944_v57 = vpop.f32.mrb[51].mxu1 }
 0x53a   :  { %v3336_v62 = vmul.f32 -1.442695, %v1947_v33  ;;  %v3337_v26 = vmul.f32 -1.442695, %v1949_v22 }
 0x53b   :  { %3719 = vpow2.f32 %v3335_v55 }
 0x53c   :  { %3721 = vpow2.f32 %v3336_v62 }
 0x53d   :  { %3723 = vpow2.f32 %v3337_v26 }
 0x53e   :  { %3725 = vtanh.f32 %v1948_v17 }
 0x545   :  { %v3720_v29 = vpop.eup %3719 }
 0x546   :  { %v3722_v31 = vpop.eup %3721  ;;  %v1953_v61 = vadd.f32 1.0, %v3720_v29 }
 0x547   :  { %v1959_v39 = vadd.f32 1.0, %v3722_v31  ;;  %v3724_v36 = vpop.eup %3723 }
 0x548   :  { %3727 = vrcp.f32 %v1953_v61  ;;  %v3726_v45 = vpop.eup %3725  ;;  %v1966_v8 = vadd.f32 1.0, %v3724_v36 }
 0x549   :  { %3729 = vrcp.f32 %v1959_v39 }
 0x54a   :  { %3731 = vrcp.f32 %v1966_v8 }
 0x552   :  { %v3728_v59 = vpop.eup %3727 }
 0x553   :  { %v3730_v4 = vpop.eup %3729  ;;  %v1970_v35 = vmul.f32 %v3728_v59, %v3726_v45 }
 0x554   :  { %v1969_v11 = vmul.f32 %v3730_v4, %v4581_v41  ;;  %v3732_v14 = vpop.eup %3731  ;;  %v3628_v4 = vld [vmem:[%s4841_s2 + $0xe0] ss:$16 sps:$4 sm:$0xff]  }
 0x556   :  { %v4627_v13 = vadd.f32 %v1970_v35, %v1969_v11  ;;  %v3633_v35 = vld [vmem:[%s4843_s4 + $0x4] ss:$8 sps:$4 sm:$0xff]  }
 0x558   :  { %3733 = vtanh.f32 %v4627_v13 }
 0x562   :  { %v3734_v18 = vpop.eup %3733 }
 0x563   :  { %v4630_v21 = vmul.f32 %v3734_v18, %v3732_v14  ;;  %v4881_v18 = vld [vmem:[#allocation21_spill] sm:$0xff] }
 0x565   :  { %v1981_v17 = vpack.c.bf16 %v4630_v21, %v4630_v21 }
 0x567   :  { %2207 = vmatmul.mubr.bf16.vlgmr.msra.gmra.mrb[20].mxu0 %v1981_v17  ;;  %2248 = vmatmul.mubr.bf16.vlgmr.msra.gmra.mrb[52].mxu1 %v1981_v17 }
 0x568   :  { %2485 = vmatpush1.bf16.msra.mxu0 %v4360_v63  ;;  %2526 = vmatpush1.bf16.msra.mxu1 %v4487_v38 }
 0x569   :  { %2486 = vmatprep.subr.bf16.mxu0 %v4367_v0  ;;  %2527 = vmatprep.subr.bf16.mxu1 %v4494_v40 }
 0x56a   :  { %2516 = vmatprep.mubr.bf16.mxu0 %v4870_v37  ;;  %2557 = vmatprep.mubr.bf16.mxu1 %v4870_v37 }
 0x56c   :  { %2487 = vmatpush1.bf16.msra.mxu0 %v4372_v1  ;;  %2528 = vmatpush1.bf16.msra.mxu1 %v4499_v44  ;;  %v4876_v1 = vld [vmem:[#allocation10_spill] sm:$0xff] }
 0x56d   :  { %2488 = vmatprep.subr.bf16.mxu0 %v4379_v3  ;;  %2529 = vmatprep.subr.bf16.mxu1 %v4506_v54 }
 0x570   :  { %2489 = vmatpush1.bf16.msra.mxu0 %v4384_v5  ;;  %2530 = vmatpush1.bf16.msra.mxu1 %v4511_v56  ;;  %v4877_v5 = vld [vmem:[#allocation19_spill] sm:$0xff] }
 0x571   :  { %2490 = vmatprep.subr.bf16.mxu0 %v4391_v6  ;;  %2531 = vmatprep.subr.bf16.mxu1 %v4518_v43 }
 0x574   :  { %2491 = vmatpush1.bf16.msra.mxu0 %v4396_v9  ;;  %2532 = vmatpush1.bf16.msra.mxu1 %v4523_v32 }
 0x575   :  { %2492 = vmatprep.subr.bf16.mxu0 %v4403_v10  ;;  %2533 = vmatprep.subr.bf16.mxu1 %v4530_v28 }
 0x578   :  { %2493 = vmatpush1.bf16.msra.mxu0 %v4408_v12  ;;  %2534 = vmatpush1.bf16.msra.mxu1 %v4535_v2  ;;  %v4878_v12 = vld [vmem:[#allocation11_spill] sm:$0xff] }
 0x579   :  { %2494 = vmatprep.subr.bf16.mxu0 %v4414_v15  ;;  %2535 = vmatprep.subr.bf16.mxu1 %v4541_v50 }
 0x57c   :  { %2495 = vmatpush1.bf16.msra.mxu0 %v4420_v16  ;;  %2536 = vmatpush1.bf16.msra.mxu1 %v4547_v49  ;;  %v4879_v16 = vld [vmem:[#allocation20_spill] sm:$0xff] }
 0x57d   :  { %2496 = vmatprep.subr.bf16.mxu0 %v4426_v19  ;;  %2537 = vmatprep.subr.bf16.mxu1 %v4553_v24 }
 0x580   :  { %2497 = vmatpush1.bf16.msra.mxu0 %v4432_v20  ;;  %2538 = vmatpush1.bf16.msra.mxu1 %v4559_v47 }
 0x581   :  { %2498 = vmatprep.subr.bf16.mxu0 %v4438_v23  ;;  %2539 = vmatprep.subr.bf16.mxu1 %v4565_v30 }
 0x584   :  { %2499 = vmatpush1.bf16.msra.mxu0 %v4444_v27  ;;  %2540 = vmatpush1.bf16.msra.mxu1 %v4571_v58 }
 0x585   :  { %2835 = vmatprep.subr.bf16.mxu1 %v4482_v46 }
 0x63a   :  { %v2208_v63 = vpop.f32.mrb[20].mxu0  ;;  %v2249_v0 = vpop.f32.mrb[52].mxu1 }
 0x63b   :  { %v2256_v3 = vadd.f32 %v2208_v63, %v4876_v1  ;;  %v2258_v6 = vadd.f32 %v2249_v0, %v4877_v5  ;;  %v2210_v9 = vpop.f32.mrb[21].mxu0  ;;  %v2251_v10 = vpop.f32.mrb[53].mxu1  ;;  %v4882_v1 = vld [vmem:[#allocation13_spill] sm:$0xff]  ;;  %v4883_v5 = vld [vmem:[#allocation22_spill] sm:$0xff] }
 0x63c   :  { %v2257_v15 = vadd.f32 %v2210_v9, %v4878_v12  ;;  %v2259_v19 = vadd.f32 %v2251_v10, %v4879_v16  ;;  %v2212_v20 = vpop.f32.mrb[22].mxu0  ;;  %v2253_v23 = vpop.f32.mrb[54].mxu1 }
 0x63d   :  { %v3370_v41 = vmul.f32 -1.442695, %v2256_v3  ;;  %v2213_v27 = vpop.f32.mrb[23].mxu0  ;;  %v2254_v51 = vpop.f32.mrb[55].mxu1 }
 0x63e   :  { %v3371_v33 = vmul.f32 -1.442695, %v2257_v15  ;;  %v3372_v46 = vmul.f32 -1.442695, %v2259_v19 }
 0x63f   :  { %3735 = vpow2.f32 %v3370_v41 }
 0x640   :  { %3737 = vpow2.f32 %v3371_v33 }
 0x641   :  { %3739 = vpow2.f32 %v3372_v46 }
 0x642   :  { %3741 = vtanh.f32 %v2258_v6 }
 0x649   :  { %v3736_v53 = vpop.eup %3735 }
 0x64a   :  { %v3738_v22 = vpop.eup %3737  ;;  %v2263_v34 = vadd.f32 1.0, %v3736_v53 }
 0x64b   :  { %v2269_v25 = vadd.f32 1.0, %v3738_v22  ;;  %v3740_v55 = vpop.eup %3739 }
 0x64c   :  { %3743 = vrcp.f32 %v2263_v34  ;;  %v3742_v52 = vpop.eup %3741  ;;  %v2276_v29 = vadd.f32 1.0, %v3740_v55 }
 0x64d   :  { %3745 = vrcp.f32 %v2269_v25 }
 0x64e   :  { %3747 = vrcp.f32 %v2276_v29  ;;  %v3631_v29 = vld [vmem:[%s4843_s4] ss:$8 sps:$4 sm:$0xff]  }
 0x656   :  { %v3744_v57 = vpop.eup %3743 }
 0x657   :  { %v3746_v62 = vpop.eup %3745  ;;  %v2280_v26 = vmul.f32 %v3744_v57, %v3742_v52 }
 0x658   :  { %v2279_v31 = vmul.f32 %v3746_v62, %v4627_v13  ;;  %v3748_v39 = vpop.eup %3747  ;;  %v4880_v13 = vld [vmem:[#allocation12_spill] sm:$0xff] }
 0x65a   :  { %v4672_v61 = vadd.f32 %v2280_v26, %v2279_v31 }
 0x65c   :  { %3749 = vtanh.f32 %v4672_v61 }
 0x666   :  { %v3750_v36 = vpop.eup %3749 }
 0x667   :  { %v4675_v45 = vmul.f32 %v3750_v36, %v3748_v39  ;;  %v3634_v39 = vld [vmem:[%s4843_s4 + $0x10] ss:$8 sps:$4 sm:$0xff]   ;;  %v3639_v36 = vld [vmem:[%s4843_s4 + $0x24] ss:$8 sps:$4 sm:$0xff]  }
 0x669   :  { %v2291_v59 = vpack.c.bf16 %v4675_v45, %v4675_v45 }
 0x66b   :  { %2517 = vmatmul.mubr.bf16.vlgmr.msra.gmra.mrb[24].mxu0 %v2291_v59  ;;  %2558 = vmatmul.mubr.bf16.vlgmr.msra.gmra.mrb[56].mxu1 %v2291_v59  ;;  %v3637_v59 = vld [vmem:[%s4843_s4 + $0x20] ss:$8 sps:$4 sm:$0xff]  }
 0x66c   :  { %2836 = vmatpush1.bf16.msra.mxu1 %v4487_v38  ;;  %2826 = vmatprep.mubr.bf16.mxu0 %v4870_v37  ;;  %v3609_v38 = vld [vmem:[%s4841_s2 + $0x4] ss:$16 sps:$4 sm:$0xff]  }
 0x66d   :  { %2837 = vmatprep.subr.bf16.mxu1 %v4494_v40  ;;  %2867 = vmatprep.mubr.bf16.mxu1 %v4870_v37  ;;  %v3607_v40 = vld [vmem:[%s4841_s2] ss:$16 sps:$4 sm:$0xff]  }
 0x66e   :  { %2794 = vmatprep.subr.bf16.mxu0 %v3609_v38  ;;  %v3642_v38 = vld [vmem:[%s4843_s4 + $0x34] ss:$8 sps:$4 sm:$0xff]  }
 0x66f   :  { %2795 = vmatpush1.bf16.msra.mxu0 %v3607_v40  ;;  %v3640_v40 = vld [vmem:[%s4843_s4 + $0x30] ss:$8 sps:$4 sm:$0xff]  }
 0x670   :  { %2838 = vmatpush1.bf16.msra.mxu1 %v4499_v44  ;;  %v3612_v44 = vld [vmem:[%s4841_s2 + $0x24] ss:$16 sps:$4 sm:$0xff]  }
 0x671   :  { %2839 = vmatprep.subr.bf16.mxu1 %v4506_v54  ;;  %v3610_v54 = vld [vmem:[%s4841_s2 + $0x20] ss:$16 sps:$4 sm:$0xff]   ;;  %2796 = vmatprep.subr.bf16.mxu0 %v3612_v44  ;;  %v3645_v44 = vld [vmem:[%s4843_s4 + $0x44] ss:$8 sps:$4 sm:$0xff]  }
 0x673   :  { %2797 = vmatpush1.bf16.msra.mxu0 %v3610_v54  ;;  %v3643_v54 = vld [vmem:[%s4843_s4 + $0x40] ss:$8 sps:$4 sm:$0xff]  }
 0x674   :  { %2840 = vmatpush1.bf16.msra.mxu1 %v4511_v56  ;;  %v3615_v56 = vld [vmem:[%s4841_s2 + $0x44] ss:$16 sps:$4 sm:$0xff]  }
 0x675   :  { %2841 = vmatprep.subr.bf16.mxu1 %v4518_v43  ;;  %v3613_v43 = vld [vmem:[%s4841_s2 + $0x40] ss:$16 sps:$4 sm:$0xff]   ;;  %2798 = vmatprep.subr.bf16.mxu0 %v3615_v56  ;;  %v3648_v56 = vld [vmem:[%s4843_s4 + $0x54] ss:$8 sps:$4 sm:$0xff]  }
 0x677   :  { %2799 = vmatpush1.bf16.msra.mxu0 %v3613_v43  ;;  %v3646_v43 = vld [vmem:[%s4843_s4 + $0x50] ss:$8 sps:$4 sm:$0xff]  }
 0x678   :  { %2842 = vmatpush1.bf16.msra.mxu1 %v4523_v32  ;;  %v3618_v32 = vld [vmem:[%s4841_s2 + $0x64] ss:$16 sps:$4 sm:$0xff]  }
 0x679   :  { %2843 = vmatprep.subr.bf16.mxu1 %v4530_v28  ;;  %v3616_v28 = vld [vmem:[%s4841_s2 + $0x60] ss:$16 sps:$4 sm:$0xff]   ;;  %2800 = vmatprep.subr.bf16.mxu0 %v3618_v32  ;;  %v3651_v32 = vld [vmem:[%s4843_s4 + $0x64] ss:$8 sps:$4 sm:$0xff]  }
 0x67b   :  { %2801 = vmatpush1.bf16.msra.mxu0 %v3616_v28  ;;  %v3649_v28 = vld [vmem:[%s4843_s4 + $0x60] ss:$8 sps:$4 sm:$0xff]  }
 0x67c   :  { %2844 = vmatpush1.bf16.msra.mxu1 %v4535_v2  ;;  %v3621_v2 = vld [vmem:[%s4841_s2 + $0x84] ss:$16 sps:$4 sm:$0xff]  }
 0x67d   :  { %2845 = vmatprep.subr.bf16.mxu1 %v4541_v50  ;;  %v3619_v50 = vld [vmem:[%s4841_s2 + $0x80] ss:$16 sps:$4 sm:$0xff]   ;;  %2802 = vmatprep.subr.bf16.mxu0 %v3621_v2  ;;  %v3654_v2 = vld [vmem:[%s4843_s4 + $0x74] ss:$8 sps:$4 sm:$0xff]  }
 0x67f   :  { %2803 = vmatpush1.bf16.msra.mxu0 %v3619_v50  ;;  %v3652_v50 = vld [vmem:[%s4843_s4 + $0x70] ss:$8 sps:$4 sm:$0xff]  }
 0x680   :  { %2846 = vmatpush1.bf16.msra.mxu1 %v4547_v49  ;;  %v3622_v49 = vld [vmem:[%s4841_s2 + $0xa0] ss:$16 sps:$4 sm:$0xff]  }
 0x681   :  { %2847 = vmatprep.subr.bf16.mxu1 %v4553_v24  ;;  %v3624_v24 = vld [vmem:[%s4841_s2 + $0xa4] ss:$16 sps:$4 sm:$0xff]  }
 0x682   :  { %2804 = vmatprep.subr.bf16.mxu0 %v3624_v24  ;;  %v2915_v24 = vpack.c.bf16 %v4584_v7, %v4457_v42  ;;  %v4887_v42 = vld [vmem:[#allocation24_spill] sm:$0xff] }
 0x683   :  { %2805 = vmatpush1.bf16.msra.mxu0 %v3622_v49  ;;  %v2914_v49 = vpack.c.bf16 %v4331_v48, %v4286_v60  ;;  %v4885_v60 = vld [vmem:[#allocation23_spill] sm:$0xff] }
 0x684   :  { %2848 = vmatpush1.bf16.msra.mxu1 %v4559_v47  ;;  %v3627_v47 = vld [vmem:[%s4841_s2 + $0xc4] ss:$16 sps:$4 sm:$0xff]  }
 0x685   :  { %2849 = vmatprep.subr.bf16.mxu1 %v4565_v30  ;;  %v3625_v30 = vld [vmem:[%s4841_s2 + $0xc0] ss:$16 sps:$4 sm:$0xff]   ;;  %2806 = vmatprep.subr.bf16.mxu0 %v3627_v47  ;;  %v2916_v47 = vpack.c.bf16 %v4675_v45, %v4630_v21 }
 0x687   :  { %2807 = vmatpush1.bf16.msra.mxu0 %v3625_v30 }
 0x688   :  { %2850 = vmatpush1.bf16.msra.mxu1 %v4571_v58  ;;  %v3630_v58 = vld [vmem:[%s4841_s2 + $0xe4] ss:$16 sps:$4 sm:$0xff]  }
 0x689   :  { %2808 = vmatprep.subr.bf16.mxu0 %v3630_v58 }
 0x68b   :  { %2809 = vmatpush1.bf16.msra.mxu0 %v3628_v4  ;;  %v4884_v4 = vld [vmem:[#allocation14_spill] sm:$0xff] }
 0x68c   :  { %3026 = vmatprep.subr.bf16.mxu0 %v3633_v35 }
 0x73e   :  { %v2518_v8 = vpop.f32.mrb[24].mxu0  ;;  %v2559_v11 = vpop.f32.mrb[56].mxu1 }
 0x73f   :  { %v2566_v14 = vadd.f32 %v2518_v8, %v4880_v13  ;;  %v2568_v17 = vadd.f32 %v2559_v11, %v4881_v18  ;;  %v2520_v63 = vpop.f32.mrb[25].mxu0  ;;  %v2561_v0 = vpop.f32.mrb[57].mxu1  ;;  %v4886_v13 = vld [vmem:[#allocation15_spill] sm:$0xff] }
 0x740   :  { %v2567_v3 = vadd.f32 %v2520_v63, %v4882_v1  ;;  %v2569_v6 = vadd.f32 %v2561_v0, %v4883_v5  ;;  %v2522_v9 = vpop.f32.mrb[26].mxu0  ;;  %v2563_v10 = vpop.f32.mrb[58].mxu1 }
 0x741   :  { %v3405_v12 = vmul.f32 -1.442695, %v2566_v14  ;;  %v2523_v15 = vpop.f32.mrb[27].mxu0  ;;  %v2564_v16 = vpop.f32.mrb[59].mxu1  ;;  %v2934_v10 = vld [vmem:[%s4844_s5] sm:$0x3] }
 0x742   :  { %v3406_v19 = vmul.f32 -1.442695, %v2567_v3  ;;  %v3407_v20 = vmul.f32 -1.442695, %v2569_v6  ;;  %s3808_s5 = smov [#allocation4]  }
 0x743   :  { %3751 = vpow2.f32 %v3405_v12  ;;  %s3120_s12 = sshll.u32 %s3808_s5, 4  ;;  %s3121_s12 = int_to_ptr.vmem [resolvable:$true] %s3120_s12 }
 0x744   :  { %3753 = vpow2.f32 %v3406_v19  ;;  %s3783_s13 = scalar_lea.vmem %s3121_s12, 2048  ;;  %p3788_p1 = scmp.lt.s32.totalorder %s3121_s12, %s3121_s12 }
 0x745   :  { %3755 = vpow2.f32 %v3407_v20  ;;  %p3784_p0 = scmp.ne.s32.totalorder %s3121_s12, %s3783_s13  ;;  %p3789_p2 = scmp.lt.s32.totalorder %s3783_s13, %s3783_s13 }
 0x746   :  { %3757 = vtanh.f32 %v2568_v17 }
 0x747   :  { %p3790_p3 = por %p3789_p2, %p3788_p1 }
 0x749   :  { %p3791_p4 = pnand %p3790_p3, %p3784_p0 }
 0x74d   :  { %v3752_v23 = vpop.eup %3751 }
 0x74e   :  { %v3754_v41 = vpop.eup %3753  ;;  %v2573_v27 = vadd.f32 1.0, %v3752_v23  ;;  %v4888_v23 = vld [vmem:[#allocation7_spill] sm:$0xff] }
 0x74f   :  { %v2579_v51 = vadd.f32 1.0, %v3754_v41  ;;  %v3756_v33 = vpop.eup %3755  ;;  %v4889_v41 = vsub.s32 0, %v4888_v23 }
 0x750   :  { %3759 = vrcp.f32 %v2573_v27  ;;  %v3758_v46 = vpop.eup %3757  ;;  %v2586_v25 = vadd.f32 1.0, %v3756_v33  ;;  %v4890_v33 = vsub.s32 1, %v4888_v23 }
 0x751   :  { %3761 = vrcp.f32 %v2579_v51  ;;  %v2939_v27 = vrot.slane %v2934_v10, %v4889_v41 }
 0x752   :  { %3763 = vrcp.f32 %v2586_v25 }
 0x75a   :  { %v3760_v53 = vpop.eup %3759 }
 0x75b   :  { %v3762_v22 = vpop.eup %3761  ;;  %v2590_v34 = vmul.f32 %v3760_v53, %v3758_v46  ;;  %v2943_v46 = vrot.slane %v2934_v10, %v4890_v33 }
 0x75c   :  { %v2589_v55 = vmul.f32 %v3762_v22, %v4672_v61  ;;  %v3764_v57 = vpop.eup %3763  ;;  %v3636_v61 = vld [vmem:[%s4843_s4 + $0x14] ss:$8 sps:$4 sm:$0xff]  }
 0x75e   :  { %v4752_v52 = vadd.f32 %v2590_v34, %v2589_v55 }
 0x760   :  { %3765 = vtanh.f32 %v4752_v52 }
 0x76a   :  { %v3766_v62 = vpop.eup %3765 }
 0x76b   :  { %v4755_v26 = vmul.f32 %v3766_v62, %v3764_v57 }
 0x76d   :  { %v2601_v31 = vpack.c.bf16 %v4755_v26, %v4755_v26 }
 0x76f   :  { %2827 = vmatmul.mubr.bf16.vlgmr.msra.gmra.mrb[28].mxu0 %v2601_v31  ;;  %2868 = vmatmul.mubr.bf16.vlgmr.msra.gmra.mrb[60].mxu1 %v2601_v31 }
 0x770   :  { %3027 = vmatpush1.bf16.msra.mxu0 %v3631_v29  ;;  %3058 = vmatprep.mubr.bf16.mxu0 %v4870_v37 }
 0x771   :  { %3028 = vmatprep.subr.bf16.mxu0 %v3636_v61 }
 0x774   :  { %3029 = vmatpush1.bf16.msra.mxu0 %v3634_v39 }
 0x775   :  { %3030 = vmatprep.subr.bf16.mxu0 %v3639_v36 }
 0x778   :  { %3031 = vmatpush1.bf16.msra.mxu0 %v3637_v59 }
 0x779   :  { %3032 = vmatprep.subr.bf16.mxu0 %v3642_v38 }
 0x77c   :  { %3033 = vmatpush1.bf16.msra.mxu0 %v3640_v40 }
 0x77d   :  { %3034 = vmatprep.subr.bf16.mxu0 %v3645_v44 }
 0x780   :  { %3035 = vmatpush1.bf16.msra.mxu0 %v3643_v54 }
 0x781   :  { %3036 = vmatprep.subr.bf16.mxu0 %v3648_v56 }
 0x784   :  { %3037 = vmatpush1.bf16.msra.mxu0 %v3646_v43 }
 0x785   :  { %3038 = vmatprep.subr.bf16.mxu0 %v3651_v32 }
 0x788   :  { %3039 = vmatpush1.bf16.msra.mxu0 %v3649_v28 }
 0x789   :  { %3040 = vmatprep.subr.bf16.mxu0 %v3654_v2 }
 0x78c   :  { %3041 = vmatpush1.bf16.msra.mxu0 %v3652_v50 }
 0x78f   :  { %3059 = vmatmul.mubr.bf16.vlgmr.msra.gmra.mrb[32].mxu0 %v2914_v49 }
 0x790   :  { %3068 = vmatprep.mubr.bf16.mxu0 %v4870_v37 }
 0x797   :  { %3069 = vmatmul.mubr.bf16.gmra.mrb[36].mxu0 %v2915_v24 }
 0x798   :  { %3078 = vmatprep.mubr.bf16.mxu0 %v4870_v37 }
 0x79f   :  { %3079 = vmatmul.mubr.bf16.gmra.mrb[40].mxu0 %v2916_v47 }
 0x7a0   :  { %3088 = vmatprep.mubr.bf16.mxu0 %v4870_v37 }
 0x842   :  { %v2828_v30 = vpop.f32.mrb[28].mxu0  ;;  %v2869_v58 = vpop.f32.mrb[60].mxu1 }
 0x843   :  { %v2876_v35 = vadd.f32 %v2828_v30, %v4884_v4  ;;  %v2878_v48 = vadd.f32 %v2869_v58, %v4885_v60  ;;  %v2830_v8 = vpop.f32.mrb[29].mxu0  ;;  %v2871_v11 = vpop.f32.mrb[61].mxu1 }
 0x844   :  { %v2877_v14 = vadd.f32 %v2830_v8, %v4886_v13  ;;  %v2879_v7 = vadd.f32 %v2871_v11, %v4887_v42  ;;  %v2832_v18 = vpop.f32.mrb[30].mxu0  ;;  %v2873_v17 = vpop.f32.mrb[62].mxu1 }
 0x845   :  { %v3440_v63 = vmul.f32 -1.442695, %v2876_v35  ;;  %v2833_v0 = vpop.f32.mrb[31].mxu0  ;;  %v2874_v21 = vpop.f32.mrb[63].mxu1 }
 0x846   :  { %v3441_v45 = vmul.f32 -1.442695, %v2877_v14  ;;  %v3442_v37 = vmul.f32 -1.442695, %v2879_v7 }
 0x847   :  { %3767 = vpow2.f32 %v3440_v63 }
 0x848   :  { %3769 = vpow2.f32 %v3441_v45 }
 0x849   :  { %3771 = vpow2.f32 %v3442_v37 }
 0x84a   :  { %3773 = vtanh.f32 %v2878_v48 }
 0x851   :  { %v3768_v1 = vpop.eup %3767 }
 0x852   :  { %v3770_v3 = vpop.eup %3769  ;;  %v2883_v5 = vadd.f32 1.0, %v3768_v1 }
 0x853   :  { %v2889_v6 = vadd.f32 1.0, %v3770_v3  ;;  %v3772_v9 = vpop.eup %3771 }
 0x854   :  { %3775 = vrcp.f32 %v2883_v5  ;;  %v3774_v12 = vpop.eup %3773  ;;  %v2896_v20 = vadd.f32 1.0, %v3772_v9 }
 0x855   :  { %3777 = vrcp.f32 %v2889_v6 }
 0x856   :  { %3779 = vrcp.f32 %v2896_v20 }
 0x85e   :  { %v3776_v15 = vpop.eup %3775 }
 0x85f   :  { %v3778_v16 = vpop.eup %3777  ;;  %v2900_v19 = vmul.f32 %v3776_v15, %v3774_v12 }
 0x860   :  { %v2899_v51 = vmul.f32 %v3778_v16, %v4752_v52  ;;  %v3780_v38 = vpop.eup %3779 }
 0x862   :  { %v3060_v53 = vpop.f32.mrb[32].mxu0  ;;  %v2901_v22 = vadd.f32 %v2900_v19, %v2899_v51 }
 0x863   :  { %v3061_v34 = vadd.f32 %v3060_v53, %v2939_v27  ;;  %v3062_v25 = vpop.f32.mrb[33].mxu0 }
 0x864   :  { %v3063_v55 = vadd.f32 %v3062_v25, %v2943_v46  ;;  %v3064_v57 = vpop.f32.mrb[34].mxu0  ;;  %3781 = vtanh.f32 %v2901_v22 }
 0x865   :  { %3099 = vst [vmem:[#allocation4] sm:$0xff] %v3061_v34  ;;  %v3065_v62 = vadd.f32 %v3064_v57, %v2939_v27  ;;  %v3066_v29 = vpop.f32.mrb[35].mxu0 }
 0x866   :  { %3100 = vst [vmem:[#allocation4 + $0x8] sm:$0xff] %v3063_v55  ;;  %v3067_v31 = vadd.f32 %v3066_v29, %v2943_v46 }
 0x867   :  { %3101 = vst [vmem:[#allocation4 + $0x10] sm:$0xff] %v3065_v62 }
 0x868   :  { %3102 = vst [vmem:[#allocation4 + $0x18] sm:$0xff] %v3067_v31 }
 0x86a   :  { %v3070_v61 = vpop.f32.mrb[36].mxu0 }
 0x86b   :  { %v3071_v52 = vadd.f32 %v3070_v61, %v2939_v27  ;;  %v3072_v39 = vpop.f32.mrb[37].mxu0 }
 0x86c   :  { %v3073_v36 = vadd.f32 %v3072_v39, %v2943_v46  ;;  %v3074_v59 = vpop.f32.mrb[38].mxu0 }
 0x86d   :  { %3103 = vst [vmem:[#allocation4 + $0x20] sm:$0xff] %v3071_v52  ;;  %v3075_v40 = vadd.f32 %v3074_v59, %v2939_v27  ;;  %v3076_v44 = vpop.f32.mrb[39].mxu0 }
 0x86e   :  { %v3782_v54 = vpop.eup %3781  ;;  %3104 = vst [vmem:[#allocation4 + $0x28] sm:$0xff] %v3073_v36  ;;  %v3077_v56 = vadd.f32 %v3076_v44, %v2943_v46 }
 0x86f   :  { %3105 = vst [vmem:[#allocation4 + $0x30] sm:$0xff] %v3075_v40  ;;  %v2903_v43 = vmul.f32 %v3782_v54, %v3780_v38 }
 0x870   :  { %3106 = vst [vmem:[#allocation4 + $0x38] sm:$0xff] %v3077_v56 }
 0x871   :  { %v2917_v32 = vpack.c.bf16 %v2903_v43, %v4755_v26 }
 0x872   :  { %v3080_v28 = vpop.f32.mrb[40].mxu0 }
 0x873   :  { %v3081_v2 = vadd.f32 %v3080_v28, %v2939_v27  ;;  %v3082_v50 = vpop.f32.mrb[41].mxu0  ;;  %3089 = vmatmul.mubr.bf16.gmra.mrb[44].mxu0 %v2917_v32 }
 0x874   :  { %v3083_v49 = vadd.f32 %v3082_v50, %v2943_v46  ;;  %v3084_v24 = vpop.f32.mrb[42].mxu0 }
 0x875   :  { %3107 = vst [vmem:[#allocation4 + $0x40] sm:$0xff] %v3081_v2  ;;  %v3085_v47 = vadd.f32 %v3084_v24, %v2939_v27  ;;  %v3086_v30 = vpop.f32.mrb[43].mxu0 }
 0x876   :  { %3108 = vst [vmem:[#allocation4 + $0x48] sm:$0xff] %v3083_v49  ;;  %v3087_v58 = vadd.f32 %v3086_v30, %v2943_v46 }
 0x877   :  { %3109 = vst [vmem:[#allocation4 + $0x50] sm:$0xff] %v3085_v47 }
 0x878   :  { %3110 = vst [vmem:[#allocation4 + $0x58] sm:$0xff] %v3087_v58 }
 0x946   :  { %v3090_v4 = vpop.f32.mrb[44].mxu0 }
 0x947   :  { %v3091_v35 = vadd.f32 %v3090_v4, %v2939_v27  ;;  %v3092_v60 = vpop.f32.mrb[45].mxu0 }
 0x948   :  { %v3093_v48 = vadd.f32 %v3092_v60, %v2943_v46  ;;  %v3094_v26 = vpop.f32.mrb[46].mxu0 }
 0x949   :  { %3111 = vst [vmem:[#allocation4 + $0x60] sm:$0xff] %v3091_v35  ;;  %v3095_v8 = vadd.f32 %v3094_v26, %v2939_v27  ;;  %v3096_v11 = vpop.f32.mrb[47].mxu0 }
 0x94a   :  { %3112 = vst [vmem:[#allocation4 + $0x68] sm:$0xff] %v3093_v48  ;;  %v3097_v13 = vadd.f32 %v3096_v11, %v2943_v46 }
 0x94b   :  { %3113 = vst [vmem:[#allocation4 + $0x70] sm:$0xff] %v3095_v8 }
 0x94c   :  { %3114 = vst [vmem:[#allocation4 + $0x78] sm:$0xff] %v3097_v13 }
 0x94d   :  { %3794 = shalt.err (!%p3791_p4)
}
 0x94e   :  { %s3795_s1 = scalar_lea.hbm %s4845_s6, 2048 }
 0x94f   :  { %p3796_p5 = scmp.ne.s32.totalorder %s4845_s6, %s3795_s1  ;;  %p3799_p6 = scmp.lt.u32.totalorder %s3795_s1, %s4845_s6 }
 0x951   :  { %p3801_p7 = pnand %p3799_p6, %p3796_p5 }
 0x953   :  { %3804 = shalt.err (!%p3801_p7)
}
 0x954   :  { %s3809_s19 = smov 256   ;;  %s3810_s20 = smov 16  }
 0x955   :  { %3126 = dma.vmem_to_hbm [thread:$0]  %s3121_s12, 2048, %s4845_s6, [#allocation5], %s3809_s19, %s3809_s19, %s3810_s20  }
 0x956   :  { %3805 = dma.done.wait [#allocation5], 2048  }
 0x957   :  { %3806 = vsyncadd [#allocation5], 4294965248 }
 0x958   :  { %3130 = vsyncpa [#allocation5], 1 }

// kernel: decoder_rnn_forward.4
= control target key start
LH: loop header
LB: loop body
LE: loop exit
PB: predicated region body
PF: predicated region fallthrough
CT: control target
= control target key end

     0   :  { %9 = vsyncpa [#allocation4], 0  ;;  %s3537_s15 = smov [#allocation3]   ;;  %s4269_s0 = inlined_call_operand.vmem [shape: f32[8,8,128], index: 0, kind: input, shape index: {}]   ;;  %s4270_s1 = inlined_call_operand.vmem [shape: bf16[128,512], index: 1, kind: input, shape index: {}]   ;;  %s4271_s2 = inlined_call_operand.hbm [shape: bf16[128,512], index: 2, kind: input, shape index: {}]   ;;  %s4272_s3 = inlined_call_operand.vmem [shape: f32[1,512], index: 3, kind: input, shape index: {}]   ;;  %s4273_s4 = inlined_call_operand.vmem [shape: f32[8,8,128], index: 4, kind: output, shape index: {}]  }
   0x1   :  { %s19_s16 = sshll.u32 %s3537_s15, 4  ;;  %s3513_s19 = scalar_lea.hbm %s4271_s2, 4096  ;;  %s20_s16 = int_to_ptr.vmem [resolvable:$true] %s19_s16 }
   0x2   :  { %p3514_p0 = scmp.ne.s32.totalorder %s4271_s2, %s3513_s19  ;;  %p3517_p1 = scmp.lt.u32.totalorder %s3513_s19, %s4271_s2 }
   0x4   :  { %p3519_p2 = pnand %p3517_p1, %p3514_p0 }
   0x6   :  { %3522 = shalt.err (!%p3519_p2)
}
   0x7   :  { %s3523_s24 = scalar_lea.vmem %s20_s16, 4096  ;;  %p3528_p4 = scmp.lt.s32.totalorder %s20_s16, %s20_s16 }
   0x8   :  { %p3524_p3 = scmp.ne.s32.totalorder %s20_s16, %s3523_s24  ;;  %p3529_p5 = scmp.lt.s32.totalorder %s3523_s24, %s3523_s24 }
   0xa   :  { %p3530_p6 = por %p3529_p5, %p3528_p4 }
   0xc   :  { %p3531_p7 = pnand %p3530_p6, %p3524_p3 }
   0xe   :  { %3534 = shalt.err (!%p3531_p7)
}
   0xf   :  { %s3538_s25 = smov 256   ;;  %s3539_s26 = smov 16  }
  0x10   :  { %25 = dma.hbm_to_vmem [thread:$0]  %s4271_s2, 4096, %s20_s16, [#allocation4], %s3538_s25, %s3538_s25, %s3539_s26  }
  0x11   :  { %3535 = dma.done.wait [#allocation4], 4096  }
  0x12   :  { %3536 = vsyncadd [#allocation4], 4294963200  ;;  %v4274_v0 = vmov 0   ;;  %v3241_v1 = vld [vmem:[%s4270_s1 + $0x4] ss:$16 sps:$4 sm:$0xff]   ;;  %v33_v34 = vld [vmem:[%s4269_s0 + $0x8] sm:$0xff] }
  0x13   :  { %290 = vmatprep.mubr.bf16.mxu0 %v4274_v0  ;;  %363 = vmatprep.mubr.bf16.mxu1 %v4274_v0  ;;  %v3243_v2 = vld [vmem:[%s4270_s1 + $0xc] ss:$16 sps:$4 sm:$0xff]   ;;  %v3245_v3 = vld [vmem:[%s4270_s1] ss:$16 sps:$4 sm:$0xff]   ;;  %v3246_v4 = vld [vmem:[%s4270_s1 + $0x8] ss:$16 sps:$4 sm:$0xff]  }
  0x14   :  { %258 = vmatprep.subr.bf16.mxu0 %v3241_v1  ;;  %331 = vmatprep.subr.bf16.mxu1 %v3243_v2  ;;  %v3247_v5 = vld [vmem:[%s4270_s1 + $0x24] ss:$16 sps:$4 sm:$0xff]   ;;  %v3249_v6 = vld [vmem:[%s4270_s1 + $0x2c] ss:$16 sps:$4 sm:$0xff]   ;;  %v3251_v7 = vld [vmem:[%s4270_s1 + $0x20] ss:$16 sps:$4 sm:$0xff]  }
  0x15   :  { %259 = vmatpush1.bf16.msra.mxu0 %v3245_v3  ;;  %332 = vmatpush1.bf16.msra.mxu1 %v3246_v4  ;;  %v3252_v8 = vld [vmem:[%s4270_s1 + $0x28] ss:$16 sps:$4 sm:$0xff]   ;;  %v3253_v9 = vld [vmem:[%s4270_s1 + $0x44] ss:$16 sps:$4 sm:$0xff]   ;;  %v3255_v10 = vld [vmem:[%s4270_s1 + $0x4c] ss:$16 sps:$4 sm:$0xff]  }
  0x16   :  { %260 = vmatprep.subr.bf16.mxu0 %v3247_v5  ;;  %333 = vmatprep.subr.bf16.mxu1 %v3249_v6  ;;  %v3257_v11 = vld [vmem:[%s4270_s1 + $0x40] ss:$16 sps:$4 sm:$0xff]   ;;  %v3258_v12 = vld [vmem:[%s4270_s1 + $0x48] ss:$16 sps:$4 sm:$0xff]   ;;  %v3259_v13 = vld [vmem:[%s4270_s1 + $0x64] ss:$16 sps:$4 sm:$0xff]  }
  0x17   :  { %v3261_v14 = vld [vmem:[%s4270_s1 + $0x6c] ss:$16 sps:$4 sm:$0xff]   ;;  %v3263_v15 = vld [vmem:[%s4270_s1 + $0x60] ss:$16 sps:$4 sm:$0xff]   ;;  %v3264_v16 = vld [vmem:[%s4270_s1 + $0x68] ss:$16 sps:$4 sm:$0xff]  }
  0x18   :  { %v3265_v17 = vld [vmem:[%s4270_s1 + $0x84] ss:$16 sps:$4 sm:$0xff]   ;;  %v3267_v18 = vld [vmem:[%s4270_s1 + $0x8c] ss:$16 sps:$4 sm:$0xff]   ;;  %v3269_v19 = vld [vmem:[%s4270_s1 + $0x80] ss:$16 sps:$4 sm:$0xff]  }
  0x19   :  { %261 = vmatpush1.bf16.msra.mxu0 %v3251_v7  ;;  %334 = vmatpush1.bf16.msra.mxu1 %v3252_v8  ;;  %v3270_v20 = vld [vmem:[%s4270_s1 + $0x88] ss:$16 sps:$4 sm:$0xff]   ;;  %v3271_v21 = vld [vmem:[%s4270_s1 + $0xa4] ss:$16 sps:$4 sm:$0xff]   ;;  %v3273_v22 = vld [vmem:[%s4270_s1 + $0xac] ss:$16 sps:$4 sm:$0xff]  }
  0x1a   :  { %262 = vmatprep.subr.bf16.mxu0 %v3253_v9  ;;  %335 = vmatprep.subr.bf16.mxu1 %v3255_v10  ;;  %v3275_v23 = vld [vmem:[%s4270_s1 + $0xa0] ss:$16 sps:$4 sm:$0xff]   ;;  %v3276_v24 = vld [vmem:[%s4270_s1 + $0xa8] ss:$16 sps:$4 sm:$0xff]   ;;  %v3277_v25 = vld [vmem:[%s4270_s1 + $0xc4] ss:$16 sps:$4 sm:$0xff]  }
  0x1b   :  { %v3279_v26 = vld [vmem:[%s4270_s1 + $0xcc] ss:$16 sps:$4 sm:$0xff]   ;;  %v3281_v27 = vld [vmem:[%s4270_s1 + $0xc0] ss:$16 sps:$4 sm:$0xff]   ;;  %v3282_v28 = vld [vmem:[%s4270_s1 + $0xc8] ss:$16 sps:$4 sm:$0xff]  }
  0x1c   :  { %v3283_v29 = vld [vmem:[%s4270_s1 + $0xe4] ss:$16 sps:$4 sm:$0xff]   ;;  %v3285_v30 = vld [vmem:[%s4270_s1 + $0xec] ss:$16 sps:$4 sm:$0xff]   ;;  %v3287_v31 = vld [vmem:[%s4270_s1 + $0xe0] ss:$16 sps:$4 sm:$0xff]  }
  0x1d   :  { %263 = vmatpush1.bf16.msra.mxu0 %v3257_v11  ;;  %336 = vmatpush1.bf16.msra.mxu1 %v3258_v12  ;;  %v3288_v32 = vld [vmem:[%s4270_s1 + $0xe8] ss:$16 sps:$4 sm:$0xff]   ;;  %v32_v33 = vld [vmem:[%s4269_s0] sm:$0xff]  ;;  %v3684_v36 = vld [vmem:[#allocation3 + $0xc] ss:$16 sps:$4 sm:$0xff]  }
  0x1e   :  { %264 = vmatprep.subr.bf16.mxu0 %v3259_v13  ;;  %337 = vmatprep.subr.bf16.mxu1 %v3261_v14  ;;  %v3682_v35 = vld [vmem:[#allocation3 + $0x4] ss:$16 sps:$4 sm:$0xff]   ;;  %v40_v37 = vpack.c.bf16 %v33_v34, %v32_v33  ;;  %v3686_v38 = vld [vmem:[#allocation3] ss:$16 sps:$4 sm:$0xff]   ;;  %v3688_v39 = vld [vmem:[#allocation3 + $0x8] ss:$16 sps:$4 sm:$0xff]   ;;  %v78_v14 = vlaneseq }
  0x1f   :  { %v3692_v40 = vld [vmem:[#allocation3 + $0x24] ss:$16 sps:$4 sm:$0xff]   ;;  %v3694_v41 = vld [vmem:[#allocation3 + $0x2c] ss:$16 sps:$4 sm:$0xff]   ;;  %v3696_v42 = vld [vmem:[#allocation3 + $0x20] ss:$16 sps:$4 sm:$0xff]  }
  0x20   :  { %v3698_v43 = vld [vmem:[#allocation3 + $0x28] ss:$16 sps:$4 sm:$0xff]   ;;  %v34_v44 = vld [vmem:[%s4269_s0 + $0x10] sm:$0xff]  ;;  %v3712_v47 = vld [vmem:[#allocation3 + $0x4c] ss:$16 sps:$4 sm:$0xff]  }
  0x21   :  { %265 = vmatpush1.bf16.msra.mxu0 %v3263_v15  ;;  %338 = vmatpush1.bf16.msra.mxu1 %v3264_v16  ;;  %v35_v45 = vld [vmem:[%s4269_s0 + $0x18] sm:$0xff]  ;;  %v3710_v46 = vld [vmem:[#allocation3 + $0x44] ss:$16 sps:$4 sm:$0xff]   ;;  %v3716_v49 = vld [vmem:[#allocation3 + $0x40] ss:$16 sps:$4 sm:$0xff]   ;;  %v79_v15 = vshrl.u32 %v78_v14, 7 }
  0x22   :  { %266 = vmatprep.subr.bf16.mxu0 %v3265_v17  ;;  %339 = vmatprep.subr.bf16.mxu1 %v3267_v18  ;;  %v41_v48 = vpack.c.bf16 %v35_v45, %v34_v44  ;;  %v3718_v50 = vld [vmem:[#allocation3 + $0x48] ss:$16 sps:$4 sm:$0xff]   ;;  %v3722_v51 = vld [vmem:[#allocation3 + $0x64] ss:$16 sps:$4 sm:$0xff]   ;;  %v3726_v52 = vld [vmem:[#allocation3 + $0x6c] ss:$16 sps:$4 sm:$0xff]  }
  0x23   :  { %v3728_v53 = vld [vmem:[#allocation3 + $0x60] ss:$16 sps:$4 sm:$0xff]   ;;  %v3730_v54 = vld [vmem:[#allocation3 + $0x68] ss:$16 sps:$4 sm:$0xff]   ;;  %v3742_v57 = vld [vmem:[#allocation3 + $0x84] ss:$16 sps:$4 sm:$0xff]  }
  0x24   :  { %v36_v55 = vld [vmem:[%s4269_s0 + $0x20] sm:$0xff]  ;;  %v37_v56 = vld [vmem:[%s4269_s0 + $0x28] sm:$0xff]  ;;  %v38_v3 = vld [vmem:[%s4269_s0 + $0x30] sm:$0xff]  ;;  %v88_v16 = vsub.s32 2, %v79_v15  ;;  %v92_v17 = vsub.s32 3, %v79_v15  ;;  %v80_v18 = vsub.s32 0, %v79_v15 }
  0x25   :  { %267 = vmatpush1.bf16.msra.mxu0 %v3269_v19  ;;  %340 = vmatpush1.bf16.msra.mxu1 %v3270_v20  ;;  %v3744_v58 = vld [vmem:[#allocation3 + $0x8c] ss:$16 sps:$4 sm:$0xff]   ;;  %v3748_v59 = vld [vmem:[#allocation3 + $0x80] ss:$16 sps:$4 sm:$0xff]   ;;  %v3750_v60 = vld [vmem:[#allocation3 + $0x88] ss:$16 sps:$4 sm:$0xff]   ;;  %v42_v61 = vpack.c.bf16 %v37_v56, %v36_v55 }
  0x26   :  { %268 = vmatprep.subr.bf16.mxu0 %v3271_v21  ;;  %341 = vmatprep.subr.bf16.mxu1 %v3273_v22  ;;  %v3752_v62 = vld [vmem:[#allocation3 + $0xa4] ss:$16 sps:$4 sm:$0xff]   ;;  %v3754_v63 = vld [vmem:[#allocation3 + $0xac] ss:$16 sps:$4 sm:$0xff]   ;;  %v3760_v1 = vld [vmem:[#allocation3 + $0xa0] ss:$16 sps:$4 sm:$0xff]  }
  0x27   :  { %v3762_v2 = vld [vmem:[#allocation3 + $0xa8] ss:$16 sps:$4 sm:$0xff]   ;;  %v3770_v5 = vld [vmem:[#allocation3 + $0xc4] ss:$16 sps:$4 sm:$0xff]   ;;  %v3772_v6 = vld [vmem:[#allocation3 + $0xcc] ss:$16 sps:$4 sm:$0xff]  }
  0x28   :  { %v39_v4 = vld [vmem:[%s4269_s0 + $0x38] sm:$0xff]  ;;  %v3782_v8 = vld [vmem:[#allocation3 + $0xc0] ss:$16 sps:$4 sm:$0xff]   ;;  %v3788_v10 = vld [vmem:[#allocation3 + $0xe4] ss:$16 sps:$4 sm:$0xff]   ;;  %v84_v20 = vsub.s32 1, %v79_v15 }
  0x29   :  { %269 = vmatpush1.bf16.msra.mxu0 %v3275_v23  ;;  %342 = vmatpush1.bf16.msra.mxu1 %v3276_v24  ;;  %v43_v7 = vpack.c.bf16 %v39_v4, %v38_v3  ;;  %v3784_v9 = vld [vmem:[#allocation3 + $0xc8] ss:$16 sps:$4 sm:$0xff]   ;;  %v3790_v11 = vld [vmem:[#allocation3 + $0xec] ss:$16 sps:$4 sm:$0xff]   ;;  %v3794_v12 = vld [vmem:[#allocation3 + $0xe0] ss:$16 sps:$4 sm:$0xff]  }
  0x2a   :  { %270 = vmatprep.subr.bf16.mxu0 %v3277_v25  ;;  %343 = vmatprep.subr.bf16.mxu1 %v3279_v26  ;;  %v3796_v13 = vld [vmem:[#allocation3 + $0xe8] ss:$16 sps:$4 sm:$0xff]   ;;  %v76_v19 = vld [vmem:[%s4272_s3] sm:$0xf] }
  0x2b   :  { %v3845_v21 = vrot.slane %v76_v19, %v88_v16  ;;  %v3851_v24 = vrot.slane %v76_v19, %v92_v17  ;;  %v81_v25 = vrot.slane %v76_v19, %v80_v18 }
  0x2d   :  { %271 = vmatpush1.bf16.msra.mxu0 %v3281_v27  ;;  %344 = vmatpush1.bf16.msra.mxu1 %v3282_v28  ;;  %v85_v28 = vrot.slane %v76_v19, %v84_v20 }
  0x2e   :  { %272 = vmatprep.subr.bf16.mxu0 %v3283_v29  ;;  %345 = vmatprep.subr.bf16.mxu1 %v3285_v30 }
  0x31   :  { %273 = vmatpush1.bf16.msra.mxu0 %v3287_v31  ;;  %346 = vmatpush1.bf16.msra.mxu1 %v3288_v32 }
  0x32   :  { %632 = vmatprep.subr.bf16.mxu0 %v3682_v35  ;;  %673 = vmatprep.subr.bf16.mxu1 %v3684_v36 }
  0x34   :  { %291 = vmatmul.mubr.bf16.vlgmr.msra.gmra.mrb[0].mxu0 %v40_v37  ;;  %364 = vmatmul.mubr.bf16.vlgmr.msra.gmra.mrb[0].mxu1 %v40_v37 }
  0x35   :  { %633 = vmatpush1.bf16.msra.mxu0 %v3686_v38  ;;  %674 = vmatpush1.bf16.msra.mxu1 %v3688_v39 }
  0x36   :  { %634 = vmatprep.subr.bf16.mxu0 %v3692_v40  ;;  %675 = vmatprep.subr.bf16.mxu1 %v3694_v41 }
  0x37   :  { %300 = vmatprep.mubr.bf16.mxu0 %v4274_v0  ;;  %373 = vmatprep.mubr.bf16.mxu1 %v4274_v0 }
  0x39   :  { %635 = vmatpush1.bf16.msra.mxu0 %v3696_v42  ;;  %676 = vmatpush1.bf16.msra.mxu1 %v3698_v43 }
  0x3a   :  { %636 = vmatprep.subr.bf16.mxu0 %v3710_v46  ;;  %677 = vmatprep.subr.bf16.mxu1 %v3712_v47 }
  0x3c   :  { %301 = vmatmul.mubr.bf16.gmra.mrb[4].mxu0 %v41_v48  ;;  %374 = vmatmul.mubr.bf16.gmra.mrb[4].mxu1 %v41_v48 }
  0x3d   :  { %637 = vmatpush1.bf16.msra.mxu0 %v3716_v49  ;;  %678 = vmatpush1.bf16.msra.mxu1 %v3718_v50 }
  0x3e   :  { %638 = vmatprep.subr.bf16.mxu0 %v3722_v51  ;;  %679 = vmatprep.subr.bf16.mxu1 %v3726_v52 }
  0x3f   :  { %310 = vmatprep.mubr.bf16.mxu0 %v4274_v0  ;;  %383 = vmatprep.mubr.bf16.mxu1 %v4274_v0 }
  0x41   :  { %639 = vmatpush1.bf16.msra.mxu0 %v3728_v53  ;;  %680 = vmatpush1.bf16.msra.mxu1 %v3730_v54 }
  0x42   :  { %640 = vmatprep.subr.bf16.mxu0 %v3742_v57  ;;  %681 = vmatprep.subr.bf16.mxu1 %v3744_v58 }
  0x44   :  { %311 = vmatmul.mubr.bf16.gmra.mrb[8].mxu0 %v42_v61  ;;  %384 = vmatmul.mubr.bf16.gmra.mrb[8].mxu1 %v42_v61 }
  0x45   :  { %641 = vmatpush1.bf16.msra.mxu0 %v3748_v59  ;;  %682 = vmatpush1.bf16.msra.mxu1 %v3750_v60 }
  0x46   :  { %642 = vmatprep.subr.bf16.mxu0 %v3752_v62  ;;  %683 = vmatprep.subr.bf16.mxu1 %v3754_v63 }
  0x47   :  { %320 = vmatprep.mubr.bf16.mxu0 %v4274_v0  ;;  %393 = vmatprep.mubr.bf16.mxu1 %v4274_v0 }
  0x49   :  { %643 = vmatpush1.bf16.msra.mxu0 %v3760_v1  ;;  %684 = vmatpush1.bf16.msra.mxu1 %v3762_v2 }
  0x4a   :  { %644 = vmatprep.subr.bf16.mxu0 %v3770_v5  ;;  %685 = vmatprep.subr.bf16.mxu1 %v3772_v6 }
  0x4c   :  { %321 = vmatmul.mubr.bf16.gmra.mrb[12].mxu0 %v43_v7  ;;  %394 = vmatmul.mubr.bf16.gmra.mrb[12].mxu1 %v43_v7 }
  0x4d   :  { %645 = vmatpush1.bf16.msra.mxu0 %v3782_v8  ;;  %686 = vmatpush1.bf16.msra.mxu1 %v3784_v9 }
  0x4e   :  { %646 = vmatprep.subr.bf16.mxu0 %v3788_v10  ;;  %687 = vmatprep.subr.bf16.mxu1 %v3790_v11 }
  0x4f   :  { %664 = vmatprep.mubr.bf16.mxu0 %v4274_v0  ;;  %705 = vmatprep.mubr.bf16.mxu1 %v4274_v0 }
  0x51   :  { %647 = vmatpush1.bf16.msra.mxu0 %v3794_v12  ;;  %688 = vmatpush1.bf16.msra.mxu1 %v3796_v13 }
  0x52   :  { %941 = vmatprep.subr.bf16.mxu0 %v3682_v35  ;;  %982 = vmatprep.subr.bf16.mxu1 %v3684_v36 }
  0x54   :  { %665 = vmatmul.mubr.bf16.vlgmr.msra.gmra.mrb[16].mxu0 %v4274_v0  ;;  %706 = vmatmul.mubr.bf16.vlgmr.msra.gmra.mrb[16].mxu1 %v4274_v0 }
  0x55   :  { %942 = vmatpush1.bf16.msra.mxu0 %v3686_v38  ;;  %983 = vmatpush1.bf16.msra.mxu1 %v3688_v39 }
  0x56   :  { %943 = vmatprep.subr.bf16.mxu0 %v3692_v40  ;;  %984 = vmatprep.subr.bf16.mxu1 %v3694_v41 }
  0x57   :  { %973 = vmatprep.mubr.bf16.mxu0 %v4274_v0  ;;  %1014 = vmatprep.mubr.bf16.mxu1 %v4274_v0 }
  0x59   :  { %944 = vmatpush1.bf16.msra.mxu0 %v3696_v42  ;;  %985 = vmatpush1.bf16.msra.mxu1 %v3698_v43 }
  0x5a   :  { %945 = vmatprep.subr.bf16.mxu0 %v3710_v46  ;;  %986 = vmatprep.subr.bf16.mxu1 %v3712_v47 }
  0x5d   :  { %946 = vmatpush1.bf16.msra.mxu0 %v3716_v49  ;;  %987 = vmatpush1.bf16.msra.mxu1 %v3718_v50 }
  0x5e   :  { %947 = vmatprep.subr.bf16.mxu0 %v3722_v51  ;;  %988 = vmatprep.subr.bf16.mxu1 %v3726_v52 }
  0x61   :  { %948 = vmatpush1.bf16.msra.mxu0 %v3728_v53  ;;  %989 = vmatpush1.bf16.msra.mxu1 %v3730_v54 }
  0x62   :  { %949 = vmatprep.subr.bf16.mxu0 %v3742_v57  ;;  %990 = vmatprep.subr.bf16.mxu1 %v3744_v58 }
  0x65   :  { %950 = vmatpush1.bf16.msra.mxu0 %v3748_v59  ;;  %991 = vmatpush1.bf16.msra.mxu1 %v3750_v60 }
  0x66   :  { %951 = vmatprep.subr.bf16.mxu0 %v3752_v62  ;;  %992 = vmatprep.subr.bf16.mxu1 %v3754_v63 }
  0x69   :  { %952 = vmatpush1.bf16.msra.mxu0 %v3760_v1  ;;  %993 = vmatpush1.bf16.msra.mxu1 %v3762_v2 }
  0x6a   :  { %953 = vmatprep.subr.bf16.mxu0 %v3770_v5  ;;  %994 = vmatprep.subr.bf16.mxu1 %v3772_v6 }
  0x6d   :  { %954 = vmatpush1.bf16.msra.mxu0 %v3782_v8  ;;  %995 = vmatpush1.bf16.msra.mxu1 %v3784_v9 }
  0x6e   :  { %955 = vmatprep.subr.bf16.mxu0 %v3788_v10  ;;  %996 = vmatprep.subr.bf16.mxu1 %v3790_v11 }
  0x71   :  { %956 = vmatpush1.bf16.msra.mxu0 %v3794_v12  ;;  %997 = vmatpush1.bf16.msra.mxu1 %v3796_v13 }
  0x72   :  { %1251 = vmatprep.subr.bf16.mxu0 %v3682_v35  ;;  %1292 = vmatprep.subr.bf16.mxu1 %v3684_v36 }
 0x107   :  { %v3847_v22 = vpop.f32.mrb[0].mxu0  ;;  %v3849_v23 = vpop.f32.mrb[0].mxu1 }
 0x108   :  { %v294_v26 = vpop.f32.mrb[1].mxu0  ;;  %v367_v27 = vpop.f32.mrb[1].mxu1 }
 0x109   :  { %v296_v29 = vpop.f32.mrb[2].mxu0  ;;  %v369_v30 = vpop.f32.mrb[2].mxu1 }
 0x10a   :  { %v3853_v31 = vadd.f32 %v296_v29, %v81_v25  ;;  %v298_v32 = vpop.f32.mrb[3].mxu0  ;;  %v3856_v33 = vadd.f32 %v369_v30, %v3845_v21  ;;  %v371_v34 = vpop.f32.mrb[3].mxu1 }
 0x10b   :  { %v3858_v37 = vadd.f32 %v298_v32, %v85_v28  ;;  %v3861_v44 = vadd.f32 %v371_v34, %v3851_v24 }
 0x10f   :  { %v302_v45 = vpop.f32.mrb[4].mxu0  ;;  %v375_v48 = vpop.f32.mrb[4].mxu1 }
 0x110   :  { %v3863_v55 = vadd.f32 %v302_v45, %v81_v25  ;;  %v304_v56 = vpop.f32.mrb[5].mxu0  ;;  %v3866_v61 = vadd.f32 %v375_v48, %v3845_v21  ;;  %v377_v3 = vpop.f32.mrb[5].mxu1 }
 0x111   :  { %v3868_v4 = vadd.f32 %v304_v56, %v85_v28  ;;  %v306_v7 = vpop.f32.mrb[6].mxu0  ;;  %v3871_v14 = vadd.f32 %v377_v3, %v3851_v24  ;;  %v379_v15 = vpop.f32.mrb[6].mxu1 }
 0x112   :  { %v3873_v16 = vadd.f32 %v306_v7, %v81_v25  ;;  %v308_v17 = vpop.f32.mrb[7].mxu0  ;;  %v3876_v18 = vadd.f32 %v379_v15, %v3845_v21  ;;  %v381_v19 = vpop.f32.mrb[7].mxu1 }
 0x113   :  { %4276 = vst [vmem:[#allocation6_spill] sm:$0xff] %v3871_v14  ;;  %v3878_v20 = vadd.f32 %v308_v17, %v85_v28  ;;  %v3881_v29 = vadd.f32 %v381_v19, %v3851_v24 }
 0x114   :  { %4277 = vst [vmem:[#allocation7_spill] sm:$0xff] %v3873_v16  ;;  %4278 = vst [vmem:[#allocation8_spill] sm:$0xff] %v3876_v18 }
 0x115   :  { %4279 = vst [vmem:[#allocation9_spill] sm:$0xff] %v3878_v20  ;;  %4280 = vst [vmem:[#allocation10_spill] sm:$0xff] %v3881_v29 }
 0x117   :  { %v312_v30 = vpop.f32.mrb[8].mxu0  ;;  %v385_v32 = vpop.f32.mrb[8].mxu1 }
 0x118   :  { %v3883_v34 = vadd.f32 %v312_v30, %v81_v25  ;;  %v314_v45 = vpop.f32.mrb[9].mxu0  ;;  %v3886_v48 = vadd.f32 %v385_v32, %v3845_v21  ;;  %v387_v56 = vpop.f32.mrb[9].mxu1 }
 0x119   :  { %v3888_v3 = vadd.f32 %v314_v45, %v85_v28  ;;  %v316_v7 = vpop.f32.mrb[10].mxu0  ;;  %v3891_v15 = vadd.f32 %v387_v56, %v3851_v24  ;;  %v389_v17 = vpop.f32.mrb[10].mxu1 }
 0x11a   :  { %4281 = vst [vmem:[#allocation11_spill] sm:$0xff] %v3883_v34  ;;  %4282 = vst [vmem:[#allocation12_spill] sm:$0xff] %v3886_v48  ;;  %v3893_v0 = vadd.f32 %v316_v7, %v81_v25  ;;  %v318_v19 = vpop.f32.mrb[11].mxu0  ;;  %v3896_v29 = vadd.f32 %v389_v17, %v3845_v21  ;;  %v391_v30 = vpop.f32.mrb[11].mxu1 }
 0x11b   :  { %4283 = vst [vmem:[#allocation13_spill] sm:$0xff] %v3888_v3  ;;  %4284 = vst [vmem:[#allocation14_spill] sm:$0xff] %v3891_v15  ;;  %v3898_v34 = vadd.f32 %v318_v19, %v85_v28  ;;  %v3901_v32 = vadd.f32 %v391_v30, %v3851_v24 }
 0x11c   :  { %4285 = vst [vmem:[#allocation15_spill] sm:$0xff] %v3893_v0  ;;  %4286 = vst [vmem:[#allocation16_spill] sm:$0xff] %v3896_v29 }
 0x11d   :  { %4287 = vst [vmem:[#allocation17_spill] sm:$0xff] %v3898_v34  ;;  %4288 = vst [vmem:[#allocation18_spill] sm:$0xff] %v3901_v32 }
 0x11f   :  { %v322_v48 = vpop.f32.mrb[12].mxu0  ;;  %v395_v45 = vpop.f32.mrb[12].mxu1 }
 0x120   :  { %v3903_v3 = vadd.f32 %v322_v48, %v81_v25  ;;  %v324_v20 = vpop.f32.mrb[13].mxu0  ;;  %v3906_v56 = vadd.f32 %v395_v45, %v3845_v21  ;;  %v397_v7 = vpop.f32.mrb[13].mxu1 }
 0x121   :  { %v3908_v0 = vadd.f32 %v324_v20, %v85_v28  ;;  %v326_v15 = vpop.f32.mrb[14].mxu0  ;;  %v3911_v17 = vadd.f32 %v397_v7, %v3851_v24  ;;  %v399_v19 = vpop.f32.mrb[14].mxu1  ;;  %v293_v20 = vadd.f32 %v3847_v22, %v81_v25  ;;  %v295_v7 = vadd.f32 %v294_v26, %v85_v28 }
 0x122   :  { %4289 = vst [vmem:[#allocation19_spill] sm:$0xff] %v3903_v3  ;;  %4290 = vst [vmem:[#allocation20_spill] sm:$0xff] %v3906_v56  ;;  %v3913_v34 = vadd.f32 %v326_v15, %v81_v25  ;;  %v328_v30 = vpop.f32.mrb[15].mxu0  ;;  %v3916_v32 = vadd.f32 %v399_v19, %v3845_v21  ;;  %v401_v48 = vpop.f32.mrb[15].mxu1 }
 0x123   :  { %4291 = vst [vmem:[#allocation21_spill] sm:$0xff] %v3908_v0  ;;  %4292 = vst [vmem:[#allocation22_spill] sm:$0xff] %v3911_v17  ;;  %v3918_v3 = vadd.f32 %v328_v30, %v85_v28  ;;  %v3921_v45 = vadd.f32 %v401_v48, %v3851_v24  ;;  %v366_v0 = vadd.f32 %v3849_v23, %v3845_v21 }
 0x124   :  { %4293 = vst [vmem:[#allocation23_spill] sm:$0xff] %v3913_v34  ;;  %4294 = vst [vmem:[#allocation24_spill] sm:$0xff] %v3916_v32  ;;  %v368_v17 = vadd.f32 %v367_v27, %v3851_v24 }
 0x125   :  { %4295 = vst [vmem:[#allocation25_spill] sm:$0xff] %v3918_v3  ;;  %4296 = vst [vmem:[#allocation26_spill] sm:$0xff] %v3921_v45 }
 0x127   :  { %v666_v15 = vpop.f32.mrb[16].mxu0  ;;  %v707_v34 = vpop.f32.mrb[16].mxu1 }
 0x128   :  { %v714_v56 = vadd.f32 %v666_v15, %v293_v20  ;;  %v716_v29 = vadd.f32 %v707_v34, %v366_v0  ;;  %v668_v19 = vpop.f32.mrb[17].mxu0  ;;  %v709_v32 = vpop.f32.mrb[17].mxu1 }
 0x129   :  { %v715_v18 = vadd.f32 %v668_v19, %v295_v7  ;;  %v717_v30 = vadd.f32 %v709_v32, %v368_v17  ;;  %v670_v3 = vpop.f32.mrb[18].mxu0  ;;  %v711_v16 = vpop.f32.mrb[18].mxu1 }
 0x12a   :  { %v2982_v48 = vmul.f32 -1.442695, %v714_v56  ;;  %v671_v45 = vpop.f32.mrb[19].mxu0  ;;  %v712_v14 = vpop.f32.mrb[19].mxu1 }
 0x12b   :  { %v2983_v22 = vmul.f32 -1.442695, %v715_v18  ;;  %v2984_v21 = vmul.f32 -1.442695, %v717_v30  ;;  %v4297_v45 = vmov 0  }
 0x12c   :  { %3385 = vpow2.f32 %v2982_v48 }
 0x12d   :  { %3387 = vpow2.f32 %v2983_v22 }
 0x12e   :  { %3389 = vpow2.f32 %v2984_v21 }
 0x12f   :  { %3391 = vtanh.f32 %v716_v29 }
 0x136   :  { %v3386_v23 = vpop.eup %3385 }
 0x137   :  { %v3388_v25 = vpop.eup %3387  ;;  %v721_v24 = vadd.f32 1.0, %v3386_v23 }
 0x138   :  { %v727_v26 = vadd.f32 1.0, %v3388_v25  ;;  %v3390_v0 = vpop.eup %3389 }
 0x139   :  { %3393 = vrcp.f32 %v721_v24  ;;  %v3392_v27 = vpop.eup %3391  ;;  %v734_v3 = vadd.f32 1.0, %v3390_v0 }
 0x13a   :  { %3395 = vrcp.f32 %v727_v26 }
 0x13b   :  { %3397 = vrcp.f32 %v734_v3 }
 0x143   :  { %v3394_v28 = vpop.eup %3393 }
 0x144   :  { %v3396_v34 = vpop.eup %3395  ;;  %v738_v16 = vmul.f32 %v3394_v28, %v3392_v27 }
 0x145   :  { %v737_v32 = vmul.f32 0.0, %v3396_v34  ;;  %v3398_v18 = vpop.eup %3397 }
 0x147   :  { %v3927_v14 = vadd.f32 %v738_v16, %v737_v32 }
 0x149   :  { %3399 = vtanh.f32 %v3927_v14 }
 0x153   :  { %v3400_v56 = vpop.eup %3399 }
 0x154   :  { %v741_v17 = vmul.f32 %v3400_v56, %v3398_v18 }
 0x156   :  { %742 = vst [vmem:[%s4273_s4] sm:$0xff] %v741_v17  ;;  %v748_v29 = vpack.c.bf16 %v741_v17, %v741_v17 }
 0x158   :  { %974 = vmatmul.mubr.bf16.vlgmr.msra.gmra.mrb[20].mxu0 %v748_v29  ;;  %1015 = vmatmul.mubr.bf16.vlgmr.msra.gmra.mrb[20].mxu1 %v748_v29 }
 0x159   :  { %1252 = vmatpush1.bf16.msra.mxu0 %v3686_v38  ;;  %1293 = vmatpush1.bf16.msra.mxu1 %v3688_v39 }
 0x15a   :  { %1253 = vmatprep.subr.bf16.mxu0 %v3692_v40  ;;  %1294 = vmatprep.subr.bf16.mxu1 %v3694_v41 }
 0x15b   :  { %1283 = vmatprep.mubr.bf16.mxu0 %v4297_v45  ;;  %1324 = vmatprep.mubr.bf16.mxu1 %v4297_v45 }
 0x15d   :  { %1254 = vmatpush1.bf16.msra.mxu0 %v3696_v42  ;;  %1295 = vmatpush1.bf16.msra.mxu1 %v3698_v43 }
 0x15e   :  { %1255 = vmatprep.subr.bf16.mxu0 %v3710_v46  ;;  %1296 = vmatprep.subr.bf16.mxu1 %v3712_v47 }
 0x161   :  { %1256 = vmatpush1.bf16.msra.mxu0 %v3716_v49  ;;  %1297 = vmatpush1.bf16.msra.mxu1 %v3718_v50 }
 0x162   :  { %1257 = vmatprep.subr.bf16.mxu0 %v3722_v51  ;;  %1298 = vmatprep.subr.bf16.mxu1 %v3726_v52 }
 0x165   :  { %1258 = vmatpush1.bf16.msra.mxu0 %v3728_v53  ;;  %1299 = vmatpush1.bf16.msra.mxu1 %v3730_v54 }
 0x166   :  { %1259 = vmatprep.subr.bf16.mxu0 %v3742_v57  ;;  %1300 = vmatprep.subr.bf16.mxu1 %v3744_v58 }
 0x169   :  { %1260 = vmatpush1.bf16.msra.mxu0 %v3748_v59  ;;  %1301 = vmatpush1.bf16.msra.mxu1 %v3750_v60 }
 0x16a   :  { %1261 = vmatprep.subr.bf16.mxu0 %v3752_v62  ;;  %1302 = vmatprep.subr.bf16.mxu1 %v3754_v63 }
 0x16d   :  { %1262 = vmatpush1.bf16.msra.mxu0 %v3760_v1  ;;  %1303 = vmatpush1.bf16.msra.mxu1 %v3762_v2 }
 0x16e   :  { %1263 = vmatprep.subr.bf16.mxu0 %v3770_v5  ;;  %1304 = vmatprep.subr.bf16.mxu1 %v3772_v6 }
 0x171   :  { %1264 = vmatpush1.bf16.msra.mxu0 %v3782_v8  ;;  %1305 = vmatpush1.bf16.msra.mxu1 %v3784_v9 }
 0x172   :  { %1265 = vmatprep.subr.bf16.mxu0 %v3788_v10  ;;  %1306 = vmatprep.subr.bf16.mxu1 %v3790_v11 }
 0x175   :  { %1266 = vmatpush1.bf16.msra.mxu0 %v3794_v12  ;;  %1307 = vmatpush1.bf16.msra.mxu1 %v3796_v13 }
 0x176   :  { %1561 = vmatprep.subr.bf16.mxu0 %v3682_v35  ;;  %1602 = vmatprep.subr.bf16.mxu1 %v3684_v36 }
 0x22b   :  { %v975_v20 = vpop.f32.mrb[20].mxu0  ;;  %v1016_v7 = vpop.f32.mrb[20].mxu1 }
 0x22c   :  { %v1023_v15 = vadd.f32 %v975_v20, %v3853_v31  ;;  %v1025_v19 = vadd.f32 %v1016_v7, %v3856_v33  ;;  %v977_v30 = vpop.f32.mrb[21].mxu0  ;;  %v1018_v48 = vpop.f32.mrb[21].mxu1 }
 0x22d   :  { %v1024_v22 = vadd.f32 %v977_v30, %v3858_v37  ;;  %v1026_v21 = vadd.f32 %v1018_v48, %v3861_v44  ;;  %v979_v23 = vpop.f32.mrb[22].mxu0  ;;  %v1020_v25 = vpop.f32.mrb[22].mxu1  ;;  %v4035_v30 = vld [vmem:[#allocation3 + $0x24] ss:$16 sps:$4 sm:$0xff]   ;;  %v4037_v48 = vld [vmem:[#allocation3 + $0x2c] ss:$16 sps:$4 sm:$0xff]  }
 0x22e   :  { %v3017_v24 = vmul.f32 -1.442695, %v1023_v15  ;;  %v980_v26 = vpop.f32.mrb[23].mxu0  ;;  %v1021_v0 = vpop.f32.mrb[23].mxu1  ;;  %v4027_v15 = vld [vmem:[#allocation3] ss:$16 sps:$4 sm:$0xff]  }
 0x22f   :  { %v3018_v35 = vmul.f32 -1.442695, %v1024_v22  ;;  %v3019_v36 = vmul.f32 -1.442695, %v1026_v21  ;;  %v4039_v22 = vld [vmem:[#allocation3 + $0x20] ss:$16 sps:$4 sm:$0xff]  }
 0x230   :  { %3401 = vpow2.f32 %v3017_v24  ;;  %v4041_v21 = vld [vmem:[#allocation3 + $0x28] ss:$16 sps:$4 sm:$0xff]   ;;  %v4047_v23 = vld [vmem:[#allocation3 + $0x44] ss:$16 sps:$4 sm:$0xff]   ;;  %v4049_v25 = vld [vmem:[#allocation3 + $0x4c] ss:$16 sps:$4 sm:$0xff]  }
 0x231   :  { %3403 = vpow2.f32 %v3018_v35  ;;  %v4051_v24 = vld [vmem:[#allocation3 + $0x40] ss:$16 sps:$4 sm:$0xff]   ;;  %v4053_v26 = vld [vmem:[#allocation3 + $0x48] ss:$16 sps:$4 sm:$0xff]   ;;  %v4059_v0 = vld [vmem:[#allocation3 + $0x64] ss:$16 sps:$4 sm:$0xff]  }
 0x232   :  { %3405 = vpow2.f32 %v3019_v36  ;;  %v4061_v35 = vld [vmem:[#allocation3 + $0x6c] ss:$16 sps:$4 sm:$0xff]   ;;  %v4063_v36 = vld [vmem:[#allocation3 + $0x60] ss:$16 sps:$4 sm:$0xff]  }
 0x233   :  { %3407 = vtanh.f32 %v1025_v19  ;;  %v4029_v19 = vld [vmem:[#allocation3 + $0x8] ss:$16 sps:$4 sm:$0xff]  }
 0x23a   :  { %v3402_v27 = vpop.eup %3401 }
 0x23b   :  { %v3404_v28 = vpop.eup %3403  ;;  %v1030_v31 = vadd.f32 1.0, %v3402_v27  ;;  %v4065_v27 = vld [vmem:[#allocation3 + $0x68] ss:$16 sps:$4 sm:$0xff]  }
 0x23c   :  { %v1036_v33 = vadd.f32 1.0, %v3404_v28  ;;  %v3406_v37 = vpop.eup %3405  ;;  %v4071_v28 = vld [vmem:[#allocation3 + $0x84] ss:$16 sps:$4 sm:$0xff]  }
 0x23d   :  { %3409 = vrcp.f32 %v1030_v31  ;;  %v3408_v34 = vpop.eup %3407  ;;  %v1043_v32 = vadd.f32 1.0, %v3406_v37  ;;  %v4073_v31 = vld [vmem:[#allocation3 + $0x8c] ss:$16 sps:$4 sm:$0xff]   ;;  %v4077_v37 = vld [vmem:[#allocation3 + $0x88] ss:$16 sps:$4 sm:$0xff]  }
 0x23e   :  { %3411 = vrcp.f32 %v1036_v33  ;;  %v4075_v33 = vld [vmem:[#allocation3 + $0x80] ss:$16 sps:$4 sm:$0xff]  }
 0x23f   :  { %3413 = vrcp.f32 %v1043_v32  ;;  %v4092_v32 = vld [vmem:[#allocation3 + $0xc4] ss:$16 sps:$4 sm:$0xff]  }
 0x247   :  { %v3410_v44 = vpop.eup %3409 }
 0x248   :  { %v3412_v16 = vpop.eup %3411  ;;  %v1047_v3 = vmul.f32 %v3410_v44, %v3408_v34  ;;  %v4081_v34 = vld [vmem:[#allocation3 + $0xa4] ss:$16 sps:$4 sm:$0xff]   ;;  %v4085_v44 = vld [vmem:[#allocation3 + $0xa0] ss:$16 sps:$4 sm:$0xff]  }
 0x249   :  { %v1046_v18 = vmul.f32 %v3412_v16, %v3927_v14  ;;  %v3414_v17 = vpop.eup %3413  ;;  %v4025_v14 = vld [vmem:[#allocation3 + $0xc] ss:$16 sps:$4 sm:$0xff]   ;;  %v4087_v16 = vld [vmem:[#allocation3 + $0xa8] ss:$16 sps:$4 sm:$0xff]  }
 0x24b   :  { %v3972_v56 = vadd.f32 %v1047_v3, %v1046_v18  ;;  %v4089_v3 = vld [vmem:[#allocation3 + $0xac] ss:$16 sps:$4 sm:$0xff]  }
 0x24c   :  { %v4094_v18 = vld [vmem:[#allocation3 + $0xcc] ss:$16 sps:$4 sm:$0xff]  }
 0x24d   :  { %3415 = vtanh.f32 %v3972_v56 }
 0x257   :  { %v3416_v29 = vpop.eup %3415 }
 0x258   :  { %v1050_v20 = vmul.f32 %v3416_v29, %v3414_v17  ;;  %v4101_v17 = vld [vmem:[#allocation3 + $0xc8] ss:$16 sps:$4 sm:$0xff]   ;;  %v4105_v29 = vld [vmem:[#allocation3 + $0xe4] ss:$16 sps:$4 sm:$0xff]  }
 0x25a   :  { %3020 = vst [vmem:[%s4273_s4 + $0x8] sm:$0xff] %v1050_v20  ;;  %v1058_v7 = vpack.c.bf16 %v1050_v20, %v1050_v20  ;;  %v4107_v20 = vld [vmem:[#allocation3 + $0xec] ss:$16 sps:$4 sm:$0xff]  }
 0x25c   :  { %1284 = vmatmul.mubr.bf16.vlgmr.msra.gmra.mrb[24].mxu0 %v1058_v7  ;;  %1325 = vmatmul.mubr.bf16.vlgmr.msra.gmra.mrb[24].mxu1 %v1058_v7  ;;  %v4111_v7 = vld [vmem:[#allocation3 + $0xe0] ss:$16 sps:$4 sm:$0xff]  }
 0x25d   :  { %1562 = vmatpush1.bf16.msra.mxu0 %v3686_v38  ;;  %1603 = vmatpush1.bf16.msra.mxu1 %v3688_v39 }
 0x25e   :  { %1563 = vmatprep.subr.bf16.mxu0 %v3692_v40  ;;  %1604 = vmatprep.subr.bf16.mxu1 %v3694_v41 }
 0x25f   :  { %1593 = vmatprep.mubr.bf16.mxu0 %v4297_v45  ;;  %1634 = vmatprep.mubr.bf16.mxu1 %v4297_v45 }
 0x261   :  { %1564 = vmatpush1.bf16.msra.mxu0 %v3696_v42  ;;  %1605 = vmatpush1.bf16.msra.mxu1 %v3698_v43 }
 0x262   :  { %1565 = vmatprep.subr.bf16.mxu0 %v3710_v46  ;;  %1606 = vmatprep.subr.bf16.mxu1 %v3712_v47  ;;  %v4298_v47 = vld [vmem:[#allocation6_spill] sm:$0xff] }
 0x265   :  { %1566 = vmatpush1.bf16.msra.mxu0 %v3716_v49  ;;  %1607 = vmatpush1.bf16.msra.mxu1 %v3718_v50 }
 0x266   :  { %1567 = vmatprep.subr.bf16.mxu0 %v3722_v51  ;;  %1608 = vmatprep.subr.bf16.mxu1 %v3726_v52 }
 0x269   :  { %1568 = vmatpush1.bf16.msra.mxu0 %v3728_v53  ;;  %1609 = vmatpush1.bf16.msra.mxu1 %v3730_v54 }
 0x26a   :  { %1569 = vmatprep.subr.bf16.mxu0 %v3742_v57  ;;  %1610 = vmatprep.subr.bf16.mxu1 %v3744_v58 }
 0x26d   :  { %1570 = vmatpush1.bf16.msra.mxu0 %v3748_v59  ;;  %1611 = vmatpush1.bf16.msra.mxu1 %v3750_v60 }
 0x26e   :  { %1571 = vmatprep.subr.bf16.mxu0 %v3752_v62  ;;  %1612 = vmatprep.subr.bf16.mxu1 %v3754_v63 }
 0x271   :  { %1572 = vmatpush1.bf16.msra.mxu0 %v3760_v1  ;;  %1613 = vmatpush1.bf16.msra.mxu1 %v3762_v2 }
 0x272   :  { %1573 = vmatprep.subr.bf16.mxu0 %v3770_v5  ;;  %1614 = vmatprep.subr.bf16.mxu1 %v3772_v6 }
 0x275   :  { %1574 = vmatpush1.bf16.msra.mxu0 %v3782_v8  ;;  %1615 = vmatpush1.bf16.msra.mxu1 %v3784_v9 }
 0x276   :  { %1575 = vmatprep.subr.bf16.mxu0 %v3788_v10  ;;  %1616 = vmatprep.subr.bf16.mxu1 %v3790_v11 }
 0x279   :  { %1576 = vmatpush1.bf16.msra.mxu0 %v3794_v12  ;;  %1617 = vmatpush1.bf16.msra.mxu1 %v3796_v13 }
 0x27a   :  { %1912 = vmatprep.subr.bf16.mxu1 %v4025_v14 }
 0x32f   :  { %v1285_v38 = vpop.f32.mrb[24].mxu0  ;;  %v1326_v39 = vpop.f32.mrb[24].mxu1 }
 0x330   :  { %v1333_v40 = vadd.f32 %v1285_v38, %v3863_v55  ;;  %v1335_v41 = vadd.f32 %v1326_v39, %v3866_v61  ;;  %v1287_v42 = vpop.f32.mrb[25].mxu0  ;;  %v1328_v43 = vpop.f32.mrb[25].mxu1  ;;  %v4113_v38 = vld [vmem:[#allocation3 + $0xe8] ss:$16 sps:$4 sm:$0xff]  }
 0x331   :  { %v1334_v46 = vadd.f32 %v1287_v42, %v3868_v4  ;;  %v1336_v49 = vadd.f32 %v1328_v43, %v4298_v47  ;;  %v1289_v50 = vpop.f32.mrb[26].mxu0  ;;  %v1330_v51 = vpop.f32.mrb[26].mxu1  ;;  %v4023_v4 = vld [vmem:[#allocation3 + $0x4] ss:$16 sps:$4 sm:$0xff]  }
 0x332   :  { %v3053_v52 = vmul.f32 -1.442695, %v1333_v40  ;;  %v1290_v53 = vpop.f32.mrb[27].mxu0  ;;  %v1331_v54 = vpop.f32.mrb[27].mxu1  ;;  %1871 = vmatprep.subr.bf16.mxu0 %v4023_v4  ;;  %v4300_v43 = vld [vmem:[#allocation8_spill] sm:$0xff]  ;;  %v4301_v50 = vld [vmem:[#allocation9_spill] sm:$0xff] }
 0x333   :  { %v3054_v57 = vmul.f32 -1.442695, %v1334_v46  ;;  %v3055_v58 = vmul.f32 -1.442695, %v1336_v49 }
 0x334   :  { %3417 = vpow2.f32 %v3053_v52  ;;  %v4302_v52 = vld [vmem:[#allocation10_spill] sm:$0xff] }
 0x335   :  { %3419 = vpow2.f32 %v3054_v57 }
 0x336   :  { %3421 = vpow2.f32 %v3055_v58 }
 0x337   :  { %3423 = vtanh.f32 %v1335_v41  ;;  %v4299_v41 = vld [vmem:[#allocation7_spill] sm:$0xff] }
 0x33e   :  { %v3418_v59 = vpop.eup %3417 }
 0x33f   :  { %v3420_v60 = vpop.eup %3419  ;;  %v1340_v62 = vadd.f32 1.0, %v3418_v59 }
 0x340   :  { %v1346_v63 = vadd.f32 1.0, %v3420_v60  ;;  %v3422_v1 = vpop.eup %3421 }
 0x341   :  { %3425 = vrcp.f32 %v1340_v62  ;;  %v3424_v2 = vpop.eup %3423  ;;  %v1353_v9 = vadd.f32 1.0, %v3422_v1 }
 0x342   :  { %3427 = vrcp.f32 %v1346_v63 }
 0x343   :  { %3429 = vrcp.f32 %v1353_v9 }
 0x34b   :  { %v3426_v5 = vpop.eup %3425 }
 0x34c   :  { %v3428_v6 = vpop.eup %3427  ;;  %v1357_v8 = vmul.f32 %v3426_v5, %v3424_v2 }
 0x34d   :  { %v1356_v10 = vmul.f32 %v3428_v6, %v3972_v56  ;;  %v3430_v12 = vpop.eup %3429  ;;  %v4099_v56 = vld [vmem:[#allocation3 + $0xc0] ss:$16 sps:$4 sm:$0xff]  }
 0x34f   :  { %v4015_v11 = vadd.f32 %v1357_v8, %v1356_v10 }
 0x351   :  { %3431 = vtanh.f32 %v4015_v11 }
 0x35b   :  { %v3432_v13 = vpop.eup %3431 }
 0x35c   :  { %v1360_v55 = vmul.f32 %v3432_v13, %v3430_v12 }
 0x35e   :  { %3056 = vst [vmem:[%s4273_s4 + $0x10] sm:$0xff] %v1360_v55  ;;  %v1368_v61 = vpack.c.bf16 %v1360_v55, %v1360_v55 }
 0x360   :  { %1594 = vmatmul.mubr.bf16.vlgmr.msra.gmra.mrb[28].mxu0 %v1368_v61  ;;  %1635 = vmatmul.mubr.bf16.vlgmr.msra.gmra.mrb[28].mxu1 %v1368_v61 }
 0x361   :  { %1903 = vmatprep.mubr.bf16.mxu0 %v4297_v45  ;;  %1944 = vmatprep.mubr.bf16.mxu1 %v4297_v45 }
 0x362   :  { %1872 = vmatpush1.bf16.msra.mxu0 %v4027_v15  ;;  %1913 = vmatpush1.bf16.msra.mxu1 %v4029_v19 }
 0x363   :  { %1873 = vmatprep.subr.bf16.mxu0 %v4035_v30  ;;  %1914 = vmatprep.subr.bf16.mxu1 %v4037_v48 }
 0x366   :  { %1874 = vmatpush1.bf16.msra.mxu0 %v4039_v22  ;;  %1915 = vmatpush1.bf16.msra.mxu1 %v4041_v21 }
 0x367   :  { %1875 = vmatprep.subr.bf16.mxu0 %v4047_v23  ;;  %1916 = vmatprep.subr.bf16.mxu1 %v4049_v25 }
 0x36a   :  { %1876 = vmatpush1.bf16.msra.mxu0 %v4051_v24  ;;  %1917 = vmatpush1.bf16.msra.mxu1 %v4053_v26 }
 0x36b   :  { %1877 = vmatprep.subr.bf16.mxu0 %v4059_v0  ;;  %1918 = vmatprep.subr.bf16.mxu1 %v4061_v35 }
 0x36e   :  { %1878 = vmatpush1.bf16.msra.mxu0 %v4063_v36  ;;  %1919 = vmatpush1.bf16.msra.mxu1 %v4065_v27 }
 0x36f   :  { %1879 = vmatprep.subr.bf16.mxu0 %v4071_v28  ;;  %1920 = vmatprep.subr.bf16.mxu1 %v4073_v31 }
 0x372   :  { %1880 = vmatpush1.bf16.msra.mxu0 %v4075_v33  ;;  %1921 = vmatpush1.bf16.msra.mxu1 %v4077_v37 }
 0x373   :  { %1881 = vmatprep.subr.bf16.mxu0 %v4081_v34  ;;  %1922 = vmatprep.subr.bf16.mxu1 %v4089_v3 }
 0x376   :  { %1882 = vmatpush1.bf16.msra.mxu0 %v4085_v44  ;;  %1923 = vmatpush1.bf16.msra.mxu1 %v4087_v16 }
 0x377   :  { %1883 = vmatprep.subr.bf16.mxu0 %v4092_v32  ;;  %1924 = vmatprep.subr.bf16.mxu1 %v4094_v18 }
 0x37a   :  { %1884 = vmatpush1.bf16.msra.mxu0 %v4099_v56  ;;  %1925 = vmatpush1.bf16.msra.mxu1 %v4101_v17 }
 0x37b   :  { %1885 = vmatprep.subr.bf16.mxu0 %v4105_v29  ;;  %1926 = vmatprep.subr.bf16.mxu1 %v4107_v20 }
 0x37e   :  { %1886 = vmatpush1.bf16.msra.mxu0 %v4111_v7  ;;  %1927 = vmatpush1.bf16.msra.mxu1 %v4113_v38 }
 0x37f   :  { %2181 = vmatprep.subr.bf16.mxu0 %v4023_v4  ;;  %2222 = vmatprep.subr.bf16.mxu1 %v4025_v14 }
 0x433   :  { %v1595_v39 = vpop.f32.mrb[28].mxu0  ;;  %v1636_v40 = vpop.f32.mrb[28].mxu1 }
 0x434   :  { %v1643_v42 = vadd.f32 %v1595_v39, %v4299_v41  ;;  %v1645_v46 = vadd.f32 %v1636_v40, %v4300_v43  ;;  %v1597_v47 = vpop.f32.mrb[29].mxu0  ;;  %v1638_v49 = vpop.f32.mrb[29].mxu1 }
 0x435   :  { %v1644_v51 = vadd.f32 %v1597_v47, %v4301_v50  ;;  %v1646_v53 = vadd.f32 %v1638_v49, %v4302_v52  ;;  %v1599_v54 = vpop.f32.mrb[30].mxu0  ;;  %v1640_v57 = vpop.f32.mrb[30].mxu1  ;;  %v4303_v47 = vld [vmem:[#allocation11_spill] sm:$0xff]  ;;  %v4304_v50 = vld [vmem:[#allocation12_spill] sm:$0xff] }
 0x436   :  { %v3089_v58 = vmul.f32 -1.442695, %v1643_v42  ;;  %v1600_v59 = vpop.f32.mrb[31].mxu0  ;;  %v1641_v60 = vpop.f32.mrb[31].mxu1  ;;  %v4305_v54 = vld [vmem:[#allocation13_spill] sm:$0xff] }
 0x437   :  { %v3090_v62 = vmul.f32 -1.442695, %v1644_v51  ;;  %v3091_v63 = vmul.f32 -1.442695, %v1646_v53 }
 0x438   :  { %3433 = vpow2.f32 %v3089_v58  ;;  %v4306_v58 = vld [vmem:[#allocation14_spill] sm:$0xff] }
 0x439   :  { %3435 = vpow2.f32 %v3090_v62 }
 0x43a   :  { %3437 = vpow2.f32 %v3091_v63 }
 0x43b   :  { %3439 = vtanh.f32 %v1645_v46 }
 0x442   :  { %v3434_v1 = vpop.eup %3433 }
 0x443   :  { %v3436_v2 = vpop.eup %3435  ;;  %v1650_v5 = vadd.f32 1.0, %v3434_v1 }
 0x444   :  { %v1656_v6 = vadd.f32 1.0, %v3436_v2  ;;  %v3438_v8 = vpop.eup %3437 }
 0x445   :  { %3441 = vrcp.f32 %v1650_v5  ;;  %v3440_v9 = vpop.eup %3439  ;;  %v1663_v55 = vadd.f32 1.0, %v3438_v8 }
 0x446   :  { %3443 = vrcp.f32 %v1656_v6 }
 0x447   :  { %3445 = vrcp.f32 %v1663_v55 }
 0x44f   :  { %v3442_v10 = vpop.eup %3441 }
 0x450   :  { %v3444_v12 = vpop.eup %3443  ;;  %v1667_v13 = vmul.f32 %v3442_v10, %v3440_v9 }
 0x451   :  { %v1666_v61 = vmul.f32 %v3444_v12, %v4015_v11  ;;  %v3446_v40 = vpop.eup %3445 }
 0x453   :  { %v4126_v39 = vadd.f32 %v1667_v13, %v1666_v61 }
 0x455   :  { %3447 = vtanh.f32 %v4126_v39 }
 0x45f   :  { %v3448_v41 = vpop.eup %3447 }
 0x460   :  { %v1670_v42 = vmul.f32 %v3448_v41, %v3446_v40 }
 0x462   :  { %3092 = vst [vmem:[%s4273_s4 + $0x18] sm:$0xff] %v1670_v42  ;;  %v1678_v43 = vpack.c.bf16 %v1670_v42, %v1670_v42 }
 0x464   :  { %1904 = vmatmul.mubr.bf16.vlgmr.msra.gmra.mrb[32].mxu0 %v1678_v43  ;;  %1945 = vmatmul.mubr.bf16.vlgmr.msra.gmra.mrb[32].mxu1 %v1678_v43 }
 0x465   :  { %2182 = vmatpush1.bf16.msra.mxu0 %v4027_v15  ;;  %2223 = vmatpush1.bf16.msra.mxu1 %v4029_v19 }
 0x466   :  { %2183 = vmatprep.subr.bf16.mxu0 %v4035_v30  ;;  %2224 = vmatprep.subr.bf16.mxu1 %v4037_v48 }
 0x467   :  { %2213 = vmatprep.mubr.bf16.mxu0 %v4297_v45  ;;  %2254 = vmatprep.mubr.bf16.mxu1 %v4297_v45 }
 0x469   :  { %2184 = vmatpush1.bf16.msra.mxu0 %v4039_v22  ;;  %2225 = vmatpush1.bf16.msra.mxu1 %v4041_v21 }
 0x46a   :  { %2185 = vmatprep.subr.bf16.mxu0 %v4047_v23  ;;  %2226 = vmatprep.subr.bf16.mxu1 %v4049_v25 }
 0x46d   :  { %2186 = vmatpush1.bf16.msra.mxu0 %v4051_v24  ;;  %2227 = vmatpush1.bf16.msra.mxu1 %v4053_v26 }
 0x46e   :  { %2187 = vmatprep.subr.bf16.mxu0 %v4059_v0  ;;  %2228 = vmatprep.subr.bf16.mxu1 %v4061_v35 }
 0x471   :  { %2188 = vmatpush1.bf16.msra.mxu0 %v4063_v36  ;;  %2229 = vmatpush1.bf16.msra.mxu1 %v4065_v27 }
 0x472   :  { %2189 = vmatprep.subr.bf16.mxu0 %v4071_v28  ;;  %2230 = vmatprep.subr.bf16.mxu1 %v4073_v31 }
 0x475   :  { %2190 = vmatpush1.bf16.msra.mxu0 %v4075_v33  ;;  %2231 = vmatpush1.bf16.msra.mxu1 %v4077_v37 }
 0x476   :  { %2191 = vmatprep.subr.bf16.mxu0 %v4081_v34  ;;  %2232 = vmatprep.subr.bf16.mxu1 %v4089_v3 }
 0x479   :  { %2192 = vmatpush1.bf16.msra.mxu0 %v4085_v44  ;;  %2233 = vmatpush1.bf16.msra.mxu1 %v4087_v16 }
 0x47a   :  { %2193 = vmatprep.subr.bf16.mxu0 %v4092_v32  ;;  %2234 = vmatprep.subr.bf16.mxu1 %v4094_v18 }
 0x47d   :  { %2194 = vmatpush1.bf16.msra.mxu0 %v4099_v56  ;;  %2235 = vmatpush1.bf16.msra.mxu1 %v4101_v17 }
 0x47e   :  { %2195 = vmatprep.subr.bf16.mxu0 %v4105_v29  ;;  %2236 = vmatprep.subr.bf16.mxu1 %v4107_v20 }
 0x481   :  { %2196 = vmatpush1.bf16.msra.mxu0 %v4111_v7  ;;  %2237 = vmatpush1.bf16.msra.mxu1 %v4113_v38 }
 0x482   :  { %2491 = vmatprep.subr.bf16.mxu0 %v4023_v4  ;;  %2532 = vmatprep.subr.bf16.mxu1 %v4025_v14 }
 0x537   :  { %v1905_v11 = vpop.f32.mrb[32].mxu0  ;;  %v1946_v46 = vpop.f32.mrb[32].mxu1 }
 0x538   :  { %v1953_v49 = vadd.f32 %v1905_v11, %v4303_v47  ;;  %v1955_v51 = vadd.f32 %v1946_v46, %v4304_v50  ;;  %v1907_v52 = vpop.f32.mrb[33].mxu0  ;;  %v1948_v53 = vpop.f32.mrb[33].mxu1 }
 0x539   :  { %v1954_v57 = vadd.f32 %v1907_v52, %v4305_v54  ;;  %v1956_v59 = vadd.f32 %v1948_v53, %v4306_v58  ;;  %v1909_v60 = vpop.f32.mrb[34].mxu0  ;;  %v1950_v62 = vpop.f32.mrb[34].mxu1  ;;  %v4307_v52 = vld [vmem:[#allocation15_spill] sm:$0xff]  ;;  %v4308_v54 = vld [vmem:[#allocation16_spill] sm:$0xff] }
 0x53a   :  { %v3125_v63 = vmul.f32 -1.442695, %v1953_v49  ;;  %v1910_v1 = vpop.f32.mrb[35].mxu0  ;;  %v1951_v2 = vpop.f32.mrb[35].mxu1  ;;  %v4309_v60 = vld [vmem:[#allocation17_spill] sm:$0xff] }
 0x53b   :  { %v3126_v5 = vmul.f32 -1.442695, %v1954_v57  ;;  %v3127_v6 = vmul.f32 -1.442695, %v1956_v59 }
 0x53c   :  { %3449 = vpow2.f32 %v3125_v63  ;;  %v4310_v63 = vld [vmem:[#allocation18_spill] sm:$0xff] }
 0x53d   :  { %3451 = vpow2.f32 %v3126_v5 }
 0x53e   :  { %3453 = vpow2.f32 %v3127_v6 }
 0x53f   :  { %3455 = vtanh.f32 %v1955_v51 }
 0x546   :  { %v3450_v8 = vpop.eup %3449 }
 0x547   :  { %v3452_v9 = vpop.eup %3451  ;;  %v1960_v10 = vadd.f32 1.0, %v3450_v8 }
 0x548   :  { %v1966_v12 = vadd.f32 1.0, %v3452_v9  ;;  %v3454_v13 = vpop.eup %3453 }
 0x549   :  { %3457 = vrcp.f32 %v1960_v10  ;;  %v3456_v55 = vpop.eup %3455  ;;  %v1973_v42 = vadd.f32 1.0, %v3454_v13 }
 0x54a   :  { %3459 = vrcp.f32 %v1966_v12 }
 0x54b   :  { %3461 = vrcp.f32 %v1973_v42 }
 0x553   :  { %v3458_v61 = vpop.eup %3457 }
 0x554   :  { %v3460_v40 = vpop.eup %3459  ;;  %v1977_v41 = vmul.f32 %v3458_v61, %v3456_v55 }
 0x555   :  { %v1976_v43 = vmul.f32 %v3460_v40, %v4126_v39  ;;  %v3462_v46 = vpop.eup %3461 }
 0x557   :  { %v4171_v11 = vadd.f32 %v1977_v41, %v1976_v43 }
 0x559   :  { %3463 = vtanh.f32 %v4171_v11 }
 0x563   :  { %v3464_v47 = vpop.eup %3463 }
 0x564   :  { %v1980_v49 = vmul.f32 %v3464_v47, %v3462_v46 }
 0x566   :  { %3128 = vst [vmem:[%s4273_s4 + $0x20] sm:$0xff] %v1980_v49  ;;  %v1988_v50 = vpack.c.bf16 %v1980_v49, %v1980_v49 }
 0x568   :  { %2214 = vmatmul.mubr.bf16.vlgmr.msra.gmra.mrb[36].mxu0 %v1988_v50  ;;  %2255 = vmatmul.mubr.bf16.vlgmr.msra.gmra.mrb[36].mxu1 %v1988_v50 }
 0x569   :  { %2492 = vmatpush1.bf16.msra.mxu0 %v4027_v15  ;;  %2533 = vmatpush1.bf16.msra.mxu1 %v4029_v19 }
 0x56a   :  { %2493 = vmatprep.subr.bf16.mxu0 %v4035_v30  ;;  %2534 = vmatprep.subr.bf16.mxu1 %v4037_v48 }
 0x56b   :  { %2523 = vmatprep.mubr.bf16.mxu0 %v4297_v45  ;;  %2564 = vmatprep.mubr.bf16.mxu1 %v4297_v45 }
 0x56d   :  { %2494 = vmatpush1.bf16.msra.mxu0 %v4039_v22  ;;  %2535 = vmatpush1.bf16.msra.mxu1 %v4041_v21 }
 0x56e   :  { %2495 = vmatprep.subr.bf16.mxu0 %v4047_v23  ;;  %2536 = vmatprep.subr.bf16.mxu1 %v4049_v25 }
 0x571   :  { %2496 = vmatpush1.bf16.msra.mxu0 %v4051_v24  ;;  %2537 = vmatpush1.bf16.msra.mxu1 %v4053_v26 }
 0x572   :  { %2497 = vmatprep.subr.bf16.mxu0 %v4059_v0  ;;  %2538 = vmatprep.subr.bf16.mxu1 %v4061_v35 }
 0x575   :  { %2498 = vmatpush1.bf16.msra.mxu0 %v4063_v36  ;;  %2539 = vmatpush1.bf16.msra.mxu1 %v4065_v27 }
 0x576   :  { %2499 = vmatprep.subr.bf16.mxu0 %v4071_v28  ;;  %2540 = vmatprep.subr.bf16.mxu1 %v4073_v31 }
 0x579   :  { %2500 = vmatpush1.bf16.msra.mxu0 %v4075_v33  ;;  %2541 = vmatpush1.bf16.msra.mxu1 %v4077_v37 }
 0x57a   :  { %2501 = vmatprep.subr.bf16.mxu0 %v4081_v34  ;;  %2542 = vmatprep.subr.bf16.mxu1 %v4089_v3 }
 0x57d   :  { %2502 = vmatpush1.bf16.msra.mxu0 %v4085_v44  ;;  %2543 = vmatpush1.bf16.msra.mxu1 %v4087_v16 }
 0x57e   :  { %2503 = vmatprep.subr.bf16.mxu0 %v4092_v32  ;;  %2544 = vmatprep.subr.bf16.mxu1 %v4094_v18 }
 0x581   :  { %2504 = vmatpush1.bf16.msra.mxu0 %v4099_v56  ;;  %2545 = vmatpush1.bf16.msra.mxu1 %v4101_v17 }
 0x582   :  { %2505 = vmatprep.subr.bf16.mxu0 %v4105_v29  ;;  %2546 = vmatprep.subr.bf16.mxu1 %v4107_v20 }
 0x585   :  { %2506 = vmatpush1.bf16.msra.mxu0 %v4111_v7  ;;  %2547 = vmatpush1.bf16.msra.mxu1 %v4113_v38 }
 0x586   :  { %2801 = vmatprep.subr.bf16.mxu0 %v4023_v4  ;;  %2842 = vmatprep.subr.bf16.mxu1 %v4025_v14 }
 0x63b   :  { %v2215_v39 = vpop.f32.mrb[36].mxu0  ;;  %v2256_v51 = vpop.f32.mrb[36].mxu1 }
 0x63c   :  { %v2263_v53 = vadd.f32 %v2215_v39, %v4307_v52  ;;  %v2265_v57 = vadd.f32 %v2256_v51, %v4308_v54  ;;  %v2217_v58 = vpop.f32.mrb[37].mxu0  ;;  %v2258_v59 = vpop.f32.mrb[37].mxu1 }
 0x63d   :  { %v2264_v62 = vadd.f32 %v2217_v58, %v4309_v60  ;;  %v2266_v1 = vadd.f32 %v2258_v59, %v4310_v63  ;;  %v2219_v2 = vpop.f32.mrb[38].mxu0  ;;  %v2260_v5 = vpop.f32.mrb[38].mxu1  ;;  %v4315_v60 = vld [vmem:[#allocation23_spill] sm:$0xff]  ;;  %v4316_v63 = vld [vmem:[#allocation24_spill] sm:$0xff] }
 0x63e   :  { %v3161_v6 = vmul.f32 -1.442695, %v2263_v53  ;;  %v2220_v8 = vpop.f32.mrb[39].mxu0  ;;  %v2261_v9 = vpop.f32.mrb[39].mxu1 }
 0x63f   :  { %v3162_v4 = vmul.f32 -1.442695, %v2264_v62  ;;  %v3163_v14 = vmul.f32 -1.442695, %v2266_v1  ;;  %v4318_v9 = vld [vmem:[#allocation26_spill] sm:$0xff] }
 0x640   :  { %3465 = vpow2.f32 %v3161_v6  ;;  %v4317_v6 = vld [vmem:[#allocation25_spill] sm:$0xff] }
 0x641   :  { %3467 = vpow2.f32 %v3162_v4 }
 0x642   :  { %3469 = vpow2.f32 %v3163_v14 }
 0x643   :  { %3471 = vtanh.f32 %v2265_v57 }
 0x64a   :  { %v3466_v10 = vpop.eup %3465 }
 0x64b   :  { %v3468_v12 = vpop.eup %3467  ;;  %v2270_v13 = vadd.f32 1.0, %v3466_v10 }
 0x64c   :  { %v2276_v55 = vadd.f32 1.0, %v3468_v12  ;;  %v3470_v61 = vpop.eup %3469 }
 0x64d   :  { %3473 = vrcp.f32 %v2270_v13  ;;  %v3472_v40 = vpop.eup %3471  ;;  %v2283_v46 = vadd.f32 1.0, %v3470_v61 }
 0x64e   :  { %3475 = vrcp.f32 %v2276_v55 }
 0x64f   :  { %3477 = vrcp.f32 %v2283_v46 }
 0x657   :  { %v3474_v41 = vpop.eup %3473 }
 0x658   :  { %v3476_v42 = vpop.eup %3475  ;;  %v2287_v43 = vmul.f32 %v3474_v41, %v3472_v40 }
 0x659   :  { %v2286_v47 = vmul.f32 %v3476_v42, %v4171_v11  ;;  %v3478_v50 = vpop.eup %3477 }
 0x65b   :  { %v4216_v49 = vadd.f32 %v2287_v43, %v2286_v47 }
 0x65d   :  { %3479 = vtanh.f32 %v4216_v49 }
 0x667   :  { %v3480_v39 = vpop.eup %3479 }
 0x668   :  { %v2290_v51 = vmul.f32 %v3480_v39, %v3478_v50 }
 0x66a   :  { %3164 = vst [vmem:[%s4273_s4 + $0x28] sm:$0xff] %v2290_v51  ;;  %v2298_v52 = vpack.c.bf16 %v2290_v51, %v2290_v51 }
 0x66c   :  { %2524 = vmatmul.mubr.bf16.vlgmr.msra.gmra.mrb[40].mxu0 %v2298_v52  ;;  %2565 = vmatmul.mubr.bf16.vlgmr.msra.gmra.mrb[40].mxu1 %v2298_v52 }
 0x66d   :  { %2802 = vmatpush1.bf16.msra.mxu0 %v4027_v15  ;;  %2843 = vmatpush1.bf16.msra.mxu1 %v4029_v19  ;;  %v4311_v19 = vld [vmem:[#allocation19_spill] sm:$0xff] }
 0x66e   :  { %2803 = vmatprep.subr.bf16.mxu0 %v4035_v30  ;;  %2844 = vmatprep.subr.bf16.mxu1 %v4037_v48  ;;  %v4312_v48 = vld [vmem:[#allocation20_spill] sm:$0xff] }
 0x66f   :  { %2833 = vmatprep.mubr.bf16.mxu0 %v4297_v45  ;;  %2874 = vmatprep.mubr.bf16.mxu1 %v4297_v45 }
 0x671   :  { %2804 = vmatpush1.bf16.msra.mxu0 %v4039_v22  ;;  %2845 = vmatpush1.bf16.msra.mxu1 %v4041_v21 }
 0x672   :  { %2805 = vmatprep.subr.bf16.mxu0 %v4047_v23  ;;  %2846 = vmatprep.subr.bf16.mxu1 %v4049_v25  ;;  %v4313_v25 = vld [vmem:[#allocation21_spill] sm:$0xff] }
 0x675   :  { %2806 = vmatpush1.bf16.msra.mxu0 %v4051_v24  ;;  %2847 = vmatpush1.bf16.msra.mxu1 %v4053_v26  ;;  %v4314_v26 = vld [vmem:[#allocation22_spill] sm:$0xff] }
 0x676   :  { %2807 = vmatprep.subr.bf16.mxu0 %v4059_v0  ;;  %2848 = vmatprep.subr.bf16.mxu1 %v4061_v35 }
 0x679   :  { %2808 = vmatpush1.bf16.msra.mxu0 %v4063_v36  ;;  %2849 = vmatpush1.bf16.msra.mxu1 %v4065_v27 }
 0x67a   :  { %2809 = vmatprep.subr.bf16.mxu0 %v4071_v28  ;;  %2850 = vmatprep.subr.bf16.mxu1 %v4073_v31 }
 0x67d   :  { %2810 = vmatpush1.bf16.msra.mxu0 %v4075_v33  ;;  %2851 = vmatpush1.bf16.msra.mxu1 %v4077_v37 }
 0x67e   :  { %2811 = vmatprep.subr.bf16.mxu0 %v4081_v34  ;;  %2852 = vmatprep.subr.bf16.mxu1 %v4089_v3 }
 0x681   :  { %2812 = vmatpush1.bf16.msra.mxu0 %v4085_v44  ;;  %2853 = vmatpush1.bf16.msra.mxu1 %v4087_v16 }
 0x682   :  { %2813 = vmatprep.subr.bf16.mxu0 %v4092_v32  ;;  %2854 = vmatprep.subr.bf16.mxu1 %v4094_v18 }
 0x685   :  { %2814 = vmatpush1.bf16.msra.mxu0 %v4099_v56  ;;  %2855 = vmatpush1.bf16.msra.mxu1 %v4101_v17 }
 0x686   :  { %2815 = vmatprep.subr.bf16.mxu0 %v4105_v29  ;;  %2856 = vmatprep.subr.bf16.mxu1 %v4107_v20 }
 0x689   :  { %2816 = vmatpush1.bf16.msra.mxu0 %v4111_v7  ;;  %2857 = vmatpush1.bf16.msra.mxu1 %v4113_v38 }
 0x73f   :  { %v2525_v45 = vpop.f32.mrb[40].mxu0  ;;  %v2566_v15 = vpop.f32.mrb[40].mxu1 }
 0x740   :  { %v2573_v30 = vadd.f32 %v2525_v45, %v4311_v19  ;;  %v2575_v22 = vadd.f32 %v2566_v15, %v4312_v48  ;;  %v2527_v21 = vpop.f32.mrb[41].mxu0  ;;  %v2568_v23 = vpop.f32.mrb[41].mxu1 }
 0x741   :  { %v2574_v24 = vadd.f32 %v2527_v21, %v4313_v25  ;;  %v2576_v0 = vadd.f32 %v2568_v23, %v4314_v26  ;;  %v2529_v35 = vpop.f32.mrb[42].mxu0  ;;  %v2570_v36 = vpop.f32.mrb[42].mxu1 }
 0x742   :  { %v3197_v27 = vmul.f32 -1.442695, %v2573_v30  ;;  %v2530_v28 = vpop.f32.mrb[43].mxu0  ;;  %v2571_v31 = vpop.f32.mrb[43].mxu1 }
 0x743   :  { %v3198_v33 = vmul.f32 -1.442695, %v2574_v24  ;;  %v3199_v37 = vmul.f32 -1.442695, %v2576_v0 }
 0x744   :  { %3481 = vpow2.f32 %v3197_v27 }
 0x745   :  { %3483 = vpow2.f32 %v3198_v33 }
 0x746   :  { %3485 = vpow2.f32 %v3199_v37 }
 0x747   :  { %3487 = vtanh.f32 %v2575_v22 }
 0x74e   :  { %v3482_v34 = vpop.eup %3481 }
 0x74f   :  { %v3484_v44 = vpop.eup %3483  ;;  %v2580_v16 = vadd.f32 1.0, %v3482_v34 }
 0x750   :  { %v2586_v3 = vadd.f32 1.0, %v3484_v44  ;;  %v3486_v32 = vpop.eup %3485 }
 0x751   :  { %3489 = vrcp.f32 %v2580_v16  ;;  %v3488_v18 = vpop.eup %3487  ;;  %v2593_v20 = vadd.f32 1.0, %v3486_v32 }
 0x752   :  { %3491 = vrcp.f32 %v2586_v3 }
 0x753   :  { %3493 = vrcp.f32 %v2593_v20 }
 0x75b   :  { %v3490_v56 = vpop.eup %3489 }
 0x75c   :  { %v3492_v17 = vpop.eup %3491  ;;  %v2597_v29 = vmul.f32 %v3490_v56, %v3488_v18 }
 0x75d   :  { %v2596_v7 = vmul.f32 %v3492_v17, %v4216_v49  ;;  %v3494_v11 = vpop.eup %3493 }
 0x75f   :  { %v2598_v38 = vadd.f32 %v2597_v29, %v2596_v7 }
 0x761   :  { %3495 = vtanh.f32 %v2598_v38 }
 0x76b   :  { %v3496_v53 = vpop.eup %3495 }
 0x76c   :  { %v2600_v54 = vmul.f32 %v3496_v53, %v3494_v11 }
 0x76e   :  { %3200 = vst [vmem:[%s4273_s4 + $0x30] sm:$0xff] %v2600_v54  ;;  %v2608_v57 = vpack.c.bf16 %v2600_v54, %v2600_v54 }
 0x770   :  { %2834 = vmatmul.mubr.bf16.vlgmr.msra.gmra.mrb[44].mxu0 %v2608_v57  ;;  %2875 = vmatmul.mubr.bf16.vlgmr.msra.gmra.mrb[44].mxu1 %v2608_v57 }
 0x843   :  { %v2835_v58 = vpop.f32.mrb[44].mxu0  ;;  %v2876_v59 = vpop.f32.mrb[44].mxu1 }
 0x844   :  { %v2883_v62 = vadd.f32 %v2835_v58, %v4315_v60  ;;  %v2885_v1 = vadd.f32 %v2876_v59, %v4316_v63  ;;  %v2837_v2 = vpop.f32.mrb[45].mxu0  ;;  %v2878_v5 = vpop.f32.mrb[45].mxu1 }
 0x845   :  { %v2884_v8 = vadd.f32 %v2837_v2, %v4317_v6  ;;  %v2886_v4 = vadd.f32 %v2878_v5, %v4318_v9  ;;  %v2839_v14 = vpop.f32.mrb[46].mxu0  ;;  %v2880_v10 = vpop.f32.mrb[46].mxu1 }
 0x846   :  { %v3233_v12 = vmul.f32 -1.442695, %v2883_v62  ;;  %v2840_v13 = vpop.f32.mrb[47].mxu0  ;;  %v2881_v55 = vpop.f32.mrb[47].mxu1 }
 0x847   :  { %v3234_v61 = vmul.f32 -1.442695, %v2884_v8  ;;  %v3235_v40 = vmul.f32 -1.442695, %v2886_v4 }
 0x848   :  { %3497 = vpow2.f32 %v3233_v12 }
 0x849   :  { %3499 = vpow2.f32 %v3234_v61 }
 0x84a   :  { %3501 = vpow2.f32 %v3235_v40 }
 0x84b   :  { %3503 = vtanh.f32 %v2885_v1 }
 0x852   :  { %v3498_v41 = vpop.eup %3497 }
 0x853   :  { %v3500_v42 = vpop.eup %3499  ;;  %v2890_v43 = vadd.f32 1.0, %v3498_v41 }
 0x854   :  { %v2896_v46 = vadd.f32 1.0, %v3500_v42  ;;  %v3502_v47 = vpop.eup %3501 }
 0x855   :  { %3505 = vrcp.f32 %v2890_v43  ;;  %v3504_v49 = vpop.eup %3503  ;;  %v2903_v52 = vadd.f32 1.0, %v3502_v47 }
 0x856   :  { %3507 = vrcp.f32 %v2896_v46 }
 0x857   :  { %3509 = vrcp.f32 %v2903_v52 }
 0x85f   :  { %v3506_v50 = vpop.eup %3505 }
 0x860   :  { %v3508_v39 = vpop.eup %3507  ;;  %v2907_v51 = vmul.f32 %v3506_v50, %v3504_v49 }
 0x861   :  { %v2906_v45 = vmul.f32 %v3508_v39, %v2598_v38  ;;  %v3510_v19 = vpop.eup %3509 }
 0x863   :  { %v2908_v15 = vadd.f32 %v2907_v51, %v2906_v45 }
 0x865   :  { %3511 = vtanh.f32 %v2908_v15 }
 0x86f   :  { %v3512_v30 = vpop.eup %3511 }
 0x870   :  { %v2910_v48 = vmul.f32 %v3512_v30, %v3510_v19 }
 0x872   :  { %3236 = vst [vmem:[%s4273_s4 + $0x38] sm:$0xff] %v2910_v48 }
 0x873   :  { %2917 = vsyncpa [#allocation4], 1 }

</bundles_post_ra>
